<compile_context>
chip_gen: v7x
topology: tpu7x:2x2x1
jax: 0.10.0
libtpu: 0.0.40
codegen_flags: <defaults>
</compile_context>

<pallas_src>
import math

import jax
import jax.numpy as jnp
from jax.experimental import pallas as pl
from jax.experimental.pallas import tpu as pltpu


LANE = 128
CONV_K = 4
CONV_S = 2
CONV_P = 1


def _round_up(x, m):
    return ((x + m - 1) // m) * m


# ---------------------------------------------------------------------------
# Pallas kernels
# ---------------------------------------------------------------------------
def _matmul_bias_relu_kernel(x_ref, w_ref, b_ref, o_ref):
    acc = jnp.dot(x_ref[...], w_ref[...], preferred_element_type=jnp.float32)
    acc = jnp.maximum(acc + b_ref[...], 0.0)
    o_ref[...] = acc.astype(o_ref.dtype)


def _fc_head_kernel(x_ref, w1_ref, b1_ref, w2_ref, b2_ref, sigmask_ref, o_ref):
    # h = relu(flat @ W_fc + b_fc): stays on-chip, never round-trips HBM.
    h = jnp.dot(x_ref[...], w1_ref[...], preferred_element_type=jnp.float32)
    h = jnp.maximum(h + b1_ref[...], 0.0)
    # Both heads (mean | std) in a single MXU call on concatenated weights.
    acc = jnp.dot(h.astype(jnp.bfloat16), w2_ref[...],
                  preferred_element_type=jnp.float32)
    acc = acc + b2_ref[...]
    # Sigmoid on the std columns only; exp + approx reciprocal both go to EUP.
    sig = pl.reciprocal(1.0 + jnp.exp(-acc), approx=True)
    sig = jnp.clip(sig, 0.0, 1.0)  # guard approx-reciprocal overshoot
    m = sigmask_ref[...]
    o_ref[...] = (acc * (1.0 - m) + sig * m).astype(o_ref.dtype)


# ---------------------------------------------------------------------------
# pallas_call wrappers
# ---------------------------------------------------------------------------
def _conv_matmul(patches, w, b):
    """patches: (M, K) bf16, w: (K, 128) bf16, b: (1, 128) f32 -> (M, 128) bf16."""
    M, K = patches.shape
    _, N = w.shape
    # Split M only for the big conv1 matmul (parallel grid -> both v7x TCs).
    tm = 1024 if (M > 1024 and M % 1024 == 0) else M
    grid_m = M // tm
    return pl.pallas_call(
        _matmul_bias_relu_kernel,
        out_shape=jax.ShapeDtypeStruct((M, N), jnp.bfloat16),
        grid=(grid_m,),
        in_specs=[
            pl.BlockSpec((tm, K), lambda i: (i, 0)),
            pl.BlockSpec((K, N), lambda i: (0, 0)),
            pl.BlockSpec((1, N), lambda i: (0, 0)),
        ],
        out_specs=pl.BlockSpec((tm, N), lambda i: (i, 0)),
        compiler_params=pltpu.CompilerParams(
            dimension_semantics=("parallel",)),
        cost_estimate=pl.CostEstimate(
            flops=2 * M * K * N,
            transcendentals=0,
            bytes_accessed=2 * (M * K + K * N + M * N) + 4 * N),
    )(patches, w, b)


def _fc_head(flat_p, w_fc, b_fc, w_heads, b_heads, sig_mask):
    Mp, K = flat_p.shape
    _, Hd = w_fc.shape
    _, N = w_heads.shape
    return pl.pallas_call(
        _fc_head_kernel,
        out_shape=jax.ShapeDtypeStruct((Mp, N), jnp.float32),
        grid=(1,),
        in_specs=[
            pl.BlockSpec((Mp, K), lambda i: (0, 0)),
            pl.BlockSpec((K, Hd), lambda i: (0, 0)),
            pl.BlockSpec((1, Hd), lambda i: (0, 0)),
            pl.BlockSpec((Hd, N), lambda i: (0, 0)),
            pl.BlockSpec((1, N), lambda i: (0, 0)),
            pl.BlockSpec((1, N), lambda i: (0, 0)),
        ],
        out_specs=pl.BlockSpec((Mp, N), lambda i: (0, 0)),
        compiler_params=pltpu.CompilerParams(
            dimension_semantics=("arbitrary",)),
        cost_estimate=pl.CostEstimate(
            flops=2 * Mp * K * Hd + 2 * Mp * Hd * N,
            transcendentals=Mp * N,
            bytes_accessed=2 * (Mp * K + K * Hd + Hd * N) + 4 * Mp * N),
    )(flat_p, w_fc, b_fc, w_heads, b_heads, sig_mask)


# ---------------------------------------------------------------------------
# Conv (k=4, s=2, p=1) via im2col + fused Pallas matmul (PyTorch semantics)
# ---------------------------------------------------------------------------
def _im2col(x_nhwc, c_real):
    """Patches with flatten order (kh, kw, c) — matches nn.Conv2d weights."""
    B, H, W, _ = x_nhwc.shape
    Ho = (H + 2 * CONV_P - CONV_K) // CONV_S + 1
    Wo = (W + 2 * CONV_P - CONV_K) // CONV_S + 1
    x = x_nhwc[..., :c_real]  # drop zero-padded output channels (fused by XLA)
    xp = jnp.pad(x, ((0, 0), (CONV_P, CONV_P), (CONV_P, CONV_P), (0, 0)))
    cols = []
    for kh in range(CONV_K):
        for kw in range(CONV_K):
            cols.append(xp[:, kh:kh + CONV_S * Ho:CONV_S,
                           kw:kw + CONV_S * Wo:CONV_S, :])
    patches = jnp.stack(cols, axis=3)  # (B, Ho, Wo, 16, c_real)
    return patches.reshape(B * Ho * Wo, CONV_K * CONV_K * c_real), Ho, Wo


def _conv2d_relu(x_nhwc, c_real, w_mat, b_row):
    B = x_nhwc.shape[0]
    patches, Ho, Wo = _im2col(x_nhwc, c_real)
    out = _conv_matmul(patches, w_mat, b_row)
    return out.reshape(B, Ho, Wo, out.shape[-1])


# ---------------------------------------------------------------------------
# Parameters: synthetic torch-layout params + one-time inference-layout prep
# ---------------------------------------------------------------------------
def init_torch_params(in_channels, n_latent, key):
    ks = jax.random.split(key, 14)

    def conv(kw, kb, o, i):
        s = 1.0 / math.sqrt(i * CONV_K * CONV_K)
        return (jax.random.normal(kw, (o, i, CONV_K, CONV_K), jnp.float32) * s,
                jax.random.normal(kb, (o,), jnp.float32) * s)

    def lin(kw, kb, i, o):
        s = 1.0 / math.sqrt(i)
        # stored as (in, out) so kernels compute x @ W
        return (jax.random.normal(kw, (i, o), jnp.float32) * s,
                jax.random.normal(kb, (o,), jnp.float32) * s)

    p = {}
    p["conv1_w"], p["conv1_b"] = conv(ks[0], ks[1], 32, in_channels)
    p["conv2_w"], p["conv2_b"] = conv(ks[2], ks[3], 32, 32)
    p["conv3_w"], p["conv3_b"] = conv(ks[4], ks[5], 64, 32)
    p["conv4_w"], p["conv4_b"] = conv(ks[6], ks[7], 64, 64)
    p["fc_w"], p["fc_b"] = lin(ks[8], ks[9], 1024, 256)
    p["fc_mean_w"], p["fc_mean_b"] = lin(ks[10], ks[11], 256, n_latent)
    p["fc_std_w"], p["fc_std_b"] = lin(ks[12], ks[13], 256, n_latent)
    return p


def prep_params(p, in_channels, n_latent):
    """One-time conversion into padded / permuted / bf16 inference layout.
    Pads are zero-filled so padded columns/rows contribute exactly zero."""
    def conv_w(w_oihw, b, c_pad):
        o, i, kh, kw = w_oihw.shape
        w = jnp.transpose(w_oihw, (2, 3, 1, 0))              # (kh, kw, i, o)
        w = jnp.pad(w, ((0, 0), (0, 0), (0, c_pad - i), (0, LANE - o)))
        w = w.reshape(kh * kw * c_pad, LANE).astype(jnp.bfloat16)
        br = jnp.pad(b, (0, LANE - o)).reshape(1, LANE).astype(jnp.float32)
        return w, br

    cin_p = _round_up(in_channels, 8)        # 16 * cin_p is a multiple of 128
    q = {"cin_p": cin_p, "n_latent": n_latent}
    q["w1"], q["b1"] = conv_w(p["conv1_w"], p["conv1_b"], cin_p)
    q["w2"], q["b2"] = conv_w(p["conv2_w"], p["conv2_b"], 32)
    q["w3"], q["b3"] = conv_w(p["conv3_w"], p["conv3_b"], 32)
    q["w4"], q["b4"] = conv_w(p["conv4_w"], p["conv4_b"], 64)

    # fc: permute rows from torch's NCHW flatten (c*16 + h*4 + w) to the NHWC
    # flatten ((h*4 + w)*128 + c) of the channel-padded conv4 output.
    fc = p["fc_w"].reshape(64, 4, 4, 256)                    # (c, h, w, out)
    fc = jnp.transpose(fc, (1, 2, 0, 3))                     # (h, w, c, out)
    fc = jnp.pad(fc, ((0, 0), (0, 0), (0, LANE - 64), (0, 0)))
    q["fc_w"] = fc.reshape(4 * 4 * LANE, 256).astype(jnp.bfloat16)
    q["fc_b"] = p["fc_b"].reshape(1, 256).astype(jnp.float32)

    # heads: concat mean | std along N and pad to one lane-dense block.
    wh = jnp.concatenate([p["fc_mean_w"], p["fc_std_w"]], axis=1)  # (256, 2nl)
    assert wh.shape[1] <= LANE
    q["wh"] = jnp.pad(wh, ((0, 0), (0, LANE - wh.shape[1]))).astype(jnp.bfloat16)
    bh = jnp.concatenate([p["fc_mean_b"], p["fc_std_b"]], axis=0)
    q["bh"] = jnp.pad(bh, (0, LANE - bh.shape[0])).reshape(1, LANE).astype(
        jnp.float32)
    q["sigmask"] = jnp.zeros((1, LANE), jnp.float32).at[
        0, n_latent:2 * n_latent].set(1.0)
    return q


# ---------------------------------------------------------------------------
# DFVE forward == ConvEncoder forward: returns (z_mean, z_std)
# ---------------------------------------------------------------------------
def dfve_forward(q, x_nchw):
    B, C, _, _ = x_nchw.shape
    nl = q["n_latent"]
    # NCHW -> NHWC; pad input channels once so conv1's im2col K == 128.
    x = jnp.transpose(x_nchw, (0, 2, 3, 1))
    x = jnp.pad(x, ((0, 0), (0, 0), (0, 0), (0, q["cin_p"] - C)))
    x = x.astype(jnp.bfloat16)

    out = _conv2d_relu(x, q["cin_p"], q["w1"], q["b1"])   # (B, 32, 32, 128)
    out = _conv2d_relu(out, 32, q["w2"], q["b2"])          # (B, 16, 16, 128)
    out = _conv2d_relu(out, 32, q["w3"], q["b3"])          # (B,  8,  8, 128)
    out = _conv2d_relu(out, 64, q["w4"], q["b4"])          # (B,  4,  4, 128)

    # NHWC flatten feeds the row-permuted fc weights directly (no transpose).
    flat = out.reshape(B, 4 * 4 * LANE)
    Mp = _round_up(B, 16)
    flat = jnp.pad(flat, ((0, Mp - B), (0, 0)))

    head = _fc_head(flat, q["fc_w"], q["fc_b"], q["wh"], q["bh"], q["sigmask"])
    z_mean = head[:B, :nl]
    z_std = head[:B, nl:2 * nl]
    return z_mean, z_std
    # TODO(synk): DFVE.loss (sampling / MMD / KL) is train-time only, not part
    # of forward(), and is not implemented here.


if __name__ == "__main__":
    B, C, H, W = 2, 3, 64, 64   # 64x64 spatial is required by the fc(1024)
    n_latent = 16

    x = jax.random.normal(jax.random.PRNGKey(0), (B, C, H, W), jnp.float32)
    torch_params = init_torch_params(C, n_latent, jax.random.PRNGKey(1))
    params = prep_params(torch_params, C, n_latent)

    fwd = jax.jit(lambda inp: dfve_forward(params, inp))
    z_mean, z_std = fwd(x)
    jax.block_until_ready((z_mean, z_std))

    assert z_mean.shape == (B, n_latent) and z_std.shape == (B, n_latent)
    assert bool(jnp.all(jnp.isfinite(z_mean)))
    assert bool(jnp.all((z_std >= 0.0) & (z_std <= 1.0)))
    print("KERNEL_OK")
</pallas_src>

<mosaic_0001>
module attributes {stable_mosaic.version = 11 : i64} {
  func.func @_matmul_bias_relu_kernel(%arg0: i32, %arg1: memref<1024x128xbf16, #tpu.memory_space<vmem>>, %arg2: memref<128x128xbf16, #tpu.memory_space<vmem>>, %arg3: memref<1x128xf32, #tpu.memory_space<vmem>>, %arg4: memref<1024x128xbf16, #tpu.memory_space<vmem>>) attributes {dimension_semantics = [#tpu.dimension_semantics<parallel>], iteration_bounds = array<i64: 2>, scalar_prefetch = 0 : i64, scratch_operands = 0 : i64, tpu.core_type = #tpu.core_type<tc>, window_params = [{transform_indices = @transform_0, window_bounds = array<i64: 1024, 128>}, {pipeline_mode = #tpu.pipeline_mode<synchronous>, transform_indices = @transform_1, window_bounds = array<i64: 128, 128>}, {pipeline_mode = #tpu.pipeline_mode<synchronous>, transform_indices = @transform_2, window_bounds = array<i64: 1, 128>}, {transform_indices = @transform_3, window_bounds = array<i64: 1024, 128>}]} {
    %c0 = arith.constant 0 : index
    %c0_0 = arith.constant 0 : index
    %0 = vector.load %arg1[%c0, %c0_0] : memref<1024x128xbf16, #tpu.memory_space<vmem>>, vector<1024x128xbf16>
    %c0_1 = arith.constant 0 : index
    %c0_2 = arith.constant 0 : index
    %1 = vector.load %arg2[%c0_1, %c0_2] : memref<128x128xbf16, #tpu.memory_space<vmem>>, vector<128x128xbf16>
    %cst = arith.constant dense<0.000000e+00> : vector<1024x128xf32>
    %2 = tpu.matmul %0, %1, %cst {dimension_numbers = #tpu.dot_dimension_numbers<[1], [0], [0], [1], [0, 0, 1, 1], [], []>} : vector<1024x128xbf16>, vector<128x128xbf16>, vector<1024x128xf32> -> vector<1024x128xf32>
    %c0_3 = arith.constant 0 : index
    %c0_4 = arith.constant 0 : index
    %3 = vector.load %arg3[%c0_3, %c0_4] : memref<1x128xf32, #tpu.memory_space<vmem>>, vector<1x128xf32>
    %4 = vector.broadcast %3 : vector<1x128xf32> to vector<1024x128xf32>
    %5 = arith.addf %2, %4 : vector<1024x128xf32>
    %cst_5 = arith.constant 0.000000e+00 : f32
    %6 = vector.broadcast %cst_5 : f32 to vector<1024x128xf32>
    %7 = arith.maximumf %5, %6 : vector<1024x128xf32>
    %8 = arith.truncf %7 : vector<1024x128xf32> to vector<1024x128xbf16>
    %c0_6 = arith.constant 0 : index
    %c0_7 = arith.constant 0 : index
    %9 = vector.load %arg4[%c0_6, %c0_7] : memref<1024x128xbf16, #tpu.memory_space<vmem>>, vector<1024x128xbf16>
    tpu.vector_store %arg4[%c0_6, %c0_7], %8 {strides = array<i32>} : memref<1024x128xbf16, #tpu.memory_space<vmem>>, vector<1024x128xbf16>,
    return
  }
  func.func @transform_0(%arg0: i32) -> (i32, i32) {
    %c0_i32 = arith.constant 0 : i32
    %c0_i32_0 = arith.constant 0 : i32
    return %arg0, %c0_i32 : i32, i32
  }
  func.func @transform_1(%arg0: i32) -> (i32, i32) {
    %c0_i32 = arith.constant 0 : i32
    %c0_i32_0 = arith.constant 0 : i32
    %c0_i32_1 = arith.constant 0 : i32
    return %c0_i32, %c0_i32_0 : i32, i32
  }
  func.func @transform_2(%arg0: i32) -> (i32, i32) {
    %c0_i32 = arith.constant 0 : i32
    %c0_i32_0 = arith.constant 0 : i32
    %c0_i32_1 = arith.constant 0 : i32
    return %c0_i32, %c0_i32_0 : i32, i32
  }
  func.func @transform_3(%arg0: i32) -> (i32, i32) {
    %c0_i32 = arith.constant 0 : i32
    %c0_i32_0 = arith.constant 0 : i32
    return %arg0, %c0_i32 : i32, i32
  }
}

module attributes {stable_mosaic.version = 11 : i64} {
  func.func @_matmul_bias_relu_kernel(%arg0: i32, %arg1: memref<512x512xbf16, #tpu.memory_space<vmem>>, %arg2: memref<512x128xbf16, #tpu.memory_space<vmem>>, %arg3: memref<1x128xf32, #tpu.memory_space<vmem>>, %arg4: memref<512x128xbf16, #tpu.memory_space<vmem>>) attributes {dimension_semantics = [#tpu.dimension_semantics<parallel>], iteration_bounds = array<i64: 1>, scalar_prefetch = 0 : i64, scratch_operands = 0 : i64, tpu.core_type = #tpu.core_type<tc>, window_params = [{transform_indices = @transform_0, window_bounds = array<i64: 512, 512>}, {pipeline_mode = #tpu.pipeline_mode<synchronous>, transform_indices = @transform_1, window_bounds = array<i64: 512, 128>}, {pipeline_mode = #tpu.pipeline_mode<synchronous>, transform_indices = @transform_2, window_bounds = array<i64: 1, 128>}, {transform_indices = @transform_3, window_bounds = array<i64: 512, 128>}]} {
    %c0 = arith.constant 0 : index
    %c0_0 = arith.constant 0 : index
    %0 = vector.load %arg1[%c0, %c0_0] : memref<512x512xbf16, #tpu.memory_space<vmem>>, vector<512x512xbf16>
    %c0_1 = arith.constant 0 : index
    %c0_2 = arith.constant 0 : index
    %1 = vector.load %arg2[%c0_1, %c0_2] : memref<512x128xbf16, #tpu.memory_space<vmem>>, vector<512x128xbf16>
    %cst = arith.constant dense<0.000000e+00> : vector<512x128xf32>
    %2 = tpu.matmul %0, %1, %cst {dimension_numbers = #tpu.dot_dimension_numbers<[1], [0], [0], [1], [0, 0, 1, 1], [], []>} : vector<512x512xbf16>, vector<512x128xbf16>, vector<512x128xf32> -> vector<512x128xf32>
    %c0_3 = arith.constant 0 : index
    %c0_4 = arith.constant 0 : index
    %3 = vector.load %arg3[%c0_3, %c0_4] : memref<1x128xf32, #tpu.memory_space<vmem>>, vector<1x128xf32>
    %4 = vector.broadcast %3 : vector<1x128xf32> to vector<512x128xf32>
    %5 = arith.addf %2, %4 : vector<512x128xf32>
    %cst_5 = arith.constant 0.000000e+00 : f32
    %6 = vector.broadcast %cst_5 : f32 to vector<512x128xf32>
    %7 = arith.maximumf %5, %6 : vector<512x128xf32>
    %8 = arith.truncf %7 : vector<512x128xf32> to vector<512x128xbf16>
    %c0_6 = arith.constant 0 : index
    %c0_7 = arith.constant 0 : index
    %9 = vector.load %arg4[%c0_6, %c0_7] : memref<512x128xbf16, #tpu.memory_space<vmem>>, vector<512x128xbf16>
    tpu.vector_store %arg4[%c0_6, %c0_7], %8 {strides = array<i32>} : memref<512x128xbf16, #tpu.memory_space<vmem>>, vector<512x128xbf16>,
    return
  }
  func.func @transform_0(%arg0: i32) -> (i32, i32) {
    %c0_i32 = arith.constant 0 : i32
    %c0_i32_0 = arith.constant 0 : i32
    return %arg0, %c0_i32 : i32, i32
  }
  func.func @transform_1(%arg0: i32) -> (i32, i32) {
    %c0_i32 = arith.constant 0 : i32
    %c0_i32_0 = arith.constant 0 : i32
    %c0_i32_1 = arith.constant 0 : i32
    return %c0_i32, %c0_i32_0 : i32, i32
  }
  func.func @transform_2(%arg0: i32) -> (i32, i32) {
    %c0_i32 = arith.constant 0 : i32
    %c0_i32_0 = arith.constant 0 : i32
    %c0_i32_1 = arith.constant 0 : i32
    return %c0_i32, %c0_i32_0 : i32, i32
  }
  func.func @transform_3(%arg0: i32) -> (i32, i32) {
    %c0_i32 = arith.constant 0 : i32
    %c0_i32_0 = arith.constant 0 : i32
    return %arg0, %c0_i32 : i32, i32
  }
}

module attributes {stable_mosaic.version = 11 : i64} {
  func.func @_matmul_bias_relu_kernel(%arg0: i32, %arg1: memref<128x512xbf16, #tpu.memory_space<vmem>>, %arg2: memref<512x128xbf16, #tpu.memory_space<vmem>>, %arg3: memref<1x128xf32, #tpu.memory_space<vmem>>, %arg4: memref<128x128xbf16, #tpu.memory_space<vmem>>) attributes {dimension_semantics = [#tpu.dimension_semantics<parallel>], iteration_bounds = array<i64: 1>, scalar_prefetch = 0 : i64, scratch_operands = 0 : i64, tpu.core_type = #tpu.core_type<tc>, window_params = [{transform_indices = @transform_0, window_bounds = array<i64: 128, 512>}, {pipeline_mode = #tpu.pipeline_mode<synchronous>, transform_indices = @transform_1, window_bounds = array<i64: 512, 128>}, {pipeline_mode = #tpu.pipeline_mode<synchronous>, transform_indices = @transform_2, window_bounds = array<i64: 1, 128>}, {transform_indices = @transform_3, window_bounds = array<i64: 128, 128>}]} {
    %c0 = arith.constant 0 : index
    %c0_0 = arith.constant 0 : index
    %0 = vector.load %arg1[%c0, %c0_0] : memref<128x512xbf16, #tpu.memory_space<vmem>>, vector<128x512xbf16>
    %c0_1 = arith.constant 0 : index
    %c0_2 = arith.constant 0 : index
    %1 = vector.load %arg2[%c0_1, %c0_2] : memref<512x128xbf16, #tpu.memory_space<vmem>>, vector<512x128xbf16>
    %cst = arith.constant dense<0.000000e+00> : vector<128x128xf32>
    %2 = tpu.matmul %0, %1, %cst {dimension_numbers = #tpu.dot_dimension_numbers<[1], [0], [0], [1], [0, 0, 1, 1], [], []>} : vector<128x512xbf16>, vector<512x128xbf16>, vector<128x128xf32> -> vector<128x128xf32>
    %c0_3 = arith.constant 0 : index
    %c0_4 = arith.constant 0 : index
    %3 = vector.load %arg3[%c0_3, %c0_4] : memref<1x128xf32, #tpu.memory_space<vmem>>, vector<1x128xf32>
    %4 = vector.broadcast %3 : vector<1x128xf32> to vector<128x128xf32>
    %5 = arith.addf %2, %4 : vector<128x128xf32>
    %cst_5 = arith.constant 0.000000e+00 : f32
    %6 = vector.broadcast %cst_5 : f32 to vector<128x128xf32>
    %7 = arith.maximumf %5, %6 : vector<128x128xf32>
    %8 = arith.truncf %7 : vector<128x128xf32> to vector<128x128xbf16>
    %c0_6 = arith.constant 0 : index
    %c0_7 = arith.constant 0 : index
    %9 = vector.load %arg4[%c0_6, %c0_7] : memref<128x128xbf16, #tpu.memory_space<vmem>>, vector<128x128xbf16>
    tpu.vector_store %arg4[%c0_6, %c0_7], %8 {strides = array<i32>} : memref<128x128xbf16, #tpu.memory_space<vmem>>, vector<128x128xbf16>,
    return
  }
  func.func @transform_0(%arg0: i32) -> (i32, i32) {
    %c0_i32 = arith.constant 0 : i32
    %c0_i32_0 = arith.constant 0 : i32
    return %arg0, %c0_i32 : i32, i32
  }
  func.func @transform_1(%arg0: i32) -> (i32, i32) {
    %c0_i32 = arith.constant 0 : i32
    %c0_i32_0 = arith.constant 0 : i32
    %c0_i32_1 = arith.constant 0 : i32
    return %c0_i32, %c0_i32_0 : i32, i32
  }
  func.func @transform_2(%arg0: i32) -> (i32, i32) {
    %c0_i32 = arith.constant 0 : i32
    %c0_i32_0 = arith.constant 0 : i32
    %c0_i32_1 = arith.constant 0 : i32
    return %c0_i32, %c0_i32_0 : i32, i32
  }
  func.func @transform_3(%arg0: i32) -> (i32, i32) {
    %c0_i32 = arith.constant 0 : i32
    %c0_i32_0 = arith.constant 0 : i32
    return %arg0, %c0_i32 : i32, i32
  }
}

module attributes {stable_mosaic.version = 11 : i64} {
  func.func @_matmul_bias_relu_kernel(%arg0: i32, %arg1: memref<32x1024xbf16, #tpu.memory_space<vmem>>, %arg2: memref<1024x128xbf16, #tpu.memory_space<vmem>>, %arg3: memref<1x128xf32, #tpu.memory_space<vmem>>, %arg4: memref<32x128xbf16, #tpu.memory_space<vmem>>) attributes {dimension_semantics = [#tpu.dimension_semantics<parallel>], iteration_bounds = array<i64: 1>, scalar_prefetch = 0 : i64, scratch_operands = 0 : i64, tpu.core_type = #tpu.core_type<tc>, window_params = [{transform_indices = @transform_0, window_bounds = array<i64: 32, 1024>}, {pipeline_mode = #tpu.pipeline_mode<synchronous>, transform_indices = @transform_1, window_bounds = array<i64: 1024, 128>}, {pipeline_mode = #tpu.pipeline_mode<synchronous>, transform_indices = @transform_2, window_bounds = array<i64: 1, 128>}, {transform_indices = @transform_3, window_bounds = array<i64: 32, 128>}]} {
    %c0 = arith.constant 0 : index
    %c0_0 = arith.constant 0 : index
    %0 = vector.load %arg1[%c0, %c0_0] : memref<32x1024xbf16, #tpu.memory_space<vmem>>, vector<32x1024xbf16>
    %c0_1 = arith.constant 0 : index
    %c0_2 = arith.constant 0 : index
    %1 = vector.load %arg2[%c0_1, %c0_2] : memref<1024x128xbf16, #tpu.memory_space<vmem>>, vector<1024x128xbf16>
    %cst = arith.constant dense<0.000000e+00> : vector<32x128xf32>
    %2 = tpu.matmul %0, %1, %cst {dimension_numbers = #tpu.dot_dimension_numbers<[1], [0], [0], [1], [0, 0, 1, 1], [], []>} : vector<32x1024xbf16>, vector<1024x128xbf16>, vector<32x128xf32> -> vector<32x128xf32>
    %c0_3 = arith.constant 0 : index
    %c0_4 = arith.constant 0 : index
    %3 = vector.load %arg3[%c0_3, %c0_4] : memref<1x128xf32, #tpu.memory_space<vmem>>, vector<1x128xf32>
    %4 = vector.broadcast %3 : vector<1x128xf32> to vector<32x128xf32>
    %5 = arith.addf %2, %4 : vector<32x128xf32>
    %cst_5 = arith.constant 0.000000e+00 : f32
    %6 = vector.broadcast %cst_5 : f32 to vector<32x128xf32>
    %7 = arith.maximumf %5, %6 : vector<32x128xf32>
    %8 = arith.truncf %7 : vector<32x128xf32> to vector<32x128xbf16>
    %c0_6 = arith.constant 0 : index
    %c0_7 = arith.constant 0 : index
    %9 = vector.load %arg4[%c0_6, %c0_7] : memref<32x128xbf16, #tpu.memory_space<vmem>>, vector<32x128xbf16>
    tpu.vector_store %arg4[%c0_6, %c0_7], %8 {strides = array<i32>} : memref<32x128xbf16, #tpu.memory_space<vmem>>, vector<32x128xbf16>,
    return
  }
  func.func @transform_0(%arg0: i32) -> (i32, i32) {
    %c0_i32 = arith.constant 0 : i32
    %c0_i32_0 = arith.constant 0 : i32
    return %arg0, %c0_i32 : i32, i32
  }
  func.func @transform_1(%arg0: i32) -> (i32, i32) {
    %c0_i32 = arith.constant 0 : i32
    %c0_i32_0 = arith.constant 0 : i32
    %c0_i32_1 = arith.constant 0 : i32
    return %c0_i32, %c0_i32_0 : i32, i32
  }
  func.func @transform_2(%arg0: i32) -> (i32, i32) {
    %c0_i32 = arith.constant 0 : i32
    %c0_i32_0 = arith.constant 0 : i32
    %c0_i32_1 = arith.constant 0 : i32
    return %c0_i32, %c0_i32_0 : i32, i32
  }
  func.func @transform_3(%arg0: i32) -> (i32, i32) {
    %c0_i32 = arith.constant 0 : i32
    %c0_i32_0 = arith.constant 0 : i32
    return %arg0, %c0_i32 : i32, i32
  }
}

module attributes {stable_mosaic.version = 11 : i64} {
  func.func @_fc_head_kernel(%arg0: i32, %arg1: memref<16x2048xbf16, #tpu.memory_space<vmem>>, %arg2: memref<2048x256xbf16, #tpu.memory_space<vmem>>, %arg3: memref<1x256xf32, #tpu.memory_space<vmem>>, %arg4: memref<256x128xbf16, #tpu.memory_space<vmem>>, %arg5: memref<1x128xf32, #tpu.memory_space<vmem>>, %arg6: memref<1x128xf32, #tpu.memory_space<vmem>>, %arg7: memref<16x128xf32, #tpu.memory_space<vmem>>) attributes {dimension_semantics = [#tpu.dimension_semantics<arbitrary>], iteration_bounds = array<i64: 1>, scalar_prefetch = 0 : i64, scratch_operands = 0 : i64, tpu.core_type = #tpu.core_type<tc>, window_params = [{pipeline_mode = #tpu.pipeline_mode<synchronous>, transform_indices = @transform_0, window_bounds = array<i64: 16, 2048>}, {pipeline_mode = #tpu.pipeline_mode<synchronous>, transform_indices = @transform_1, window_bounds = array<i64: 2048, 256>}, {pipeline_mode = #tpu.pipeline_mode<synchronous>, transform_indices = @transform_2, window_bounds = array<i64: 1, 256>}, {pipeline_mode = #tpu.pipeline_mode<synchronous>, transform_indices = @transform_3, window_bounds = array<i64: 256, 128>}, {pipeline_mode = #tpu.pipeline_mode<synchronous>, transform_indices = @transform_4, window_bounds = array<i64: 1, 128>}, {pipeline_mode = #tpu.pipeline_mode<synchronous>, transform_indices = @transform_5, window_bounds = array<i64: 1, 128>}, {pipeline_mode = #tpu.pipeline_mode<synchronous>, transform_indices = @transform_6, window_bounds = array<i64: 16, 128>}]} {
    %c0 = arith.constant 0 : index
    %c0_0 = arith.constant 0 : index
    %0 = vector.load %arg1[%c0, %c0_0] : memref<16x2048xbf16, #tpu.memory_space<vmem>>, vector<16x2048xbf16>
    %c0_1 = arith.constant 0 : index
    %c0_2 = arith.constant 0 : index
    %1 = vector.load %arg2[%c0_1, %c0_2] : memref<2048x256xbf16, #tpu.memory_space<vmem>>, vector<2048x256xbf16>
    %cst = arith.constant dense<0.000000e+00> : vector<16x256xf32>
    %2 = tpu.matmul %0, %1, %cst {dimension_numbers = #tpu.dot_dimension_numbers<[1], [0], [0], [1], [0, 0, 1, 1], [], []>} : vector<16x2048xbf16>, vector<2048x256xbf16>, vector<16x256xf32> -> vector<16x256xf32>
    %c0_3 = arith.constant 0 : index
    %c0_4 = arith.constant 0 : index
    %3 = vector.load %arg3[%c0_3, %c0_4] : memref<1x256xf32, #tpu.memory_space<vmem>>, vector<1x256xf32>
    %4 = vector.broadcast %3 : vector<1x256xf32> to vector<16x256xf32>
    %5 = arith.addf %2, %4 : vector<16x256xf32>
    %cst_5 = arith.constant 0.000000e+00 : f32
    %6 = vector.broadcast %cst_5 : f32 to vector<16x256xf32>
    %7 = arith.maximumf %5, %6 : vector<16x256xf32>
    %8 = arith.truncf %7 : vector<16x256xf32> to vector<16x256xbf16>
    %c0_6 = arith.constant 0 : index
    %c0_7 = arith.constant 0 : index
    %9 = vector.load %arg4[%c0_6, %c0_7] : memref<256x128xbf16, #tpu.memory_space<vmem>>, vector<256x128xbf16>
    %cst_8 = arith.constant dense<0.000000e+00> : vector<16x128xf32>
    %10 = tpu.matmul %8, %9, %cst_8 {dimension_numbers = #tpu.dot_dimension_numbers<[1], [0], [0], [1], [0, 0, 1, 1], [], []>} : vector<16x256xbf16>, vector<256x128xbf16>, vector<16x128xf32> -> vector<16x128xf32>
    %c0_9 = arith.constant 0 : index
    %c0_10 = arith.constant 0 : index
    %11 = vector.load %arg5[%c0_9, %c0_10] : memref<1x128xf32, #tpu.memory_space<vmem>>, vector<1x128xf32>
    %12 = vector.broadcast %11 : vector<1x128xf32> to vector<16x128xf32>
    %13 = arith.addf %10, %12 : vector<16x128xf32>
    %cst_11 = arith.constant 0.000000e+00 : f32
    %14 = vector.broadcast %cst_11 : f32 to vector<16x128xf32>
    %15 = arith.subf %14, %13 : vector<16x128xf32>
    %16 = math.exp %15 : vector<16x128xf32>
    %cst_12 = arith.constant 1.000000e+00 : f32
    %17 = vector.broadcast %cst_12 : f32 to vector<16x128xf32>
    %18 = arith.addf %17, %16 : vector<16x128xf32>
    %19 = tpu.reciprocal %18 {approx = true} : vector<16x128xf32> -> vector<16x128xf32>
    %cst_13 = arith.constant 0.000000e+00 : f32
    %cst_14 = arith.constant 1.000000e+00 : f32
    %20 = vector.broadcast %cst_13 : f32 to vector<16x128xf32>
    %21 = arith.maximumf %20, %19 : vector<16x128xf32>
    %22 = vector.broadcast %cst_14 : f32 to vector<16x128xf32>
    %23 = arith.minimumf %22, %21 : vector<16x128xf32>
    %c0_15 = arith.constant 0 : index
    %c0_16 = arith.constant 0 : index
    %24 = vector.load %arg6[%c0_15, %c0_16] : memref<1x128xf32, #tpu.memory_space<vmem>>, vector<1x128xf32>
    %cst_17 = arith.constant 1.000000e+00 : f32
    %25 = vector.broadcast %cst_17 : f32 to vector<1x128xf32>
    %26 = arith.subf %25, %24 : vector<1x128xf32>
    %27 = vector.broadcast %26 : vector<1x128xf32> to vector<16x128xf32>
    %28 = arith.mulf %13, %27 : vector<16x128xf32>
    %29 = vector.broadcast %24 : vector<1x128xf32> to vector<16x128xf32>
    %30 = arith.mulf %23, %29 : vector<16x128xf32>
    %31 = arith.addf %28, %30 : vector<16x128xf32>
    %c0_18 = arith.constant 0 : index
    %c0_19 = arith.constant 0 : index
    %32 = vector.load %arg7[%c0_18, %c0_19] : memref<16x128xf32, #tpu.memory_space<vmem>>, vector<16x128xf32>
    tpu.vector_store %arg7[%c0_18, %c0_19], %31 {strides = array<i32>} : memref<16x128xf32, #tpu.memory_space<vmem>>, vector<16x128xf32>,
    return
  }
  func.func @transform_0(%arg0: i32) -> (i32, i32) {
    %c0_i32 = arith.constant 0 : i32
    %c0_i32_0 = arith.constant 0 : i32
    %c0_i32_1 = arith.constant 0 : i32
    return %c0_i32, %c0_i32_0 : i32, i32
  }
  func.func @transform_1(%arg0: i32) -> (i32, i32) {
    %c0_i32 = arith.constant 0 : i32
    %c0_i32_0 = arith.constant 0 : i32
    %c0_i32_1 = arith.constant 0 : i32
    return %c0_i32, %c0_i32_0 : i32, i32
  }
  func.func @transform_2(%arg0: i32) -> (i32, i32) {
    %c0_i32 = arith.constant 0 : i32
    %c0_i32_0 = arith.constant 0 : i32
    %c0_i32_1 = arith.constant 0 : i32
    return %c0_i32, %c0_i32_0 : i32, i32
  }
  func.func @transform_3(%arg0: i32) -> (i32, i32) {
    %c0_i32 = arith.constant 0 : i32
    %c0_i32_0 = arith.constant 0 : i32
    %c0_i32_1 = arith.constant 0 : i32
    return %c0_i32, %c0_i32_0 : i32, i32
  }
  func.func @transform_4(%arg0: i32) -> (i32, i32) {
    %c0_i32 = arith.constant 0 : i32
    %c0_i32_0 = arith.constant 0 : i32
    %c0_i32_1 = arith.constant 0 : i32
    return %c0_i32, %c0_i32_0 : i32, i32
  }
  func.func @transform_5(%arg0: i32) -> (i32, i32) {
    %c0_i32 = arith.constant 0 : i32
    %c0_i32_0 = arith.constant 0 : i32
    %c0_i32_1 = arith.constant 0 : i32
    return %c0_i32, %c0_i32_0 : i32, i32
  }
  func.func @transform_6(%arg0: i32) -> (i32, i32) {
    %c0_i32 = arith.constant 0 : i32
    %c0_i32_0 = arith.constant 0 : i32
    %c0_i32_1 = arith.constant 0 : i32
    return %c0_i32, %c0_i32_0 : i32, i32
  }
}

</mosaic_0001>

<bundles_post_ra>
// kernel: _lambda_.5
= control target key start
LH: loop header
LB: loop body
LE: loop exit
PB: predicated region body
PF: predicated region fallthrough
CT: control target
= control target key end

     0   :  { %s3190_s12 = smov 0   ;;  %s3503_s0 = inlined_call_operand.vmem [shape: bf16[2048,128], index: 0, kind: input, shape index: {}]   ;;  %s3504_s1 = inlined_call_operand.vmem [shape: bf16[128,128], index: 1, kind: input, shape index: {}]   ;;  %s3505_s2 = inlined_call_operand.vmem [shape: f32[1,128], index: 2, kind: input, shape index: {}]   ;;  %s3506_s3 = inlined_call_operand.vmem [shape: bf16[2048,128], index: 3, kind: output, shape index: {}]  }
   0x1 LB: > { %s2127_s13 = sadd.s32 4294967295, %s3168_s12   ;;  %p2131_p0 = scmp.ge.s32.totalorder %s3168_s12, 1  ;;  %s3168_s12 = sphi %s3190_s12, %s13_s12  }
   0x2   : > { %p138_p1 = scmp.lt.s32.totalorder %s3168_s12, 3 }
   0x4   : > { %p139_p2 = pnand %p2131_p0, %p138_p1 }
   0x5   : > { %v3090_v0 = vld [vmem:[%s3504_s1] sm:$0xff] (!%p139_p2)   ;;  %s2132_s16 = sshll.u32 (!%p139_p2), %s2127_s13, 7  ;;  %v3091_v1 = vld [vmem:[%s3504_s1 + $0x8] sm:$0xff] (!%p139_p2)   ;;  %v3092_v2 = vld [vmem:[%s3504_s1 + $0x10] sm:$0xff] (!%p139_p2)  }
   0x6   : > { %142 = sbr.rel (%p139_p2) target bundleno = 380 (0x17c), region = 32  ;;  %p163_p3 = scmp.lt.s32.totalorder (!%p139_p2), %s2132_s16, 255  ;;  %2922 = vmatprep.subr.bf16.mxu0 (!%p139_p2), %v3090_v0  ;;  %3066 = vmatprep.subr.bf16.mxu1 (!%p139_p2), %v3090_v0  ;;  %v3093_v3 = vld [vmem:[%s3504_s1 + $0x18] sm:$0xff] (!%p139_p2)   ;;  %v3094_v6 = vld [vmem:[%s3504_s1 + $0x20] sm:$0xff] (!%p139_p2)   ;;  %v3095_v7 = vld [vmem:[%s3504_s1 + $0x28] sm:$0xff] (!%p139_p2)  }
   0x7   : > { %2923 = vmatpush3.bf16.msra.mxu0 (!%p139_p2), %v3090_v0  ;;  %3074 = vmatpush3.bf16.msra.mxu1 (!%p139_p2), %v3090_v0  ;;  %v3096_v8 = vld [vmem:[%s3504_s1 + $0x30] sm:$0xff] (!%p139_p2)   ;;  %v3097_v9 = vld [vmem:[%s3504_s1 + $0x38] sm:$0xff] (!%p139_p2)  }
   0x8   : > { %2924 = vmatprep.subr.bf16.mxu0 (!%p139_p2), %v3091_v1  ;;  %3067 = vmatprep.subr.bf16.mxu1 (!%p139_p2), %v3091_v1 }
   0xb   : > { %2925 = vmatpush3.bf16.msra.mxu0 (!%p139_p2), %v3091_v1  ;;  %3075 = vmatpush3.bf16.msra.mxu1 (!%p139_p2), %v3091_v1 }
   0xc   : > { %2926 = vmatprep.subr.bf16.mxu0 (!%p139_p2), %v3092_v2  ;;  %3068 = vmatprep.subr.bf16.mxu1 (!%p139_p2), %v3092_v2 }
   0xd   : > { %s3508_s16 = smov (!%p163_p3, %s2132_s16), 255 }
   0xe   : > { %s2133_s21 = sshll.u32 %s3508_s16, 2 }
   0xf   : > { %s3215_s24 = scalar_lea.vmem %s3503_s0, %s2133_s21  ;;  %2927 = vmatpush3.bf16.msra.mxu0 %v3092_v2  ;;  %3076 = vmatpush3.bf16.msra.mxu1 %v3092_v2  ;;  %s3314_s13 = scalar_lea.vmem %s3506_s3, %s2133_s21 }
  0x10   : > { %v3098_v4 = vld [vmem:[%s3215_s24] sm:$0xff]   ;;  %2928 = vmatprep.subr.bf16.mxu0 %v3093_v3  ;;  %3069 = vmatprep.subr.bf16.mxu1 %v3093_v3  ;;  %v3100_v10 = vld [vmem:[%s3215_s24 + $0x8] sm:$0xff]   ;;  %v3102_v12 = vld [vmem:[%s3215_s24 + $0x10] sm:$0xff]  }
  0x11   : > { %v3099_v5 = vld [vmem:[%s3215_s24 + $0x100] sm:$0xff]   ;;  %2938 = vmatprep.mubr.bf16.mxu0 %v3098_v4  ;;  %v3101_v11 = vld [vmem:[%s3215_s24 + $0x108] sm:$0xff]   ;;  %v3103_v13 = vld [vmem:[%s3215_s24 + $0x110] sm:$0xff]  }
  0x12   : > { %3002 = vmatprep.mubr.bf16.mxu1 %v3099_v5  ;;  %v3104_v14 = vld [vmem:[%s3215_s24 + $0x18] sm:$0xff]   ;;  %v3106_v16 = vld [vmem:[%s3215_s24 + $0x20] sm:$0xff]   ;;  %v3108_v18 = vld [vmem:[%s3215_s24 + $0x28] sm:$0xff]  }
  0x13   : > { %2929 = vmatpush3.bf16.msra.mxu0 %v3093_v3  ;;  %3077 = vmatpush3.bf16.msra.mxu1 %v3093_v3  ;;  %v3105_v15 = vld [vmem:[%s3215_s24 + $0x118] sm:$0xff]   ;;  %v3107_v17 = vld [vmem:[%s3215_s24 + $0x120] sm:$0xff]   ;;  %v3109_v19 = vld [vmem:[%s3215_s24 + $0x128] sm:$0xff]  }
  0x14   : > { %2930 = vmatprep.subr.bf16.mxu0 %v3094_v6  ;;  %3070 = vmatprep.subr.bf16.mxu1 %v3094_v6  ;;  %v3110_v20 = vld [vmem:[%s3215_s24 + $0x30] sm:$0xff]   ;;  %v3112_v22 = vld [vmem:[%s3215_s24 + $0x38] sm:$0xff]   ;;  %v3114_v24 = vld [vmem:[%s3215_s24 + $0x40] sm:$0xff]  }
  0x15   : > { %v3111_v21 = vld [vmem:[%s3215_s24 + $0x130] sm:$0xff]   ;;  %v3113_v23 = vld [vmem:[%s3215_s24 + $0x138] sm:$0xff]   ;;  %v3115_v25 = vld [vmem:[%s3215_s24 + $0x140] sm:$0xff]  }
  0x16   : > { %v3116_v26 = vld [vmem:[%s3215_s24 + $0x48] sm:$0xff]   ;;  %v3118_v28 = vld [vmem:[%s3215_s24 + $0x50] sm:$0xff]   ;;  %v3120_v30 = vld [vmem:[%s3215_s24 + $0x58] sm:$0xff]  }
  0x17   : > { %2931 = vmatpush3.bf16.msra.mxu0 %v3094_v6  ;;  %3078 = vmatpush3.bf16.msra.mxu1 %v3094_v6  ;;  %v3117_v27 = vld [vmem:[%s3215_s24 + $0x148] sm:$0xff]   ;;  %v3119_v29 = vld [vmem:[%s3215_s24 + $0x150] sm:$0xff]   ;;  %v3121_v31 = vld [vmem:[%s3215_s24 + $0x158] sm:$0xff]  }
  0x18   : > { %2932 = vmatprep.subr.bf16.mxu0 %v3095_v7  ;;  %3071 = vmatprep.subr.bf16.mxu1 %v3095_v7  ;;  %v3122_v32 = vld [vmem:[%s3215_s24 + $0x60] sm:$0xff]   ;;  %v3124_v34 = vld [vmem:[%s3215_s24 + $0x68] sm:$0xff]   ;;  %v3126_v36 = vld [vmem:[%s3215_s24 + $0x70] sm:$0xff]  }
  0x19   : > { %v3123_v33 = vld [vmem:[%s3215_s24 + $0x160] sm:$0xff]   ;;  %v3125_v35 = vld [vmem:[%s3215_s24 + $0x168] sm:$0xff]   ;;  %v3127_v37 = vld [vmem:[%s3215_s24 + $0x170] sm:$0xff]  }
  0x1a   : > { %v3128_v38 = vld [vmem:[%s3215_s24 + $0x78] sm:$0xff]   ;;  %v3130_v40 = vld [vmem:[%s3215_s24 + $0x80] sm:$0xff]   ;;  %v3132_v42 = vld [vmem:[%s3215_s24 + $0x88] sm:$0xff]  }
  0x1b   : > { %2933 = vmatpush3.bf16.msra.mxu0 %v3095_v7  ;;  %3079 = vmatpush3.bf16.msra.mxu1 %v3095_v7  ;;  %v3129_v39 = vld [vmem:[%s3215_s24 + $0x178] sm:$0xff]   ;;  %v3131_v41 = vld [vmem:[%s3215_s24 + $0x180] sm:$0xff]   ;;  %v3133_v43 = vld [vmem:[%s3215_s24 + $0x188] sm:$0xff]  }
  0x1c   : > { %2934 = vmatprep.subr.bf16.mxu0 %v3096_v8  ;;  %3072 = vmatprep.subr.bf16.mxu1 %v3096_v8  ;;  %v3134_v44 = vld [vmem:[%s3215_s24 + $0x90] sm:$0xff]   ;;  %v3136_v46 = vld [vmem:[%s3215_s24 + $0x98] sm:$0xff]   ;;  %v3138_v48 = vld [vmem:[%s3215_s24 + $0xa0] sm:$0xff]  }
  0x1d   : > { %v3135_v45 = vld [vmem:[%s3215_s24 + $0x190] sm:$0xff]   ;;  %v3137_v47 = vld [vmem:[%s3215_s24 + $0x198] sm:$0xff]   ;;  %v3139_v49 = vld [vmem:[%s3215_s24 + $0x1a0] sm:$0xff]  }
  0x1e   : > { %v3140_v50 = vld [vmem:[%s3215_s24 + $0xa8] sm:$0xff]   ;;  %v3142_v52 = vld [vmem:[%s3215_s24 + $0xb0] sm:$0xff]   ;;  %v3144_v54 = vld [vmem:[%s3215_s24 + $0xb8] sm:$0xff]  }
  0x1f   : > { %2935 = vmatpush3.bf16.msra.mxu0 %v3096_v8  ;;  %3080 = vmatpush3.bf16.msra.mxu1 %v3096_v8  ;;  %v3141_v51 = vld [vmem:[%s3215_s24 + $0x1a8] sm:$0xff]   ;;  %v3143_v53 = vld [vmem:[%s3215_s24 + $0x1b0] sm:$0xff]   ;;  %v3145_v55 = vld [vmem:[%s3215_s24 + $0x1b8] sm:$0xff]  }
  0x20   : > { %2936 = vmatprep.subr.bf16.mxu0 %v3097_v9  ;;  %3073 = vmatprep.subr.bf16.mxu1 %v3097_v9  ;;  %v3146_v56 = vld [vmem:[%s3215_s24 + $0xc0] sm:$0xff]   ;;  %v3148_v58 = vld [vmem:[%s3215_s24 + $0xc8] sm:$0xff]   ;;  %v3150_v60 = vld [vmem:[%s3215_s24 + $0xd0] sm:$0xff]  }
  0x21   : > { %v3147_v57 = vld [vmem:[%s3215_s24 + $0x1c0] sm:$0xff]   ;;  %v3149_v59 = vld [vmem:[%s3215_s24 + $0x1c8] sm:$0xff]   ;;  %v3151_v61 = vld [vmem:[%s3215_s24 + $0x1d0] sm:$0xff]  }
  0x22   : > { %v3152_v62 = vld [vmem:[%s3215_s24 + $0xd8] sm:$0xff]   ;;  %v3154_v0 = vld [vmem:[%s3215_s24 + $0xe0] sm:$0xff]   ;;  %v3156_v2 = vld [vmem:[%s3215_s24 + $0xe8] sm:$0xff]  }
  0x23   : > { %2937 = vmatpush3.bf16.msra.mxu0 %v3097_v9  ;;  %3081 = vmatpush3.bf16.msra.mxu1 %v3097_v9  ;;  %v3153_v63 = vld [vmem:[%s3215_s24 + $0x1d8] sm:$0xff]   ;;  %v3155_v1 = vld [vmem:[%s3215_s24 + $0x1e0] sm:$0xff]   ;;  %v3157_v3 = vld [vmem:[%s3215_s24 + $0x1e8] sm:$0xff]  }
  0x24   : > { %v3158_v4 = vld [vmem:[%s3215_s24 + $0xf0] sm:$0xff]   ;;  %v3160_v6 = vld [vmem:[%s3215_s24 + $0xf8] sm:$0xff]   ;;  %v3299_v8 = vld [vmem:[%s3505_s2] ss:$0 sm:$0xff] }
  0x25   : > { %v3159_v5 = vld [vmem:[%s3215_s24 + $0x1f0] sm:$0xff]   ;;  %v3161_v7 = vld [vmem:[%s3215_s24 + $0x1f8] sm:$0xff]  }
  0x26   : > { %2939 = vmatmul.mubr.bf16.vlgmr.msra.gmra.mrb[0].mxu0 %v3100_v10  ;;  %3003 = vmatmul.mubr.bf16.vlgmr.msra.gmra.mrb[0].mxu1 %v3101_v11 }
  0x27   : > { %2942 = vmatprep.mubr.bf16.mxu0 %v3102_v12  ;;  %3006 = vmatprep.mubr.bf16.mxu1 %v3103_v13 }
  0x2e   : > { %2943 = vmatmul.mubr.bf16.gmra.mrb[4].mxu0 %v3104_v14  ;;  %3007 = vmatmul.mubr.bf16.gmra.mrb[4].mxu1 %v3105_v15 }
  0x2f   : > { %2946 = vmatprep.mubr.bf16.mxu0 %v3106_v16  ;;  %3010 = vmatprep.mubr.bf16.mxu1 %v3107_v17 }
  0x36   : > { %2947 = vmatmul.mubr.bf16.gmra.mrb[8].mxu0 %v3108_v18  ;;  %3011 = vmatmul.mubr.bf16.gmra.mrb[8].mxu1 %v3109_v19 }
  0x37   : > { %2950 = vmatprep.mubr.bf16.mxu0 %v3110_v20  ;;  %3014 = vmatprep.mubr.bf16.mxu1 %v3111_v21 }
  0x3e   : > { %2951 = vmatmul.mubr.bf16.gmra.mrb[12].mxu0 %v3112_v22  ;;  %3015 = vmatmul.mubr.bf16.gmra.mrb[12].mxu1 %v3113_v23 }
  0x3f   : > { %2954 = vmatprep.mubr.bf16.mxu0 %v3114_v24  ;;  %3018 = vmatprep.mubr.bf16.mxu1 %v3115_v25 }
  0x46   : > { %2955 = vmatmul.mubr.bf16.gmra.mrb[16].mxu0 %v3116_v26  ;;  %3019 = vmatmul.mubr.bf16.gmra.mrb[16].mxu1 %v3117_v27 }
  0x47   : > { %2958 = vmatprep.mubr.bf16.mxu0 %v3118_v28  ;;  %3022 = vmatprep.mubr.bf16.mxu1 %v3119_v29 }
  0x4e   : > { %2959 = vmatmul.mubr.bf16.gmra.mrb[20].mxu0 %v3120_v30  ;;  %3023 = vmatmul.mubr.bf16.gmra.mrb[20].mxu1 %v3121_v31 }
  0x4f   : > { %2962 = vmatprep.mubr.bf16.mxu0 %v3122_v32  ;;  %3026 = vmatprep.mubr.bf16.mxu1 %v3123_v33 }
  0x56   : > { %2963 = vmatmul.mubr.bf16.gmra.mrb[24].mxu0 %v3124_v34  ;;  %3027 = vmatmul.mubr.bf16.gmra.mrb[24].mxu1 %v3125_v35 }
  0x57   : > { %2966 = vmatprep.mubr.bf16.mxu0 %v3126_v36  ;;  %3030 = vmatprep.mubr.bf16.mxu1 %v3127_v37 }
  0x5e   : > { %2967 = vmatmul.mubr.bf16.gmra.mrb[28].mxu0 %v3128_v38  ;;  %3031 = vmatmul.mubr.bf16.gmra.mrb[28].mxu1 %v3129_v39 }
  0x5f   : > { %2970 = vmatprep.mubr.bf16.mxu0 %v3130_v40  ;;  %3034 = vmatprep.mubr.bf16.mxu1 %v3131_v41 }
  0x66   : > { %2971 = vmatmul.mubr.bf16.gmra.mrb[32].mxu0 %v3132_v42  ;;  %3035 = vmatmul.mubr.bf16.gmra.mrb[32].mxu1 %v3133_v43 }
  0x67   : > { %2974 = vmatprep.mubr.bf16.mxu0 %v3134_v44  ;;  %3038 = vmatprep.mubr.bf16.mxu1 %v3135_v45 }
  0x6e   : > { %2975 = vmatmul.mubr.bf16.gmra.mrb[36].mxu0 %v3136_v46  ;;  %3039 = vmatmul.mubr.bf16.gmra.mrb[36].mxu1 %v3137_v47 }
  0x6f   : > { %2978 = vmatprep.mubr.bf16.mxu0 %v3138_v48  ;;  %3042 = vmatprep.mubr.bf16.mxu1 %v3139_v49 }
  0x76   : > { %2979 = vmatmul.mubr.bf16.gmra.mrb[40].mxu0 %v3140_v50  ;;  %3043 = vmatmul.mubr.bf16.gmra.mrb[40].mxu1 %v3141_v51 }
  0x77   : > { %2982 = vmatprep.mubr.bf16.mxu0 %v3142_v52  ;;  %3046 = vmatprep.mubr.bf16.mxu1 %v3143_v53 }
  0x7e   : > { %2983 = vmatmul.mubr.bf16.gmra.mrb[44].mxu0 %v3144_v54  ;;  %3047 = vmatmul.mubr.bf16.gmra.mrb[44].mxu1 %v3145_v55 }
  0x7f   : > { %2986 = vmatprep.mubr.bf16.mxu0 %v3146_v56  ;;  %3050 = vmatprep.mubr.bf16.mxu1 %v3147_v57 }
  0x86   : > { %2987 = vmatmul.mubr.bf16.gmra.mrb[48].mxu0 %v3148_v58  ;;  %3051 = vmatmul.mubr.bf16.gmra.mrb[48].mxu1 %v3149_v59 }
  0x87   : > { %2990 = vmatprep.mubr.bf16.mxu0 %v3150_v60  ;;  %3054 = vmatprep.mubr.bf16.mxu1 %v3151_v61 }
  0x8e   : > { %2991 = vmatmul.mubr.bf16.gmra.mrb[52].mxu0 %v3152_v62  ;;  %3055 = vmatmul.mubr.bf16.gmra.mrb[52].mxu1 %v3153_v63 }
  0x8f   : > { %2994 = vmatprep.mubr.bf16.mxu0 %v3154_v0  ;;  %3058 = vmatprep.mubr.bf16.mxu1 %v3155_v1 }
  0x96   : > { %2995 = vmatmul.mubr.bf16.gmra.mrb[56].mxu0 %v3156_v2  ;;  %3059 = vmatmul.mubr.bf16.gmra.mrb[56].mxu1 %v3157_v3 }
  0x97   : > { %2998 = vmatprep.mubr.bf16.mxu0 %v3158_v4  ;;  %3062 = vmatprep.mubr.bf16.mxu1 %v3159_v5 }
  0x9e   : > { %2999 = vmatmul.mubr.bf16.gmra.mrb[60].mxu0 %v3160_v6  ;;  %3063 = vmatmul.mubr.bf16.gmra.mrb[60].mxu1 %v3161_v7 }
  0xf9   : > { %v2940_v9 = vpop.f32.mrb[0].mxu0  ;;  %v3004_v10 = vpop.f32.mrb[0].mxu1 }
  0xfa   : > { %v801_v11 = vadd.f32 %v2940_v9, %v3299_v8  ;;  %v1057_v12 = vadd.f32 %v3004_v10, %v3299_v8  ;;  %v792_v13 = vpop.f32.mrb[1].mxu0  ;;  %v1048_v14 = vpop.f32.mrb[1].mxu1 }
  0xfb   : > { %v793_v15 = vadd.f32 %v3299_v8, %v792_v13  ;;  %v1049_v16 = vadd.f32 %v3299_v8, %v1048_v14  ;;  %v2941_v17 = vpop.f32.mrb[2].mxu0  ;;  %v3005_v18 = vpop.f32.mrb[2].mxu1 }
  0xfc   : > { %v804_v19 = vadd.f32 %v2941_v17, %v3299_v8  ;;  %v1060_v20 = vadd.f32 %v3005_v18, %v3299_v8  ;;  %v795_v21 = vpop.f32.mrb[3].mxu0  ;;  %v1051_v22 = vpop.f32.mrb[3].mxu1  ;;  %v1305_v25 = vmax.f32 %v801_v11, 0.0  ;;  %v1369_v26 = vmax.f32 %v1057_v12, 0.0 }
  0xfd   : > { %v796_v23 = vadd.f32 %v3299_v8, %v795_v21  ;;  %v1052_v24 = vadd.f32 %v3299_v8, %v1051_v22  ;;  %v1303_v29 = vmax.f32 %v793_v15, 0.0  ;;  %v1367_v30 = vmax.f32 %v1049_v16, 0.0 }
  0xfe   : > { %v1306_v27 = vmax.f32 %v804_v19, 0.0  ;;  %v1370_v28 = vmax.f32 %v1060_v20, 0.0 }
  0xff   : > { %v1304_v31 = vmax.f32 %v796_v23, 0.0  ;;  %v1368_v32 = vmax.f32 %v1052_v24, 0.0 }
 0x100   : > { %v2475_v33 = vpack.c.bf16 %v1306_v27, %v1305_v25  ;;  %v2635_v34 = vpack.c.bf16 %v1370_v28, %v1369_v26 }
 0x101   : > { %v2470_v35 = vpack.c.bf16 %v1304_v31, %v1303_v29  ;;  %v2630_v36 = vpack.c.bf16 %v1368_v32, %v1367_v30  ;;  %v2944_v37 = vpop.f32.mrb[4].mxu0  ;;  %v3008_v38 = vpop.f32.mrb[4].mxu1 }
 0x102   : > { %2787 = vst [vmem:[%s3314_s13 + $0x8] sm:$0xff] %v2475_v33   ;;  %2819 = vst [vmem:[%s3314_s13 + $0x108] sm:$0xff] %v2635_v34   ;;  %v817_v39 = vadd.f32 %v2944_v37, %v3299_v8  ;;  %v1073_v40 = vadd.f32 %v3008_v38, %v3299_v8  ;;  %v808_v41 = vpop.f32.mrb[5].mxu0  ;;  %v1064_v42 = vpop.f32.mrb[5].mxu1 }
 0x103   : > { %2471 = vst [vmem:[%s3314_s13] sm:$0xff] %v2470_v35   ;;  %2818 = vst [vmem:[%s3314_s13 + $0x100] sm:$0xff] %v2630_v36   ;;  %v809_v43 = vadd.f32 %v3299_v8, %v808_v41  ;;  %v1065_v44 = vadd.f32 %v3299_v8, %v1064_v42  ;;  %v2945_v45 = vpop.f32.mrb[6].mxu0  ;;  %v3009_v46 = vpop.f32.mrb[6].mxu1 }
 0x104   : > { %v820_v47 = vadd.f32 %v2945_v45, %v3299_v8  ;;  %v1076_v48 = vadd.f32 %v3009_v46, %v3299_v8  ;;  %v811_v49 = vpop.f32.mrb[7].mxu0  ;;  %v1067_v50 = vpop.f32.mrb[7].mxu1  ;;  %v1309_v53 = vmax.f32 %v817_v39, 0.0  ;;  %v1373_v54 = vmax.f32 %v1073_v40, 0.0 }
 0x105   : > { %v812_v51 = vadd.f32 %v3299_v8, %v811_v49  ;;  %v1068_v52 = vadd.f32 %v3299_v8, %v1067_v50  ;;  %v1307_v57 = vmax.f32 %v809_v43, 0.0  ;;  %v1371_v58 = vmax.f32 %v1065_v44, 0.0 }
 0x106   : > { %v1310_v55 = vmax.f32 %v820_v47, 0.0  ;;  %v1374_v56 = vmax.f32 %v1076_v48, 0.0 }
 0x107   : > { %v1308_v59 = vmax.f32 %v812_v51, 0.0  ;;  %v1372_v60 = vmax.f32 %v1068_v52, 0.0 }
 0x108   : > { %v2485_v61 = vpack.c.bf16 %v1310_v55, %v1309_v53  ;;  %v2645_v62 = vpack.c.bf16 %v1374_v56, %v1373_v54 }
 0x109   : > { %v2480_v63 = vpack.c.bf16 %v1308_v59, %v1307_v57  ;;  %v2640_v0 = vpack.c.bf16 %v1372_v60, %v1371_v58  ;;  %v2948_v1 = vpop.f32.mrb[8].mxu0  ;;  %v3012_v2 = vpop.f32.mrb[8].mxu1 }
 0x10a   : > { %2789 = vst [vmem:[%s3314_s13 + $0x18] sm:$0xff] %v2485_v61   ;;  %2821 = vst [vmem:[%s3314_s13 + $0x118] sm:$0xff] %v2645_v62   ;;  %v833_v3 = vadd.f32 %v2948_v1, %v3299_v8  ;;  %v1089_v4 = vadd.f32 %v3012_v2, %v3299_v8  ;;  %v824_v5 = vpop.f32.mrb[9].mxu0  ;;  %v1080_v6 = vpop.f32.mrb[9].mxu1 }
 0x10b   : > { %2788 = vst [vmem:[%s3314_s13 + $0x10] sm:$0xff] %v2480_v63   ;;  %2820 = vst [vmem:[%s3314_s13 + $0x110] sm:$0xff] %v2640_v0   ;;  %v825_v7 = vadd.f32 %v3299_v8, %v824_v5  ;;  %v1081_v9 = vadd.f32 %v3299_v8, %v1080_v6  ;;  %v2949_v10 = vpop.f32.mrb[10].mxu0  ;;  %v3013_v11 = vpop.f32.mrb[10].mxu1 }
 0x10c   : > { %v836_v12 = vadd.f32 %v2949_v10, %v3299_v8  ;;  %v1092_v13 = vadd.f32 %v3013_v11, %v3299_v8  ;;  %v827_v14 = vpop.f32.mrb[11].mxu0  ;;  %v1083_v15 = vpop.f32.mrb[11].mxu1  ;;  %v1313_v18 = vmax.f32 %v833_v3, 0.0  ;;  %v1377_v19 = vmax.f32 %v1089_v4, 0.0 }
 0x10d   : > { %v828_v16 = vadd.f32 %v3299_v8, %v827_v14  ;;  %v1084_v17 = vadd.f32 %v3299_v8, %v1083_v15  ;;  %v1311_v22 = vmax.f32 %v825_v7, 0.0  ;;  %v1375_v23 = vmax.f32 %v1081_v9, 0.0 }
 0x10e   : > { %v1314_v20 = vmax.f32 %v836_v12, 0.0  ;;  %v1378_v21 = vmax.f32 %v1092_v13, 0.0 }
 0x10f   : > { %v1312_v24 = vmax.f32 %v828_v16, 0.0  ;;  %v1376_v25 = vmax.f32 %v1084_v17, 0.0 }
 0x110   : > { %v2495_v26 = vpack.c.bf16 %v1314_v20, %v1313_v18  ;;  %v2655_v27 = vpack.c.bf16 %v1378_v21, %v1377_v19 }
 0x111   : > { %v2490_v28 = vpack.c.bf16 %v1312_v24, %v1311_v22  ;;  %v2650_v29 = vpack.c.bf16 %v1376_v25, %v1375_v23  ;;  %v2952_v30 = vpop.f32.mrb[12].mxu0  ;;  %v3016_v31 = vpop.f32.mrb[12].mxu1 }
 0x112   : > { %2791 = vst [vmem:[%s3314_s13 + $0x28] sm:$0xff] %v2495_v26   ;;  %2823 = vst [vmem:[%s3314_s13 + $0x128] sm:$0xff] %v2655_v27   ;;  %v849_v32 = vadd.f32 %v2952_v30, %v3299_v8  ;;  %v1105_v33 = vadd.f32 %v3016_v31, %v3299_v8  ;;  %v840_v34 = vpop.f32.mrb[13].mxu0  ;;  %v1096_v35 = vpop.f32.mrb[13].mxu1 }
 0x113   : > { %2790 = vst [vmem:[%s3314_s13 + $0x20] sm:$0xff] %v2490_v28   ;;  %2822 = vst [vmem:[%s3314_s13 + $0x120] sm:$0xff] %v2650_v29   ;;  %v841_v36 = vadd.f32 %v3299_v8, %v840_v34  ;;  %v1097_v37 = vadd.f32 %v3299_v8, %v1096_v35  ;;  %v2953_v38 = vpop.f32.mrb[14].mxu0  ;;  %v3017_v39 = vpop.f32.mrb[14].mxu1 }
 0x114   : > { %v852_v40 = vadd.f32 %v2953_v38, %v3299_v8  ;;  %v1108_v41 = vadd.f32 %v3017_v39, %v3299_v8  ;;  %v843_v42 = vpop.f32.mrb[15].mxu0  ;;  %v1099_v43 = vpop.f32.mrb[15].mxu1  ;;  %v1317_v46 = vmax.f32 %v849_v32, 0.0  ;;  %v1381_v47 = vmax.f32 %v1105_v33, 0.0 }
 0x115   : > { %v844_v44 = vadd.f32 %v3299_v8, %v843_v42  ;;  %v1100_v45 = vadd.f32 %v3299_v8, %v1099_v43  ;;  %v1315_v50 = vmax.f32 %v841_v36, 0.0  ;;  %v1379_v51 = vmax.f32 %v1097_v37, 0.0 }
 0x116   : > { %v1318_v48 = vmax.f32 %v852_v40, 0.0  ;;  %v1382_v49 = vmax.f32 %v1108_v41, 0.0 }
 0x117   : > { %v1316_v52 = vmax.f32 %v844_v44, 0.0  ;;  %v1380_v53 = vmax.f32 %v1100_v45, 0.0 }
 0x118   : > { %v2505_v54 = vpack.c.bf16 %v1318_v48, %v1317_v46  ;;  %v2665_v55 = vpack.c.bf16 %v1382_v49, %v1381_v47 }
 0x119   : > { %v2500_v56 = vpack.c.bf16 %v1316_v52, %v1315_v50  ;;  %v2660_v57 = vpack.c.bf16 %v1380_v53, %v1379_v51  ;;  %v2956_v58 = vpop.f32.mrb[16].mxu0  ;;  %v3020_v59 = vpop.f32.mrb[16].mxu1 }
 0x11a   : > { %2793 = vst [vmem:[%s3314_s13 + $0x38] sm:$0xff] %v2505_v54   ;;  %2825 = vst [vmem:[%s3314_s13 + $0x138] sm:$0xff] %v2665_v55   ;;  %v865_v60 = vadd.f32 %v2956_v58, %v3299_v8  ;;  %v1121_v61 = vadd.f32 %v3020_v59, %v3299_v8  ;;  %v856_v62 = vpop.f32.mrb[17].mxu0  ;;  %v1112_v63 = vpop.f32.mrb[17].mxu1 }
 0x11b   : > { %2792 = vst [vmem:[%s3314_s13 + $0x30] sm:$0xff] %v2500_v56   ;;  %2824 = vst [vmem:[%s3314_s13 + $0x130] sm:$0xff] %v2660_v57   ;;  %v857_v0 = vadd.f32 %v3299_v8, %v856_v62  ;;  %v1113_v1 = vadd.f32 %v3299_v8, %v1112_v63  ;;  %v2957_v2 = vpop.f32.mrb[18].mxu0  ;;  %v3021_v3 = vpop.f32.mrb[18].mxu1 }
 0x11c   : > { %v868_v4 = vadd.f32 %v2957_v2, %v3299_v8  ;;  %v1124_v5 = vadd.f32 %v3021_v3, %v3299_v8  ;;  %v859_v6 = vpop.f32.mrb[19].mxu0  ;;  %v1115_v7 = vpop.f32.mrb[19].mxu1  ;;  %v1321_v11 = vmax.f32 %v865_v60, 0.0  ;;  %v1385_v12 = vmax.f32 %v1121_v61, 0.0 }
 0x11d   : > { %v860_v9 = vadd.f32 %v3299_v8, %v859_v6  ;;  %v1116_v10 = vadd.f32 %v3299_v8, %v1115_v7  ;;  %v1319_v15 = vmax.f32 %v857_v0, 0.0  ;;  %v1383_v16 = vmax.f32 %v1113_v1, 0.0 }
 0x11e   : > { %v1322_v13 = vmax.f32 %v868_v4, 0.0  ;;  %v1386_v14 = vmax.f32 %v1124_v5, 0.0 }
 0x11f   : > { %v1320_v17 = vmax.f32 %v860_v9, 0.0  ;;  %v1384_v18 = vmax.f32 %v1116_v10, 0.0 }
 0x120   : > { %v2515_v19 = vpack.c.bf16 %v1322_v13, %v1321_v11  ;;  %v2675_v20 = vpack.c.bf16 %v1386_v14, %v1385_v12 }
 0x121   : > { %v2510_v21 = vpack.c.bf16 %v1320_v17, %v1319_v15  ;;  %v2670_v22 = vpack.c.bf16 %v1384_v18, %v1383_v16  ;;  %v2960_v23 = vpop.f32.mrb[20].mxu0  ;;  %v3024_v24 = vpop.f32.mrb[20].mxu1 }
 0x122   : > { %2795 = vst [vmem:[%s3314_s13 + $0x48] sm:$0xff] %v2515_v19   ;;  %2827 = vst [vmem:[%s3314_s13 + $0x148] sm:$0xff] %v2675_v20   ;;  %v881_v25 = vadd.f32 %v2960_v23, %v3299_v8  ;;  %v1137_v26 = vadd.f32 %v3024_v24, %v3299_v8  ;;  %v872_v27 = vpop.f32.mrb[21].mxu0  ;;  %v1128_v28 = vpop.f32.mrb[21].mxu1 }
 0x123   : > { %2794 = vst [vmem:[%s3314_s13 + $0x40] sm:$0xff] %v2510_v21   ;;  %2826 = vst [vmem:[%s3314_s13 + $0x140] sm:$0xff] %v2670_v22   ;;  %v873_v29 = vadd.f32 %v3299_v8, %v872_v27  ;;  %v1129_v30 = vadd.f32 %v3299_v8, %v1128_v28  ;;  %v2961_v31 = vpop.f32.mrb[22].mxu0  ;;  %v3025_v32 = vpop.f32.mrb[22].mxu1 }
 0x124   : > { %v884_v33 = vadd.f32 %v2961_v31, %v3299_v8  ;;  %v1140_v34 = vadd.f32 %v3025_v32, %v3299_v8  ;;  %v875_v35 = vpop.f32.mrb[23].mxu0  ;;  %v1131_v36 = vpop.f32.mrb[23].mxu1  ;;  %v1325_v39 = vmax.f32 %v881_v25, 0.0  ;;  %v1389_v40 = vmax.f32 %v1137_v26, 0.0 }
 0x125   : > { %v876_v37 = vadd.f32 %v3299_v8, %v875_v35  ;;  %v1132_v38 = vadd.f32 %v3299_v8, %v1131_v36  ;;  %v1323_v43 = vmax.f32 %v873_v29, 0.0  ;;  %v1387_v44 = vmax.f32 %v1129_v30, 0.0 }
 0x126   : > { %v1326_v41 = vmax.f32 %v884_v33, 0.0  ;;  %v1390_v42 = vmax.f32 %v1140_v34, 0.0 }
 0x127   : > { %v1324_v45 = vmax.f32 %v876_v37, 0.0  ;;  %v1388_v46 = vmax.f32 %v1132_v38, 0.0 }
 0x128   : > { %v2525_v47 = vpack.c.bf16 %v1326_v41, %v1325_v39  ;;  %v2685_v48 = vpack.c.bf16 %v1390_v42, %v1389_v40 }
 0x129   : > { %v2520_v49 = vpack.c.bf16 %v1324_v45, %v1323_v43  ;;  %v2680_v50 = vpack.c.bf16 %v1388_v46, %v1387_v44  ;;  %v2964_v51 = vpop.f32.mrb[24].mxu0  ;;  %v3028_v52 = vpop.f32.mrb[24].mxu1 }
 0x12a   : > { %2797 = vst [vmem:[%s3314_s13 + $0x58] sm:$0xff] %v2525_v47   ;;  %2829 = vst [vmem:[%s3314_s13 + $0x158] sm:$0xff] %v2685_v48   ;;  %v897_v53 = vadd.f32 %v2964_v51, %v3299_v8  ;;  %v1153_v54 = vadd.f32 %v3028_v52, %v3299_v8  ;;  %v888_v55 = vpop.f32.mrb[25].mxu0  ;;  %v1144_v56 = vpop.f32.mrb[25].mxu1 }
 0x12b   : > { %2796 = vst [vmem:[%s3314_s13 + $0x50] sm:$0xff] %v2520_v49   ;;  %2828 = vst [vmem:[%s3314_s13 + $0x150] sm:$0xff] %v2680_v50   ;;  %v889_v57 = vadd.f32 %v3299_v8, %v888_v55  ;;  %v1145_v58 = vadd.f32 %v3299_v8, %v1144_v56  ;;  %v2965_v59 = vpop.f32.mrb[26].mxu0  ;;  %v3029_v60 = vpop.f32.mrb[26].mxu1 }
 0x12c   : > { %v900_v61 = vadd.f32 %v2965_v59, %v3299_v8  ;;  %v1156_v62 = vadd.f32 %v3029_v60, %v3299_v8  ;;  %v891_v63 = vpop.f32.mrb[27].mxu0  ;;  %v1147_v0 = vpop.f32.mrb[27].mxu1  ;;  %v1329_v3 = vmax.f32 %v897_v53, 0.0  ;;  %v1393_v4 = vmax.f32 %v1153_v54, 0.0 }
 0x12d   : > { %v892_v1 = vadd.f32 %v3299_v8, %v891_v63  ;;  %v1148_v2 = vadd.f32 %v3299_v8, %v1147_v0  ;;  %v1327_v7 = vmax.f32 %v889_v57, 0.0  ;;  %v1391_v9 = vmax.f32 %v1145_v58, 0.0 }
 0x12e   : > { %v1330_v5 = vmax.f32 %v900_v61, 0.0  ;;  %v1394_v6 = vmax.f32 %v1156_v62, 0.0 }
 0x12f   : > { %v1328_v10 = vmax.f32 %v892_v1, 0.0  ;;  %v1392_v11 = vmax.f32 %v1148_v2, 0.0 }
 0x130   : > { %v2535_v12 = vpack.c.bf16 %v1330_v5, %v1329_v3  ;;  %v2695_v13 = vpack.c.bf16 %v1394_v6, %v1393_v4 }
 0x131   : > { %v2530_v14 = vpack.c.bf16 %v1328_v10, %v1327_v7  ;;  %v2690_v15 = vpack.c.bf16 %v1392_v11, %v1391_v9  ;;  %v2968_v16 = vpop.f32.mrb[28].mxu0  ;;  %v3032_v17 = vpop.f32.mrb[28].mxu1 }
 0x132   : > { %2799 = vst [vmem:[%s3314_s13 + $0x68] sm:$0xff] %v2535_v12   ;;  %2831 = vst [vmem:[%s3314_s13 + $0x168] sm:$0xff] %v2695_v13   ;;  %v913_v18 = vadd.f32 %v2968_v16, %v3299_v8  ;;  %v1169_v19 = vadd.f32 %v3032_v17, %v3299_v8  ;;  %v904_v20 = vpop.f32.mrb[29].mxu0  ;;  %v1160_v21 = vpop.f32.mrb[29].mxu1 }
 0x133   : > { %2798 = vst [vmem:[%s3314_s13 + $0x60] sm:$0xff] %v2530_v14   ;;  %2830 = vst [vmem:[%s3314_s13 + $0x160] sm:$0xff] %v2690_v15   ;;  %v905_v22 = vadd.f32 %v3299_v8, %v904_v20  ;;  %v1161_v23 = vadd.f32 %v3299_v8, %v1160_v21  ;;  %v2969_v24 = vpop.f32.mrb[30].mxu0  ;;  %v3033_v25 = vpop.f32.mrb[30].mxu1 }
 0x134   : > { %v916_v26 = vadd.f32 %v2969_v24, %v3299_v8  ;;  %v1172_v27 = vadd.f32 %v3033_v25, %v3299_v8  ;;  %v907_v28 = vpop.f32.mrb[31].mxu0  ;;  %v1163_v29 = vpop.f32.mrb[31].mxu1  ;;  %v1333_v32 = vmax.f32 %v913_v18, 0.0  ;;  %v1397_v33 = vmax.f32 %v1169_v19, 0.0 }
 0x135   : > { %v908_v30 = vadd.f32 %v3299_v8, %v907_v28  ;;  %v1164_v31 = vadd.f32 %v3299_v8, %v1163_v29  ;;  %v1331_v36 = vmax.f32 %v905_v22, 0.0  ;;  %v1395_v37 = vmax.f32 %v1161_v23, 0.0 }
 0x136   : > { %v1334_v34 = vmax.f32 %v916_v26, 0.0  ;;  %v1398_v35 = vmax.f32 %v1172_v27, 0.0 }
 0x137   : > { %v1332_v38 = vmax.f32 %v908_v30, 0.0  ;;  %v1396_v39 = vmax.f32 %v1164_v31, 0.0 }
 0x138   : > { %v2545_v40 = vpack.c.bf16 %v1334_v34, %v1333_v32  ;;  %v2705_v41 = vpack.c.bf16 %v1398_v35, %v1397_v33 }
 0x139   : > { %v2540_v42 = vpack.c.bf16 %v1332_v38, %v1331_v36  ;;  %v2700_v43 = vpack.c.bf16 %v1396_v39, %v1395_v37  ;;  %v2972_v44 = vpop.f32.mrb[32].mxu0  ;;  %v3036_v45 = vpop.f32.mrb[32].mxu1 }
 0x13a   : > { %2801 = vst [vmem:[%s3314_s13 + $0x78] sm:$0xff] %v2545_v40   ;;  %2833 = vst [vmem:[%s3314_s13 + $0x178] sm:$0xff] %v2705_v41   ;;  %v929_v46 = vadd.f32 %v2972_v44, %v3299_v8  ;;  %v1185_v47 = vadd.f32 %v3036_v45, %v3299_v8  ;;  %v920_v48 = vpop.f32.mrb[33].mxu0  ;;  %v1176_v49 = vpop.f32.mrb[33].mxu1 }
 0x13b   : > { %2800 = vst [vmem:[%s3314_s13 + $0x70] sm:$0xff] %v2540_v42   ;;  %2832 = vst [vmem:[%s3314_s13 + $0x170] sm:$0xff] %v2700_v43   ;;  %v921_v50 = vadd.f32 %v3299_v8, %v920_v48  ;;  %v1177_v51 = vadd.f32 %v3299_v8, %v1176_v49  ;;  %v2973_v52 = vpop.f32.mrb[34].mxu0  ;;  %v3037_v53 = vpop.f32.mrb[34].mxu1 }
 0x13c   : > { %v932_v54 = vadd.f32 %v2973_v52, %v3299_v8  ;;  %v1188_v55 = vadd.f32 %v3037_v53, %v3299_v8  ;;  %v923_v56 = vpop.f32.mrb[35].mxu0  ;;  %v1179_v57 = vpop.f32.mrb[35].mxu1  ;;  %v1337_v60 = vmax.f32 %v929_v46, 0.0  ;;  %v1401_v61 = vmax.f32 %v1185_v47, 0.0 }
 0x13d   : > { %v924_v58 = vadd.f32 %v3299_v8, %v923_v56  ;;  %v1180_v59 = vadd.f32 %v3299_v8, %v1179_v57  ;;  %v1335_v0 = vmax.f32 %v921_v50, 0.0  ;;  %v1399_v1 = vmax.f32 %v1177_v51, 0.0 }
 0x13e   : > { %v1338_v62 = vmax.f32 %v932_v54, 0.0  ;;  %v1402_v63 = vmax.f32 %v1188_v55, 0.0 }
 0x13f   : > { %v1336_v2 = vmax.f32 %v924_v58, 0.0  ;;  %v1400_v3 = vmax.f32 %v1180_v59, 0.0 }
 0x140   : > { %v2555_v4 = vpack.c.bf16 %v1338_v62, %v1337_v60  ;;  %v2715_v5 = vpack.c.bf16 %v1402_v63, %v1401_v61 }
 0x141   : > { %v2550_v6 = vpack.c.bf16 %v1336_v2, %v1335_v0  ;;  %v2710_v7 = vpack.c.bf16 %v1400_v3, %v1399_v1  ;;  %v2976_v9 = vpop.f32.mrb[36].mxu0  ;;  %v3040_v10 = vpop.f32.mrb[36].mxu1 }
 0x142   : > { %2803 = vst [vmem:[%s3314_s13 + $0x88] sm:$0xff] %v2555_v4   ;;  %2835 = vst [vmem:[%s3314_s13 + $0x188] sm:$0xff] %v2715_v5   ;;  %v945_v11 = vadd.f32 %v2976_v9, %v3299_v8  ;;  %v1201_v12 = vadd.f32 %v3040_v10, %v3299_v8  ;;  %v936_v13 = vpop.f32.mrb[37].mxu0  ;;  %v1192_v14 = vpop.f32.mrb[37].mxu1 }
 0x143   : > { %2802 = vst [vmem:[%s3314_s13 + $0x80] sm:$0xff] %v2550_v6   ;;  %2834 = vst [vmem:[%s3314_s13 + $0x180] sm:$0xff] %v2710_v7   ;;  %v937_v15 = vadd.f32 %v3299_v8, %v936_v13  ;;  %v1193_v16 = vadd.f32 %v3299_v8, %v1192_v14  ;;  %v2977_v17 = vpop.f32.mrb[38].mxu0  ;;  %v3041_v18 = vpop.f32.mrb[38].mxu1 }
 0x144   : > { %v948_v19 = vadd.f32 %v2977_v17, %v3299_v8  ;;  %v1204_v20 = vadd.f32 %v3041_v18, %v3299_v8  ;;  %v939_v21 = vpop.f32.mrb[39].mxu0  ;;  %v1195_v22 = vpop.f32.mrb[39].mxu1  ;;  %v1341_v25 = vmax.f32 %v945_v11, 0.0  ;;  %v1405_v26 = vmax.f32 %v1201_v12, 0.0 }
 0x145   : > { %v940_v23 = vadd.f32 %v3299_v8, %v939_v21  ;;  %v1196_v24 = vadd.f32 %v3299_v8, %v1195_v22  ;;  %v1339_v29 = vmax.f32 %v937_v15, 0.0  ;;  %v1403_v30 = vmax.f32 %v1193_v16, 0.0 }
 0x146   : > { %v1342_v27 = vmax.f32 %v948_v19, 0.0  ;;  %v1406_v28 = vmax.f32 %v1204_v20, 0.0 }
 0x147   : > { %v1340_v31 = vmax.f32 %v940_v23, 0.0  ;;  %v1404_v32 = vmax.f32 %v1196_v24, 0.0 }
 0x148   : > { %v2565_v33 = vpack.c.bf16 %v1342_v27, %v1341_v25  ;;  %v2725_v34 = vpack.c.bf16 %v1406_v28, %v1405_v26 }
 0x149   : > { %v2560_v35 = vpack.c.bf16 %v1340_v31, %v1339_v29  ;;  %v2720_v36 = vpack.c.bf16 %v1404_v32, %v1403_v30  ;;  %v2980_v37 = vpop.f32.mrb[40].mxu0  ;;  %v3044_v38 = vpop.f32.mrb[40].mxu1 }
 0x14a   : > { %2805 = vst [vmem:[%s3314_s13 + $0x98] sm:$0xff] %v2565_v33   ;;  %2837 = vst [vmem:[%s3314_s13 + $0x198] sm:$0xff] %v2725_v34   ;;  %v961_v39 = vadd.f32 %v2980_v37, %v3299_v8  ;;  %v1217_v40 = vadd.f32 %v3044_v38, %v3299_v8  ;;  %v952_v41 = vpop.f32.mrb[41].mxu0  ;;  %v1208_v42 = vpop.f32.mrb[41].mxu1 }
 0x14b   : > { %2804 = vst [vmem:[%s3314_s13 + $0x90] sm:$0xff] %v2560_v35   ;;  %2836 = vst [vmem:[%s3314_s13 + $0x190] sm:$0xff] %v2720_v36   ;;  %v953_v43 = vadd.f32 %v3299_v8, %v952_v41  ;;  %v1209_v44 = vadd.f32 %v3299_v8, %v1208_v42  ;;  %v2981_v45 = vpop.f32.mrb[42].mxu0  ;;  %v3045_v46 = vpop.f32.mrb[42].mxu1 }
 0x14c   : > { %v964_v47 = vadd.f32 %v2981_v45, %v3299_v8  ;;  %v1220_v48 = vadd.f32 %v3045_v46, %v3299_v8  ;;  %v955_v49 = vpop.f32.mrb[43].mxu0  ;;  %v1211_v50 = vpop.f32.mrb[43].mxu1  ;;  %v1345_v53 = vmax.f32 %v961_v39, 0.0  ;;  %v1409_v54 = vmax.f32 %v1217_v40, 0.0 }
 0x14d   : > { %v956_v51 = vadd.f32 %v3299_v8, %v955_v49  ;;  %v1212_v52 = vadd.f32 %v3299_v8, %v1211_v50  ;;  %v1343_v57 = vmax.f32 %v953_v43, 0.0  ;;  %v1407_v58 = vmax.f32 %v1209_v44, 0.0 }
 0x14e   : > { %v1346_v55 = vmax.f32 %v964_v47, 0.0  ;;  %v1410_v56 = vmax.f32 %v1220_v48, 0.0 }
 0x14f   : > { %v1344_v59 = vmax.f32 %v956_v51, 0.0  ;;  %v1408_v60 = vmax.f32 %v1212_v52, 0.0 }
 0x150   : > { %v2575_v61 = vpack.c.bf16 %v1346_v55, %v1345_v53  ;;  %v2735_v62 = vpack.c.bf16 %v1410_v56, %v1409_v54 }
 0x151   : > { %v2570_v63 = vpack.c.bf16 %v1344_v59, %v1343_v57  ;;  %v2730_v0 = vpack.c.bf16 %v1408_v60, %v1407_v58  ;;  %v2984_v1 = vpop.f32.mrb[44].mxu0  ;;  %v3048_v2 = vpop.f32.mrb[44].mxu1 }
 0x152   : > { %2807 = vst [vmem:[%s3314_s13 + $0xa8] sm:$0xff] %v2575_v61   ;;  %2839 = vst [vmem:[%s3314_s13 + $0x1a8] sm:$0xff] %v2735_v62   ;;  %v977_v3 = vadd.f32 %v2984_v1, %v3299_v8  ;;  %v1233_v4 = vadd.f32 %v3048_v2, %v3299_v8  ;;  %v968_v5 = vpop.f32.mrb[45].mxu0  ;;  %v1224_v6 = vpop.f32.mrb[45].mxu1 }
 0x153   : > { %2806 = vst [vmem:[%s3314_s13 + $0xa0] sm:$0xff] %v2570_v63   ;;  %2838 = vst [vmem:[%s3314_s13 + $0x1a0] sm:$0xff] %v2730_v0   ;;  %v969_v7 = vadd.f32 %v3299_v8, %v968_v5  ;;  %v1225_v9 = vadd.f32 %v3299_v8, %v1224_v6  ;;  %v2985_v10 = vpop.f32.mrb[46].mxu0  ;;  %v3049_v11 = vpop.f32.mrb[46].mxu1 }
 0x154   : > { %v980_v12 = vadd.f32 %v2985_v10, %v3299_v8  ;;  %v1236_v13 = vadd.f32 %v3049_v11, %v3299_v8  ;;  %v971_v14 = vpop.f32.mrb[47].mxu0  ;;  %v1227_v15 = vpop.f32.mrb[47].mxu1  ;;  %v1349_v18 = vmax.f32 %v977_v3, 0.0  ;;  %v1413_v19 = vmax.f32 %v1233_v4, 0.0 }
 0x155   : > { %v972_v16 = vadd.f32 %v3299_v8, %v971_v14  ;;  %v1228_v17 = vadd.f32 %v3299_v8, %v1227_v15  ;;  %v1347_v22 = vmax.f32 %v969_v7, 0.0  ;;  %v1411_v23 = vmax.f32 %v1225_v9, 0.0 }
 0x156   : > { %v1350_v20 = vmax.f32 %v980_v12, 0.0  ;;  %v1414_v21 = vmax.f32 %v1236_v13, 0.0 }
 0x157   : > { %v1348_v24 = vmax.f32 %v972_v16, 0.0  ;;  %v1412_v25 = vmax.f32 %v1228_v17, 0.0 }
 0x158   : > { %v2585_v26 = vpack.c.bf16 %v1350_v20, %v1349_v18  ;;  %v2745_v27 = vpack.c.bf16 %v1414_v21, %v1413_v19 }
 0x159   : > { %v2580_v28 = vpack.c.bf16 %v1348_v24, %v1347_v22  ;;  %v2740_v29 = vpack.c.bf16 %v1412_v25, %v1411_v23  ;;  %v2988_v30 = vpop.f32.mrb[48].mxu0  ;;  %v3052_v31 = vpop.f32.mrb[48].mxu1 }
 0x15a   : > { %2809 = vst [vmem:[%s3314_s13 + $0xb8] sm:$0xff] %v2585_v26   ;;  %2841 = vst [vmem:[%s3314_s13 + $0x1b8] sm:$0xff] %v2745_v27   ;;  %v993_v32 = vadd.f32 %v2988_v30, %v3299_v8  ;;  %v1249_v33 = vadd.f32 %v3052_v31, %v3299_v8  ;;  %v984_v34 = vpop.f32.mrb[49].mxu0  ;;  %v1240_v35 = vpop.f32.mrb[49].mxu1 }
 0x15b   : > { %2808 = vst [vmem:[%s3314_s13 + $0xb0] sm:$0xff] %v2580_v28   ;;  %2840 = vst [vmem:[%s3314_s13 + $0x1b0] sm:$0xff] %v2740_v29   ;;  %v985_v36 = vadd.f32 %v3299_v8, %v984_v34  ;;  %v1241_v37 = vadd.f32 %v3299_v8, %v1240_v35  ;;  %v2989_v38 = vpop.f32.mrb[50].mxu0  ;;  %v3053_v39 = vpop.f32.mrb[50].mxu1 }
 0x15c   : > { %v996_v40 = vadd.f32 %v2989_v38, %v3299_v8  ;;  %v1252_v41 = vadd.f32 %v3053_v39, %v3299_v8  ;;  %v987_v42 = vpop.f32.mrb[51].mxu0  ;;  %v1243_v43 = vpop.f32.mrb[51].mxu1  ;;  %v1353_v46 = vmax.f32 %v993_v32, 0.0  ;;  %v1417_v47 = vmax.f32 %v1249_v33, 0.0 }
 0x15d   : > { %v988_v44 = vadd.f32 %v3299_v8, %v987_v42  ;;  %v1244_v45 = vadd.f32 %v3299_v8, %v1243_v43  ;;  %v1351_v50 = vmax.f32 %v985_v36, 0.0  ;;  %v1415_v51 = vmax.f32 %v1241_v37, 0.0 }
 0x15e   : > { %v1354_v48 = vmax.f32 %v996_v40, 0.0  ;;  %v1418_v49 = vmax.f32 %v1252_v41, 0.0 }
 0x15f   : > { %v1352_v52 = vmax.f32 %v988_v44, 0.0  ;;  %v1416_v53 = vmax.f32 %v1244_v45, 0.0 }
 0x160   : > { %v2595_v54 = vpack.c.bf16 %v1354_v48, %v1353_v46  ;;  %v2755_v55 = vpack.c.bf16 %v1418_v49, %v1417_v47 }
 0x161   : > { %v2590_v56 = vpack.c.bf16 %v1352_v52, %v1351_v50  ;;  %v2750_v57 = vpack.c.bf16 %v1416_v53, %v1415_v51  ;;  %v2992_v58 = vpop.f32.mrb[52].mxu0  ;;  %v3056_v59 = vpop.f32.mrb[52].mxu1 }
 0x162   : > { %2811 = vst [vmem:[%s3314_s13 + $0xc8] sm:$0xff] %v2595_v54   ;;  %2843 = vst [vmem:[%s3314_s13 + $0x1c8] sm:$0xff] %v2755_v55   ;;  %v1009_v60 = vadd.f32 %v2992_v58, %v3299_v8  ;;  %v1265_v61 = vadd.f32 %v3056_v59, %v3299_v8  ;;  %v1000_v62 = vpop.f32.mrb[53].mxu0  ;;  %v1256_v63 = vpop.f32.mrb[53].mxu1 }
 0x163   : > { %2810 = vst [vmem:[%s3314_s13 + $0xc0] sm:$0xff] %v2590_v56   ;;  %2842 = vst [vmem:[%s3314_s13 + $0x1c0] sm:$0xff] %v2750_v57   ;;  %v1001_v0 = vadd.f32 %v3299_v8, %v1000_v62  ;;  %v1257_v1 = vadd.f32 %v3299_v8, %v1256_v63  ;;  %v2993_v2 = vpop.f32.mrb[54].mxu0  ;;  %v3057_v3 = vpop.f32.mrb[54].mxu1 }
 0x164   : > { %v1012_v4 = vadd.f32 %v2993_v2, %v3299_v8  ;;  %v1268_v5 = vadd.f32 %v3057_v3, %v3299_v8  ;;  %v1003_v6 = vpop.f32.mrb[55].mxu0  ;;  %v1259_v7 = vpop.f32.mrb[55].mxu1  ;;  %v1357_v11 = vmax.f32 %v1009_v60, 0.0  ;;  %v1421_v12 = vmax.f32 %v1265_v61, 0.0 }
 0x165   : > { %v1004_v9 = vadd.f32 %v3299_v8, %v1003_v6  ;;  %v1260_v10 = vadd.f32 %v3299_v8, %v1259_v7  ;;  %v1355_v15 = vmax.f32 %v1001_v0, 0.0  ;;  %v1419_v16 = vmax.f32 %v1257_v1, 0.0 }
 0x166   : > { %v1358_v13 = vmax.f32 %v1012_v4, 0.0  ;;  %v1422_v14 = vmax.f32 %v1268_v5, 0.0 }
 0x167   : > { %v1356_v17 = vmax.f32 %v1004_v9, 0.0  ;;  %v1420_v18 = vmax.f32 %v1260_v10, 0.0 }
 0x168   : > { %v2605_v19 = vpack.c.bf16 %v1358_v13, %v1357_v11  ;;  %v2765_v20 = vpack.c.bf16 %v1422_v14, %v1421_v12 }
 0x169   : > { %v2600_v21 = vpack.c.bf16 %v1356_v17, %v1355_v15  ;;  %v2760_v22 = vpack.c.bf16 %v1420_v18, %v1419_v16  ;;  %v2996_v23 = vpop.f32.mrb[56].mxu0  ;;  %v3060_v24 = vpop.f32.mrb[56].mxu1 }
 0x16a   : > { %2813 = vst [vmem:[%s3314_s13 + $0xd8] sm:$0xff] %v2605_v19   ;;  %2845 = vst [vmem:[%s3314_s13 + $0x1d8] sm:$0xff] %v2765_v20   ;;  %v1025_v25 = vadd.f32 %v2996_v23, %v3299_v8  ;;  %v1281_v26 = vadd.f32 %v3060_v24, %v3299_v8  ;;  %v1016_v27 = vpop.f32.mrb[57].mxu0  ;;  %v1272_v28 = vpop.f32.mrb[57].mxu1 }
 0x16b   : > { %2812 = vst [vmem:[%s3314_s13 + $0xd0] sm:$0xff] %v2600_v21   ;;  %2844 = vst [vmem:[%s3314_s13 + $0x1d0] sm:$0xff] %v2760_v22   ;;  %v1017_v29 = vadd.f32 %v3299_v8, %v1016_v27  ;;  %v1273_v30 = vadd.f32 %v3299_v8, %v1272_v28  ;;  %v2997_v31 = vpop.f32.mrb[58].mxu0  ;;  %v3061_v32 = vpop.f32.mrb[58].mxu1 }
 0x16c   : > { %v1028_v33 = vadd.f32 %v2997_v31, %v3299_v8  ;;  %v1284_v34 = vadd.f32 %v3061_v32, %v3299_v8  ;;  %v1019_v35 = vpop.f32.mrb[59].mxu0  ;;  %v1275_v36 = vpop.f32.mrb[59].mxu1  ;;  %v1361_v39 = vmax.f32 %v1025_v25, 0.0  ;;  %v1425_v40 = vmax.f32 %v1281_v26, 0.0 }
 0x16d   : > { %v1020_v37 = vadd.f32 %v3299_v8, %v1019_v35  ;;  %v1276_v38 = vadd.f32 %v3299_v8, %v1275_v36  ;;  %v1359_v43 = vmax.f32 %v1017_v29, 0.0  ;;  %v1423_v44 = vmax.f32 %v1273_v30, 0.0 }
 0x16e   : > { %v1362_v41 = vmax.f32 %v1028_v33, 0.0  ;;  %v1426_v42 = vmax.f32 %v1284_v34, 0.0 }
 0x16f   : > { %v1360_v45 = vmax.f32 %v1020_v37, 0.0  ;;  %v1424_v46 = vmax.f32 %v1276_v38, 0.0 }
 0x170   : > { %v2615_v47 = vpack.c.bf16 %v1362_v41, %v1361_v39  ;;  %v2775_v48 = vpack.c.bf16 %v1426_v42, %v1425_v40 }
 0x171   : > { %v2610_v49 = vpack.c.bf16 %v1360_v45, %v1359_v43  ;;  %v2770_v50 = vpack.c.bf16 %v1424_v46, %v1423_v44  ;;  %v3000_v51 = vpop.f32.mrb[60].mxu0  ;;  %v3064_v52 = vpop.f32.mrb[60].mxu1 }
 0x172   : > { %2815 = vst [vmem:[%s3314_s13 + $0xe8] sm:$0xff] %v2615_v47   ;;  %2847 = vst [vmem:[%s3314_s13 + $0x1e8] sm:$0xff] %v2775_v48   ;;  %v1041_v53 = vadd.f32 %v3000_v51, %v3299_v8  ;;  %v1297_v54 = vadd.f32 %v3064_v52, %v3299_v8  ;;  %v1032_v55 = vpop.f32.mrb[61].mxu0  ;;  %v1288_v56 = vpop.f32.mrb[61].mxu1 }
 0x173   : > { %2814 = vst [vmem:[%s3314_s13 + $0xe0] sm:$0xff] %v2610_v49   ;;  %2846 = vst [vmem:[%s3314_s13 + $0x1e0] sm:$0xff] %v2770_v50   ;;  %v1033_v57 = vadd.f32 %v3299_v8, %v1032_v55  ;;  %v1289_v58 = vadd.f32 %v3299_v8, %v1288_v56  ;;  %v3001_v59 = vpop.f32.mrb[62].mxu0  ;;  %v3065_v60 = vpop.f32.mrb[62].mxu1 }
 0x174   : > { %v1044_v61 = vadd.f32 %v3001_v59, %v3299_v8  ;;  %v1300_v62 = vadd.f32 %v3065_v60, %v3299_v8  ;;  %v1035_v63 = vpop.f32.mrb[63].mxu0  ;;  %v1291_v0 = vpop.f32.mrb[63].mxu1  ;;  %v1365_v3 = vmax.f32 %v1041_v53, 0.0  ;;  %v1429_v4 = vmax.f32 %v1297_v54, 0.0 }
 0x175   : > { %v1036_v1 = vadd.f32 %v3299_v8, %v1035_v63  ;;  %v1292_v2 = vadd.f32 %v3299_v8, %v1291_v0  ;;  %v1363_v7 = vmax.f32 %v1033_v57, 0.0  ;;  %v1427_v9 = vmax.f32 %v1289_v58, 0.0 }
 0x176   : > { %v1366_v5 = vmax.f32 %v1044_v61, 0.0  ;;  %v1430_v6 = vmax.f32 %v1300_v62, 0.0 }
 0x177   : > { %v1364_v10 = vmax.f32 %v1036_v1, 0.0  ;;  %v1428_v11 = vmax.f32 %v1292_v2, 0.0 }
 0x178   : > { %v2625_v12 = vpack.c.bf16 %v1366_v5, %v1365_v3  ;;  %v2785_v13 = vpack.c.bf16 %v1430_v6, %v1429_v4 }
 0x179   : > { %v2620_v14 = vpack.c.bf16 %v1364_v10, %v1363_v7  ;;  %v2780_v15 = vpack.c.bf16 %v1428_v11, %v1427_v9 }
 0x17a   : > { %2817 = vst [vmem:[%s3314_s13 + $0xf8] sm:$0xff] %v2625_v12   ;;  %2849 = vst [vmem:[%s3314_s13 + $0x1f8] sm:$0xff] %v2785_v13  }
 0x17b   : > { %2816 = vst [vmem:[%s3314_s13 + $0xf0] sm:$0xff] %v2620_v14   ;;  %2848 = vst [vmem:[%s3314_s13 + $0x1f0] sm:$0xff] %v2780_v15  }
 0x17c PF: > { %s13_s12 = sadd.s32 1, %s3168_s12  }
 0x17d   : > { %p10_p4 = scmp.ge.s32.totalorder %s13_s12, 4  }
 0x17f   :  { %12 = sbr.rel (!%p10_p4) target bundleno = 1 (0x1), region = 62 }

// kernel: _lambda_.6
= control target key start
LH: loop header
LB: loop body
LE: loop exit
PB: predicated region body
PF: predicated region fallthrough
CT: control target
= control target key end

     0   :  { %v2846_v0 = vmov 0   ;;  %s3543_s1 = inlined_call_operand.vmem [shape: bf16[512,128], index: 1, kind: input, shape index: {}]   ;;  %s3544_s0 = inlined_call_operand.vmem [shape: bf16[512,512], index: 0, kind: input, shape index: {}]   ;;  %s3545_s2 = inlined_call_operand.vmem [shape: f32[1,128], index: 2, kind: input, shape index: {}]   ;;  %s3546_s3 = inlined_call_operand.vmem [shape: bf16[512,128], index: 3, kind: output, shape index: {}]  }
   0x1   :  { %1046 = vmatprep.subr.bf16.mxu1 %v2846_v0  ;;  %1335 = vmatprep.subr.bf16.mxu0 %v2846_v0  ;;  %v2621_v1 = vld [vmem:[%s3543_s1] sm:$0xff]   ;;  %v2623_v3 = vld [vmem:[%s3543_s1 + $0x8] sm:$0xff]   ;;  %v2625_v5 = vld [vmem:[%s3543_s1 + $0x10] sm:$0xff]  }
   0x2   :  { %v2622_v2 = vld [vmem:[%s3543_s1 + $0x80] sm:$0xff]   ;;  %1047 = vmatpush1.bf16.msra.mxu1 %v2621_v1  ;;  %v2624_v4 = vld [vmem:[%s3543_s1 + $0x88] sm:$0xff]   ;;  %v2626_v6 = vld [vmem:[%s3543_s1 + $0x90] sm:$0xff]  }
   0x3   :  { %1336 = vmatpush1.bf16.msra.mxu0 %v2622_v2  ;;  %1048 = vmatprep.subr.bf16.mxu1 %v2846_v0  ;;  %v2627_v7 = vld [vmem:[%s3543_s1 + $0x18] sm:$0xff]   ;;  %v2629_v9 = vld [vmem:[%s3543_s1 + $0x20] sm:$0xff]   ;;  %v2631_v11 = vld [vmem:[%s3543_s1 + $0x28] sm:$0xff]  }
   0x4   :  { %1337 = vmatprep.subr.bf16.mxu0 %v2846_v0  ;;  %v2628_v8 = vld [vmem:[%s3543_s1 + $0x98] sm:$0xff]   ;;  %v2630_v10 = vld [vmem:[%s3543_s1 + $0xa0] sm:$0xff]   ;;  %v2632_v12 = vld [vmem:[%s3543_s1 + $0xa8] sm:$0xff]  }
   0x5   :  { %v2633_v13 = vld [vmem:[%s3543_s1 + $0x30] sm:$0xff]   ;;  %v2635_v15 = vld [vmem:[%s3543_s1 + $0x38] sm:$0xff]   ;;  %v2637_v17 = vld [vmem:[%s3543_s1 + $0x40] sm:$0xff]  }
   0x6   :  { %1049 = vmatpush1.bf16.msra.mxu1 %v2623_v3  ;;  %v2634_v14 = vld [vmem:[%s3543_s1 + $0xb0] sm:$0xff]   ;;  %v2636_v16 = vld [vmem:[%s3543_s1 + $0xb8] sm:$0xff]   ;;  %v2638_v18 = vld [vmem:[%s3543_s1 + $0xc0] sm:$0xff]  }
   0x7   :  { %1338 = vmatpush1.bf16.msra.mxu0 %v2624_v4  ;;  %1050 = vmatprep.subr.bf16.mxu1 %v2846_v0  ;;  %v2655_v19 = vld [vmem:[%s3544_s0 + $0x4] ss:$16 sps:$4 sm:$0xff]   ;;  %v2639_v20 = vld [vmem:[%s3543_s1 + $0x48] sm:$0xff]   ;;  %v2643_v25 = vld [vmem:[%s3543_s1 + $0x58] sm:$0xff]  }
   0x8   :  { %1339 = vmatprep.subr.bf16.mxu0 %v2846_v0  ;;  %v2658_v21 = vld [vmem:[%s3544_s0 + $0xc] ss:$16 sps:$4 sm:$0xff]   ;;  %1078 = vmatprep.mubr.bf16.mxu1 %v2655_v19  ;;  %v2641_v23 = vld [vmem:[%s3543_s1 + $0x50] sm:$0xff]   ;;  %v2645_v27 = vld [vmem:[%s3543_s1 + $0x60] sm:$0xff]  }
   0x9   :  { %v2640_v22 = vld [vmem:[%s3543_s1 + $0xc8] sm:$0xff]   ;;  %1367 = vmatprep.mubr.bf16.mxu0 %v2658_v21  ;;  %v2642_v24 = vld [vmem:[%s3543_s1 + $0xd0] sm:$0xff]   ;;  %v2644_v26 = vld [vmem:[%s3543_s1 + $0xd8] sm:$0xff]  }
   0xa   :  { %1051 = vmatpush1.bf16.msra.mxu1 %v2625_v5  ;;  %v2646_v28 = vld [vmem:[%s3543_s1 + $0xe0] sm:$0xff]   ;;  %v2647_v29 = vld [vmem:[%s3543_s1 + $0x68] sm:$0xff]   ;;  %v2649_v31 = vld [vmem:[%s3543_s1 + $0x70] sm:$0xff]  }
   0xb   :  { %1340 = vmatpush1.bf16.msra.mxu0 %v2626_v6  ;;  %1052 = vmatprep.subr.bf16.mxu1 %v2846_v0  ;;  %v2648_v30 = vld [vmem:[%s3543_s1 + $0xe8] sm:$0xff]   ;;  %v2650_v32 = vld [vmem:[%s3543_s1 + $0xf0] sm:$0xff]   ;;  %v2651_v33 = vld [vmem:[%s3543_s1 + $0x78] sm:$0xff]  }
   0xc   :  { %1341 = vmatprep.subr.bf16.mxu0 %v2846_v0  ;;  %v2652_v34 = vld [vmem:[%s3543_s1 + $0xf8] sm:$0xff]   ;;  %v2653_v35 = vld [vmem:[%s3544_s0] ss:$16 sps:$4 sm:$0xff]   ;;  %v2659_v37 = vld [vmem:[%s3544_s0 + $0x24] ss:$16 sps:$4 sm:$0xff]  }
   0xd   :  { %v2656_v36 = vld [vmem:[%s3544_s0 + $0x8] ss:$16 sps:$4 sm:$0xff]   ;;  %v2661_v38 = vld [vmem:[%s3544_s0 + $0x2c] ss:$16 sps:$4 sm:$0xff]   ;;  %v2663_v39 = vld [vmem:[%s3544_s0 + $0x20] ss:$16 sps:$4 sm:$0xff]  }
   0xe   :  { %1053 = vmatpush1.bf16.msra.mxu1 %v2627_v7  ;;  %v2664_v40 = vld [vmem:[%s3544_s0 + $0x28] ss:$16 sps:$4 sm:$0xff]   ;;  %v2665_v41 = vld [vmem:[%s3544_s0 + $0x44] ss:$16 sps:$4 sm:$0xff]   ;;  %v2667_v42 = vld [vmem:[%s3544_s0 + $0x4c] ss:$16 sps:$4 sm:$0xff]  }
   0xf   :  { %1342 = vmatpush1.bf16.msra.mxu0 %v2628_v8  ;;  %1054 = vmatprep.subr.bf16.mxu1 %v2846_v0  ;;  %v2669_v43 = vld [vmem:[%s3544_s0 + $0x40] ss:$16 sps:$4 sm:$0xff]   ;;  %v2670_v44 = vld [vmem:[%s3544_s0 + $0x48] ss:$16 sps:$4 sm:$0xff]   ;;  %v2671_v45 = vld [vmem:[%s3544_s0 + $0x64] ss:$16 sps:$4 sm:$0xff]  }
  0x10   :  { %1343 = vmatprep.subr.bf16.mxu0 %v2846_v0  ;;  %v2673_v46 = vld [vmem:[%s3544_s0 + $0x6c] ss:$16 sps:$4 sm:$0xff]   ;;  %v2675_v47 = vld [vmem:[%s3544_s0 + $0x60] ss:$16 sps:$4 sm:$0xff]   ;;  %v2676_v48 = vld [vmem:[%s3544_s0 + $0x68] ss:$16 sps:$4 sm:$0xff]  }
  0x11   :  { %v2677_v49 = vld [vmem:[%s3544_s0 + $0x84] ss:$16 sps:$4 sm:$0xff]   ;;  %v2679_v50 = vld [vmem:[%s3544_s0 + $0x8c] ss:$16 sps:$4 sm:$0xff]   ;;  %v2681_v51 = vld [vmem:[%s3544_s0 + $0x80] ss:$16 sps:$4 sm:$0xff]  }
  0x12   :  { %1055 = vmatpush1.bf16.msra.mxu1 %v2629_v9  ;;  %v2682_v52 = vld [vmem:[%s3544_s0 + $0x88] ss:$16 sps:$4 sm:$0xff]   ;;  %v2683_v53 = vld [vmem:[%s3544_s0 + $0xa4] ss:$16 sps:$4 sm:$0xff]   ;;  %v2685_v54 = vld [vmem:[%s3544_s0 + $0xac] ss:$16 sps:$4 sm:$0xff]  }
  0x13   :  { %1344 = vmatpush1.bf16.msra.mxu0 %v2630_v10  ;;  %1056 = vmatprep.subr.bf16.mxu1 %v2846_v0  ;;  %v2687_v55 = vld [vmem:[%s3544_s0 + $0xa0] ss:$16 sps:$4 sm:$0xff]   ;;  %v2688_v56 = vld [vmem:[%s3544_s0 + $0xa8] ss:$16 sps:$4 sm:$0xff]   ;;  %v2689_v57 = vld [vmem:[%s3544_s0 + $0xc4] ss:$16 sps:$4 sm:$0xff]  }
  0x14   :  { %1345 = vmatprep.subr.bf16.mxu0 %v2846_v0  ;;  %v2691_v58 = vld [vmem:[%s3544_s0 + $0xcc] ss:$16 sps:$4 sm:$0xff]   ;;  %v2693_v59 = vld [vmem:[%s3544_s0 + $0xc0] ss:$16 sps:$4 sm:$0xff]   ;;  %v2694_v60 = vld [vmem:[%s3544_s0 + $0xc8] ss:$16 sps:$4 sm:$0xff]  }
  0x15   :  { %v2695_v61 = vld [vmem:[%s3544_s0 + $0xe4] ss:$16 sps:$4 sm:$0xff]   ;;  %v2697_v62 = vld [vmem:[%s3544_s0 + $0xec] ss:$16 sps:$4 sm:$0xff]   ;;  %v2699_v63 = vld [vmem:[%s3544_s0 + $0xe0] ss:$16 sps:$4 sm:$0xff]  }
  0x16   :  { %1057 = vmatpush1.bf16.msra.mxu1 %v2631_v11  ;;  %v2701_v1 = vld [vmem:[%s3544_s0 + $0x104] ss:$16 sps:$4 sm:$0xff]   ;;  %v2703_v2 = vld [vmem:[%s3544_s0 + $0x10c] ss:$16 sps:$4 sm:$0xff]   ;;  %v2705_v3 = vld [vmem:[%s3544_s0 + $0x100] ss:$16 sps:$4 sm:$0xff]  }
  0x17   :  { %1346 = vmatpush1.bf16.msra.mxu0 %v2632_v12  ;;  %1058 = vmatprep.subr.bf16.mxu1 %v2846_v0  ;;  %v2706_v4 = vld [vmem:[%s3544_s0 + $0x108] ss:$16 sps:$4 sm:$0xff]   ;;  %v2707_v5 = vld [vmem:[%s3544_s0 + $0x124] ss:$16 sps:$4 sm:$0xff]   ;;  %v2709_v6 = vld [vmem:[%s3544_s0 + $0x12c] ss:$16 sps:$4 sm:$0xff]  }
  0x18   :  { %1347 = vmatprep.subr.bf16.mxu0 %v2846_v0  ;;  %v2711_v7 = vld [vmem:[%s3544_s0 + $0x120] ss:$16 sps:$4 sm:$0xff]   ;;  %v2712_v8 = vld [vmem:[%s3544_s0 + $0x128] ss:$16 sps:$4 sm:$0xff]   ;;  %v2713_v9 = vld [vmem:[%s3544_s0 + $0x144] ss:$16 sps:$4 sm:$0xff]  }
  0x19   :  { %v2715_v10 = vld [vmem:[%s3544_s0 + $0x14c] ss:$16 sps:$4 sm:$0xff]   ;;  %v2717_v11 = vld [vmem:[%s3544_s0 + $0x140] ss:$16 sps:$4 sm:$0xff]   ;;  %v2718_v12 = vld [vmem:[%s3544_s0 + $0x148] ss:$16 sps:$4 sm:$0xff]  }
  0x1a   :  { %1059 = vmatpush1.bf16.msra.mxu1 %v2633_v13  ;;  %v2719_v13 = vld [vmem:[%s3544_s0 + $0x164] ss:$16 sps:$4 sm:$0xff]   ;;  %v2729_v19 = vld [vmem:[%s3544_s0 + $0x180] ss:$16 sps:$4 sm:$0xff]  }
  0x1b   :  { %1348 = vmatpush1.bf16.msra.mxu0 %v2634_v14  ;;  %1060 = vmatprep.subr.bf16.mxu1 %v2846_v0  ;;  %v2721_v14 = vld [vmem:[%s3544_s0 + $0x16c] ss:$16 sps:$4 sm:$0xff]   ;;  %v2731_v21 = vld [vmem:[%s3544_s0 + $0x1a4] ss:$16 sps:$4 sm:$0xff]  }
  0x1c   :  { %1349 = vmatprep.subr.bf16.mxu0 %v2846_v0 }
  0x1e   :  { %1061 = vmatpush1.bf16.msra.mxu1 %v2635_v15  ;;  %v2723_v15 = vld [vmem:[%s3544_s0 + $0x160] ss:$16 sps:$4 sm:$0xff]  }
  0x1f   :  { %1350 = vmatpush1.bf16.msra.mxu0 %v2636_v16  ;;  %1062 = vmatprep.subr.bf16.mxu1 %v2846_v0  ;;  %v2724_v16 = vld [vmem:[%s3544_s0 + $0x168] ss:$16 sps:$4 sm:$0xff]  }
  0x20   :  { %1351 = vmatprep.subr.bf16.mxu0 %v2846_v0 }
  0x22   :  { %1063 = vmatpush1.bf16.msra.mxu1 %v2637_v17  ;;  %v2725_v17 = vld [vmem:[%s3544_s0 + $0x184] ss:$16 sps:$4 sm:$0xff]  }
  0x23   :  { %1352 = vmatpush1.bf16.msra.mxu0 %v2638_v18  ;;  %1064 = vmatprep.subr.bf16.mxu1 %v2846_v0  ;;  %v2727_v18 = vld [vmem:[%s3544_s0 + $0x18c] ss:$16 sps:$4 sm:$0xff]  }
  0x24   :  { %1353 = vmatprep.subr.bf16.mxu0 %v2846_v0 }
  0x26   :  { %1065 = vmatpush1.bf16.msra.mxu1 %v2639_v20  ;;  %v2730_v20 = vld [vmem:[%s3544_s0 + $0x188] ss:$16 sps:$4 sm:$0xff]  }
  0x27   :  { %1354 = vmatpush1.bf16.msra.mxu0 %v2640_v22  ;;  %1066 = vmatprep.subr.bf16.mxu1 %v2846_v0  ;;  %v2733_v22 = vld [vmem:[%s3544_s0 + $0x1ac] ss:$16 sps:$4 sm:$0xff]  }
  0x28   :  { %1355 = vmatprep.subr.bf16.mxu0 %v2846_v0 }
  0x2a   :  { %1067 = vmatpush1.bf16.msra.mxu1 %v2641_v23  ;;  %v2735_v23 = vld [vmem:[%s3544_s0 + $0x1a0] ss:$16 sps:$4 sm:$0xff]  }
  0x2b   :  { %1356 = vmatpush1.bf16.msra.mxu0 %v2642_v24  ;;  %1068 = vmatprep.subr.bf16.mxu1 %v2846_v0  ;;  %v2736_v24 = vld [vmem:[%s3544_s0 + $0x1a8] ss:$16 sps:$4 sm:$0xff]  }
  0x2c   :  { %1357 = vmatprep.subr.bf16.mxu0 %v2846_v0 }
  0x2e   :  { %1069 = vmatpush1.bf16.msra.mxu1 %v2643_v25  ;;  %v2737_v25 = vld [vmem:[%s3544_s0 + $0x1c4] ss:$16 sps:$4 sm:$0xff]  }
  0x2f   :  { %1358 = vmatpush1.bf16.msra.mxu0 %v2644_v26  ;;  %1070 = vmatprep.subr.bf16.mxu1 %v2846_v0  ;;  %v2739_v26 = vld [vmem:[%s3544_s0 + $0x1cc] ss:$16 sps:$4 sm:$0xff]  }
  0x30   :  { %1359 = vmatprep.subr.bf16.mxu0 %v2846_v0 }
  0x32   :  { %1071 = vmatpush1.bf16.msra.mxu1 %v2645_v27  ;;  %v2741_v27 = vld [vmem:[%s3544_s0 + $0x1c0] ss:$16 sps:$4 sm:$0xff]  }
  0x33   :  { %1360 = vmatpush1.bf16.msra.mxu0 %v2646_v28  ;;  %1072 = vmatprep.subr.bf16.mxu1 %v2846_v0  ;;  %v2742_v28 = vld [vmem:[%s3544_s0 + $0x1c8] ss:$16 sps:$4 sm:$0xff]  }
  0x34   :  { %1361 = vmatprep.subr.bf16.mxu0 %v2846_v0 }
  0x36   :  { %1073 = vmatpush1.bf16.msra.mxu1 %v2647_v29  ;;  %v2743_v29 = vld [vmem:[%s3544_s0 + $0x1e4] ss:$16 sps:$4 sm:$0xff]  }
  0x37   :  { %1362 = vmatpush1.bf16.msra.mxu0 %v2648_v30  ;;  %1074 = vmatprep.subr.bf16.mxu1 %v2846_v0  ;;  %v2745_v30 = vld [vmem:[%s3544_s0 + $0x1ec] ss:$16 sps:$4 sm:$0xff]  }
  0x38   :  { %1363 = vmatprep.subr.bf16.mxu0 %v2846_v0 }
  0x3a   :  { %1075 = vmatpush1.bf16.msra.mxu1 %v2649_v31  ;;  %v2747_v31 = vld [vmem:[%s3544_s0 + $0x1e0] ss:$16 sps:$4 sm:$0xff]  }
  0x3b   :  { %1364 = vmatpush1.bf16.msra.mxu0 %v2650_v32  ;;  %1076 = vmatprep.subr.bf16.mxu1 %v2846_v0  ;;  %v2748_v32 = vld [vmem:[%s3544_s0 + $0x1e8] ss:$16 sps:$4 sm:$0xff]  }
  0x3c   :  { %1365 = vmatprep.subr.bf16.mxu0 %v2846_v0  ;;  %v2700_v0 = vld [vmem:[%s3544_s0 + $0xe8] ss:$16 sps:$4 sm:$0xff]  }
  0x3e   :  { %1077 = vmatpush1.bf16.msra.mxu1 %v2651_v33  ;;  %v2749_v33 = vld [vmem:[%s3544_s0 + $0x204] ss:$16 sps:$4 sm:$0xff]  }
  0x3f   :  { %1366 = vmatpush1.bf16.msra.mxu0 %v2652_v34  ;;  %v2751_v34 = vld [vmem:[%s3544_s0 + $0x20c] ss:$16 sps:$4 sm:$0xff]  }
  0x41   :  { %1079 = vmatmul.mubr.bf16.vlgmr.msra.gmra.mrb[0].mxu1 %v2653_v35  ;;  %v2753_v35 = vld [vmem:[%s3544_s0 + $0x200] ss:$16 sps:$4 sm:$0xff]  }
  0x42   :  { %1368 = vmatmul.mubr.bf16.vlgmr.msra.gmra.mrb[0].mxu0 %v2656_v36  ;;  %1086 = vmatprep.mubr.bf16.mxu1 %v2659_v37  ;;  %v2754_v36 = vld [vmem:[%s3544_s0 + $0x208] ss:$16 sps:$4 sm:$0xff]   ;;  %v2755_v37 = vld [vmem:[%s3544_s0 + $0x224] ss:$16 sps:$4 sm:$0xff]  }
  0x43   :  { %1375 = vmatprep.mubr.bf16.mxu0 %v2661_v38  ;;  %v2757_v38 = vld [vmem:[%s3544_s0 + $0x22c] ss:$16 sps:$4 sm:$0xff]  }
  0x49   :  { %1087 = vmatmul.mubr.bf16.gmra.mrb[4].mxu1 %v2663_v39  ;;  %v2759_v39 = vld [vmem:[%s3544_s0 + $0x220] ss:$16 sps:$4 sm:$0xff]  }
  0x4a   :  { %1376 = vmatmul.mubr.bf16.gmra.mrb[4].mxu0 %v2664_v40  ;;  %1094 = vmatprep.mubr.bf16.mxu1 %v2665_v41  ;;  %v2760_v40 = vld [vmem:[%s3544_s0 + $0x228] ss:$16 sps:$4 sm:$0xff]   ;;  %v2761_v41 = vld [vmem:[%s3544_s0 + $0x244] ss:$16 sps:$4 sm:$0xff]  }
  0x4b   :  { %1383 = vmatprep.mubr.bf16.mxu0 %v2667_v42  ;;  %v2763_v42 = vld [vmem:[%s3544_s0 + $0x24c] ss:$16 sps:$4 sm:$0xff]  }
  0x51   :  { %1095 = vmatmul.mubr.bf16.gmra.mrb[8].mxu1 %v2669_v43  ;;  %v2765_v43 = vld [vmem:[%s3544_s0 + $0x240] ss:$16 sps:$4 sm:$0xff]  }
  0x52   :  { %1384 = vmatmul.mubr.bf16.gmra.mrb[8].mxu0 %v2670_v44  ;;  %1102 = vmatprep.mubr.bf16.mxu1 %v2671_v45  ;;  %v2766_v44 = vld [vmem:[%s3544_s0 + $0x248] ss:$16 sps:$4 sm:$0xff]   ;;  %v2767_v45 = vld [vmem:[%s3544_s0 + $0x264] ss:$16 sps:$4 sm:$0xff]  }
  0x53   :  { %1391 = vmatprep.mubr.bf16.mxu0 %v2673_v46  ;;  %v2769_v46 = vld [vmem:[%s3544_s0 + $0x26c] ss:$16 sps:$4 sm:$0xff]  }
  0x59   :  { %1103 = vmatmul.mubr.bf16.gmra.mrb[12].mxu1 %v2675_v47  ;;  %v2771_v47 = vld [vmem:[%s3544_s0 + $0x260] ss:$16 sps:$4 sm:$0xff]  }
  0x5a   :  { %1392 = vmatmul.mubr.bf16.gmra.mrb[12].mxu0 %v2676_v48  ;;  %1110 = vmatprep.mubr.bf16.mxu1 %v2677_v49  ;;  %v2772_v48 = vld [vmem:[%s3544_s0 + $0x268] ss:$16 sps:$4 sm:$0xff]   ;;  %v2773_v49 = vld [vmem:[%s3544_s0 + $0x284] ss:$16 sps:$4 sm:$0xff]  }
  0x5b   :  { %1399 = vmatprep.mubr.bf16.mxu0 %v2679_v50  ;;  %v2775_v50 = vld [vmem:[%s3544_s0 + $0x28c] ss:$16 sps:$4 sm:$0xff]  }
  0x61   :  { %1111 = vmatmul.mubr.bf16.gmra.mrb[16].mxu1 %v2681_v51  ;;  %v2777_v51 = vld [vmem:[%s3544_s0 + $0x280] ss:$16 sps:$4 sm:$0xff]  }
  0x62   :  { %1400 = vmatmul.mubr.bf16.gmra.mrb[16].mxu0 %v2682_v52  ;;  %1118 = vmatprep.mubr.bf16.mxu1 %v2683_v53  ;;  %v2778_v52 = vld [vmem:[%s3544_s0 + $0x288] ss:$16 sps:$4 sm:$0xff]   ;;  %v2779_v53 = vld [vmem:[%s3544_s0 + $0x2a4] ss:$16 sps:$4 sm:$0xff]  }
  0x63   :  { %1407 = vmatprep.mubr.bf16.mxu0 %v2685_v54  ;;  %v2781_v54 = vld [vmem:[%s3544_s0 + $0x2ac] ss:$16 sps:$4 sm:$0xff]  }
  0x69   :  { %1119 = vmatmul.mubr.bf16.gmra.mrb[20].mxu1 %v2687_v55  ;;  %v2783_v55 = vld [vmem:[%s3544_s0 + $0x2a0] ss:$16 sps:$4 sm:$0xff]  }
  0x6a   :  { %1408 = vmatmul.mubr.bf16.gmra.mrb[20].mxu0 %v2688_v56  ;;  %1126 = vmatprep.mubr.bf16.mxu1 %v2689_v57  ;;  %v2784_v56 = vld [vmem:[%s3544_s0 + $0x2a8] ss:$16 sps:$4 sm:$0xff]   ;;  %v2785_v57 = vld [vmem:[%s3544_s0 + $0x2c4] ss:$16 sps:$4 sm:$0xff]  }
  0x6b   :  { %1415 = vmatprep.mubr.bf16.mxu0 %v2691_v58  ;;  %v2787_v58 = vld [vmem:[%s3544_s0 + $0x2cc] ss:$16 sps:$4 sm:$0xff]  }
  0x71   :  { %1127 = vmatmul.mubr.bf16.gmra.mrb[24].mxu1 %v2693_v59  ;;  %v2789_v59 = vld [vmem:[%s3544_s0 + $0x2c0] ss:$16 sps:$4 sm:$0xff]  }
  0x72   :  { %1416 = vmatmul.mubr.bf16.gmra.mrb[24].mxu0 %v2694_v60  ;;  %1134 = vmatprep.mubr.bf16.mxu1 %v2695_v61  ;;  %v2790_v60 = vld [vmem:[%s3544_s0 + $0x2c8] ss:$16 sps:$4 sm:$0xff]   ;;  %v2791_v61 = vld [vmem:[%s3544_s0 + $0x2e4] ss:$16 sps:$4 sm:$0xff]  }
  0x73   :  { %1423 = vmatprep.mubr.bf16.mxu0 %v2697_v62  ;;  %v2793_v62 = vld [vmem:[%s3544_s0 + $0x2ec] ss:$16 sps:$4 sm:$0xff]  }
  0x79   :  { %1135 = vmatmul.mubr.bf16.gmra.mrb[28].mxu1 %v2699_v63  ;;  %v2795_v63 = vld [vmem:[%s3544_s0 + $0x2e0] ss:$16 sps:$4 sm:$0xff]  }
  0x7a   :  { %1424 = vmatmul.mubr.bf16.gmra.mrb[28].mxu0 %v2700_v0  ;;  %1142 = vmatprep.mubr.bf16.mxu1 %v2701_v1  ;;  %v2796_v0 = vld [vmem:[%s3544_s0 + $0x2e8] ss:$16 sps:$4 sm:$0xff]   ;;  %v2797_v1 = vld [vmem:[%s3544_s0 + $0x304] ss:$16 sps:$4 sm:$0xff]  }
  0x7b   :  { %1431 = vmatprep.mubr.bf16.mxu0 %v2703_v2  ;;  %v2799_v2 = vld [vmem:[%s3544_s0 + $0x30c] ss:$16 sps:$4 sm:$0xff]  }
  0x81   :  { %1143 = vmatmul.mubr.bf16.gmra.mrb[32].mxu1 %v2705_v3  ;;  %v2801_v3 = vld [vmem:[%s3544_s0 + $0x300] ss:$16 sps:$4 sm:$0xff]  }
  0x82   :  { %1432 = vmatmul.mubr.bf16.gmra.mrb[32].mxu0 %v2706_v4  ;;  %1150 = vmatprep.mubr.bf16.mxu1 %v2707_v5  ;;  %v2802_v4 = vld [vmem:[%s3544_s0 + $0x308] ss:$16 sps:$4 sm:$0xff]   ;;  %v2803_v5 = vld [vmem:[%s3544_s0 + $0x324] ss:$16 sps:$4 sm:$0xff]  }
  0x83   :  { %1439 = vmatprep.mubr.bf16.mxu0 %v2709_v6  ;;  %v2805_v6 = vld [vmem:[%s3544_s0 + $0x32c] ss:$16 sps:$4 sm:$0xff]  }
  0x89   :  { %1151 = vmatmul.mubr.bf16.gmra.mrb[36].mxu1 %v2711_v7  ;;  %v2807_v7 = vld [vmem:[%s3544_s0 + $0x320] ss:$16 sps:$4 sm:$0xff]  }
  0x8a   :  { %1440 = vmatmul.mubr.bf16.gmra.mrb[36].mxu0 %v2712_v8  ;;  %1158 = vmatprep.mubr.bf16.mxu1 %v2713_v9  ;;  %v2808_v8 = vld [vmem:[%s3544_s0 + $0x328] ss:$16 sps:$4 sm:$0xff]   ;;  %v2809_v9 = vld [vmem:[%s3544_s0 + $0x344] ss:$16 sps:$4 sm:$0xff]  }
  0x8b   :  { %1447 = vmatprep.mubr.bf16.mxu0 %v2715_v10  ;;  %v2811_v10 = vld [vmem:[%s3544_s0 + $0x34c] ss:$16 sps:$4 sm:$0xff]  }
  0x91   :  { %1159 = vmatmul.mubr.bf16.gmra.mrb[40].mxu1 %v2717_v11  ;;  %v2813_v11 = vld [vmem:[%s3544_s0 + $0x340] ss:$16 sps:$4 sm:$0xff]  }
  0x92   :  { %1448 = vmatmul.mubr.bf16.gmra.mrb[40].mxu0 %v2718_v12  ;;  %1166 = vmatprep.mubr.bf16.mxu1 %v2719_v13  ;;  %v2814_v12 = vld [vmem:[%s3544_s0 + $0x348] ss:$16 sps:$4 sm:$0xff]   ;;  %v2815_v13 = vld [vmem:[%s3544_s0 + $0x364] ss:$16 sps:$4 sm:$0xff]  }
  0x93   :  { %1455 = vmatprep.mubr.bf16.mxu0 %v2721_v14  ;;  %v2817_v14 = vld [vmem:[%s3544_s0 + $0x36c] ss:$16 sps:$4 sm:$0xff]  }
  0x99   :  { %1167 = vmatmul.mubr.bf16.gmra.mrb[44].mxu1 %v2723_v15  ;;  %v3328_v15 = vld [vmem:[%s3545_s2] ss:$0 sm:$0xff] }
  0x9a   :  { %1456 = vmatmul.mubr.bf16.gmra.mrb[44].mxu0 %v2724_v16  ;;  %1174 = vmatprep.mubr.bf16.mxu1 %v2725_v17 }
  0x9b   :  { %1463 = vmatprep.mubr.bf16.mxu0 %v2727_v18 }
  0xa1   :  { %1175 = vmatmul.mubr.bf16.gmra.mrb[48].mxu1 %v2729_v19 }
  0xa2   :  { %1464 = vmatmul.mubr.bf16.gmra.mrb[48].mxu0 %v2730_v20  ;;  %1182 = vmatprep.mubr.bf16.mxu1 %v2731_v21  ;;  %v2819_v20 = vld [vmem:[%s3544_s0 + $0x360] ss:$16 sps:$4 sm:$0xff]  }
  0xa3   :  { %1471 = vmatprep.mubr.bf16.mxu0 %v2733_v22 }
  0xa9   :  { %1183 = vmatmul.mubr.bf16.gmra.mrb[52].mxu1 %v2735_v23  ;;  %v2820_v23 = vld [vmem:[%s3544_s0 + $0x368] ss:$16 sps:$4 sm:$0xff]  }
  0xaa   :  { %1472 = vmatmul.mubr.bf16.gmra.mrb[52].mxu0 %v2736_v24  ;;  %1190 = vmatprep.mubr.bf16.mxu1 %v2737_v25  ;;  %v2821_v24 = vld [vmem:[%s3544_s0 + $0x384] ss:$16 sps:$4 sm:$0xff]  }
  0xab   :  { %1479 = vmatprep.mubr.bf16.mxu0 %v2739_v26 }
  0xb1   :  { %1191 = vmatmul.mubr.bf16.gmra.mrb[56].mxu1 %v2741_v27 }
  0xb2   :  { %1480 = vmatmul.mubr.bf16.gmra.mrb[56].mxu0 %v2742_v28  ;;  %1198 = vmatprep.mubr.bf16.mxu1 %v2743_v29  ;;  %v2823_v29 = vld [vmem:[%s3544_s0 + $0x38c] ss:$16 sps:$4 sm:$0xff]  }
  0xb3   :  { %1487 = vmatprep.mubr.bf16.mxu0 %v2745_v30 }
  0xb9   :  { %1199 = vmatmul.mubr.bf16.gmra.mrb[60].mxu1 %v2747_v31 }
  0xba   :  { %1488 = vmatmul.mubr.bf16.gmra.mrb[60].mxu0 %v2748_v32  ;;  %1206 = vmatprep.mubr.bf16.mxu1 %v2749_v33 }
  0xbb   :  { %1495 = vmatprep.mubr.bf16.mxu0 %v2751_v34 }
  0xc1   :  { %1207 = vmatmul.mubr.bf16.gmra.mrb[64].mxu1 %v2753_v35 }
  0xc2   :  { %1496 = vmatmul.mubr.bf16.gmra.mrb[64].mxu0 %v2754_v36  ;;  %1214 = vmatprep.mubr.bf16.mxu1 %v2755_v37 }
  0xc3   :  { %1503 = vmatprep.mubr.bf16.mxu0 %v2757_v38 }
  0xc9   :  { %1215 = vmatmul.mubr.bf16.gmra.mrb[68].mxu1 %v2759_v39  ;;  %v2825_v39 = vld [vmem:[%s3544_s0 + $0x380] ss:$16 sps:$4 sm:$0xff]  }
  0xca   :  { %1504 = vmatmul.mubr.bf16.gmra.mrb[68].mxu0 %v2760_v40  ;;  %1222 = vmatprep.mubr.bf16.mxu1 %v2761_v41 }
  0xcb   :  { %1511 = vmatprep.mubr.bf16.mxu0 %v2763_v42  ;;  %v2826_v42 = vld [vmem:[%s3544_s0 + $0x388] ss:$16 sps:$4 sm:$0xff]  }
  0xd1   :  { %1223 = vmatmul.mubr.bf16.gmra.mrb[72].mxu1 %v2765_v43  ;;  %v2827_v43 = vld [vmem:[%s3544_s0 + $0x3a4] ss:$16 sps:$4 sm:$0xff]  }
  0xd2   :  { %1512 = vmatmul.mubr.bf16.gmra.mrb[72].mxu0 %v2766_v44  ;;  %1230 = vmatprep.mubr.bf16.mxu1 %v2767_v45 }
  0xd3   :  { %1519 = vmatprep.mubr.bf16.mxu0 %v2769_v46 }
  0xd9   :  { %1231 = vmatmul.mubr.bf16.gmra.mrb[76].mxu1 %v2771_v47 }
  0xda   :  { %1520 = vmatmul.mubr.bf16.gmra.mrb[76].mxu0 %v2772_v48  ;;  %1238 = vmatprep.mubr.bf16.mxu1 %v2773_v49  ;;  %v2829_v48 = vld [vmem:[%s3544_s0 + $0x3ac] ss:$16 sps:$4 sm:$0xff]  }
  0xdb   :  { %1527 = vmatprep.mubr.bf16.mxu0 %v2775_v50 }
  0xe1   :  { %1239 = vmatmul.mubr.bf16.gmra.mrb[80].mxu1 %v2777_v51 }
  0xe2   :  { %1528 = vmatmul.mubr.bf16.gmra.mrb[80].mxu0 %v2778_v52  ;;  %1246 = vmatprep.mubr.bf16.mxu1 %v2779_v53 }
  0xe3   :  { %1535 = vmatprep.mubr.bf16.mxu0 %v2781_v54 }
  0xe9   :  { %1247 = vmatmul.mubr.bf16.gmra.mrb[84].mxu1 %v2783_v55 }
  0xea   :  { %1536 = vmatmul.mubr.bf16.gmra.mrb[84].mxu0 %v2784_v56  ;;  %1254 = vmatprep.mubr.bf16.mxu1 %v2785_v57 }
  0xeb   :  { %1543 = vmatprep.mubr.bf16.mxu0 %v2787_v58  ;;  %v2831_v58 = vld [vmem:[%s3544_s0 + $0x3a0] ss:$16 sps:$4 sm:$0xff]  }
  0xf1   :  { %1255 = vmatmul.mubr.bf16.gmra.mrb[88].mxu1 %v2789_v59 }
  0xf2   :  { %1544 = vmatmul.mubr.bf16.gmra.mrb[88].mxu0 %v2790_v60  ;;  %1262 = vmatprep.mubr.bf16.mxu1 %v2791_v61  ;;  %v2832_v61 = vld [vmem:[%s3544_s0 + $0x3a8] ss:$16 sps:$4 sm:$0xff]  }
  0xf3   :  { %1551 = vmatprep.mubr.bf16.mxu0 %v2793_v62  ;;  %v2833_v62 = vld [vmem:[%s3544_s0 + $0x3c4] ss:$16 sps:$4 sm:$0xff]  }
  0xf9   :  { %1263 = vmatmul.mubr.bf16.gmra.mrb[92].mxu1 %v2795_v63 }
  0xfa   :  { %1552 = vmatmul.mubr.bf16.gmra.mrb[92].mxu0 %v2796_v0  ;;  %1270 = vmatprep.mubr.bf16.mxu1 %v2797_v1 }
  0xfb   :  { %1559 = vmatprep.mubr.bf16.mxu0 %v2799_v2 }
 0x101   :  { %1271 = vmatmul.mubr.bf16.gmra.mrb[96].mxu1 %v2801_v3  ;;  %v2835_v3 = vld [vmem:[%s3544_s0 + $0x3cc] ss:$16 sps:$4 sm:$0xff]  }
 0x102   :  { %1560 = vmatmul.mubr.bf16.gmra.mrb[96].mxu0 %v2802_v4  ;;  %1278 = vmatprep.mubr.bf16.mxu1 %v2803_v5 }
 0x103   :  { %1567 = vmatprep.mubr.bf16.mxu0 %v2805_v6 }
 0x109   :  { %1279 = vmatmul.mubr.bf16.gmra.mrb[100].mxu1 %v2807_v7 }
 0x10a   :  { %1568 = vmatmul.mubr.bf16.gmra.mrb[100].mxu0 %v2808_v8  ;;  %1286 = vmatprep.mubr.bf16.mxu1 %v2809_v9 }
 0x10b   :  { %1575 = vmatprep.mubr.bf16.mxu0 %v2811_v10 }
 0x111   :  { %1287 = vmatmul.mubr.bf16.gmra.mrb[104].mxu1 %v2813_v11 }
 0x112   :  { %1576 = vmatmul.mubr.bf16.gmra.mrb[104].mxu0 %v2814_v12  ;;  %1294 = vmatprep.mubr.bf16.mxu1 %v2815_v13  ;;  %v2837_v13 = vld [vmem:[%s3544_s0 + $0x3c0] ss:$16 sps:$4 sm:$0xff]  }
 0x113   :  { %1583 = vmatprep.mubr.bf16.mxu0 %v2817_v14 }
 0x114   :  { %v1080_v16 = vpop.f32.mrb[0].mxu1 }
 0x115   :  { %v1081_v17 = vadd.f32 %v3328_v15, %v1080_v16  ;;  %v1369_v18 = vpop.f32.mrb[0].mxu0  ;;  %v1082_v19 = vpop.f32.mrb[1].mxu1 }
 0x116   :  { %v1371_v21 = vpop.f32.mrb[1].mxu0  ;;  %v1083_v22 = vpop.f32.mrb[2].mxu1 }
 0x117   :  { %v1370_v25 = vadd.f32 %v1369_v18, %v1081_v17  ;;  %v1084_v26 = vadd.f32 %v3328_v15, %v1083_v22  ;;  %v1372_v27 = vpop.f32.mrb[2].mxu0  ;;  %v1085_v28 = vpop.f32.mrb[3].mxu1  ;;  %v2838_v17 = vld [vmem:[%s3544_s0 + $0x3c8] ss:$16 sps:$4 sm:$0xff]   ;;  %v2839_v18 = vld [vmem:[%s3544_s0 + $0x3e4] ss:$16 sps:$4 sm:$0xff]  }
 0x118   :  { %v1374_v30 = vpop.f32.mrb[3].mxu0 }
 0x119   :  { %v1373_v31 = vadd.f32 %v1372_v27, %v1084_v26  ;;  %1295 = vmatmul.mubr.bf16.gmra.mrb[108].mxu1 %v2819_v20  ;;  %v1624_v32 = vmax.f32 %v1370_v25, 0.0 }
 0x11a   :  { %1584 = vmatmul.mubr.bf16.gmra.mrb[108].mxu0 %v2820_v23  ;;  %1302 = vmatprep.mubr.bf16.mxu1 %v2821_v24  ;;  %v2841_v23 = vld [vmem:[%s3544_s0 + $0x3ec] ss:$16 sps:$4 sm:$0xff]  }
 0x11b   :  { %v1625_v33 = vmax.f32 %v1373_v31, 0.0  ;;  %1591 = vmatprep.mubr.bf16.mxu0 %v2823_v29 }
 0x11c   :  { %v1088_v34 = vpop.f32.mrb[4].mxu1 }
 0x11d   :  { %v2304_v35 = vpack.c.bf16 %v1625_v33, %v1624_v32  ;;  %v1089_v36 = vadd.f32 %v3328_v15, %v1088_v34  ;;  %v1377_v37 = vpop.f32.mrb[4].mxu0  ;;  %v1090_v38 = vpop.f32.mrb[5].mxu1  ;;  %v2843_v33 = vld [vmem:[%s3544_s0 + $0x3e0] ss:$16 sps:$4 sm:$0xff]  }
 0x11e   :  { %v1379_v40 = vpop.f32.mrb[5].mxu0  ;;  %v1091_v41 = vpop.f32.mrb[6].mxu1 }
 0x11f   :  { %2305 = vst [vmem:[%s3546_s3] sm:$0xff] %v2304_v35   ;;  %v1378_v44 = vadd.f32 %v1377_v37, %v1089_v36  ;;  %v1092_v45 = vadd.f32 %v3328_v15, %v1091_v41  ;;  %v1380_v46 = vpop.f32.mrb[6].mxu0  ;;  %v1093_v47 = vpop.f32.mrb[7].mxu1  ;;  %v2844_v36 = vld [vmem:[%s3544_s0 + $0x3e8] ss:$16 sps:$4 sm:$0xff]  }
 0x120   :  { %v1382_v49 = vpop.f32.mrb[7].mxu0 }
 0x121   :  { %v1381_v50 = vadd.f32 %v1380_v46, %v1092_v45  ;;  %1303 = vmatmul.mubr.bf16.gmra.mrb[112].mxu1 %v2825_v39  ;;  %v1626_v51 = vmax.f32 %v1378_v44, 0.0 }
 0x122   :  { %1592 = vmatmul.mubr.bf16.gmra.mrb[112].mxu0 %v2826_v42  ;;  %1310 = vmatprep.mubr.bf16.mxu1 %v2827_v43 }
 0x123   :  { %v1627_v52 = vmax.f32 %v1381_v50, 0.0  ;;  %1599 = vmatprep.mubr.bf16.mxu0 %v2829_v48 }
 0x124   :  { %v1096_v53 = vpop.f32.mrb[8].mxu1 }
 0x125   :  { %v2309_v54 = vpack.c.bf16 %v1627_v52, %v1626_v51  ;;  %v1097_v55 = vadd.f32 %v3328_v15, %v1096_v53  ;;  %v1385_v56 = vpop.f32.mrb[8].mxu0  ;;  %v1098_v57 = vpop.f32.mrb[9].mxu1 }
 0x126   :  { %v1387_v59 = vpop.f32.mrb[9].mxu0  ;;  %v1099_v60 = vpop.f32.mrb[10].mxu1 }
 0x127   :  { %2461 = vst [vmem:[%s3546_s3 + $0x8] sm:$0xff] %v2309_v54   ;;  %v1386_v63 = vadd.f32 %v1385_v56, %v1097_v55  ;;  %v1100_v0 = vadd.f32 %v3328_v15, %v1099_v60  ;;  %v1388_v1 = vpop.f32.mrb[10].mxu0  ;;  %v1101_v2 = vpop.f32.mrb[11].mxu1 }
 0x128   :  { %v1390_v4 = vpop.f32.mrb[11].mxu0 }
 0x129   :  { %v1389_v5 = vadd.f32 %v1388_v1, %v1100_v0  ;;  %1311 = vmatmul.mubr.bf16.gmra.mrb[116].mxu1 %v2831_v58  ;;  %v1628_v6 = vmax.f32 %v1386_v63, 0.0 }
 0x12a   :  { %1600 = vmatmul.mubr.bf16.gmra.mrb[116].mxu0 %v2832_v61  ;;  %1318 = vmatprep.mubr.bf16.mxu1 %v2833_v62 }
 0x12b   :  { %v1629_v7 = vmax.f32 %v1389_v5, 0.0  ;;  %1607 = vmatprep.mubr.bf16.mxu0 %v2835_v3 }
 0x12c   :  { %v1104_v8 = vpop.f32.mrb[12].mxu1 }
 0x12d   :  { %v2314_v9 = vpack.c.bf16 %v1629_v7, %v1628_v6  ;;  %v1105_v10 = vadd.f32 %v3328_v15, %v1104_v8  ;;  %v1393_v11 = vpop.f32.mrb[12].mxu0  ;;  %v1106_v12 = vpop.f32.mrb[13].mxu1 }
 0x12e   :  { %v1395_v14 = vpop.f32.mrb[13].mxu0  ;;  %v1107_v16 = vpop.f32.mrb[14].mxu1 }
 0x12f   :  { %2462 = vst [vmem:[%s3546_s3 + $0x10] sm:$0xff] %v2314_v9   ;;  %v1394_v19 = vadd.f32 %v1393_v11, %v1105_v10  ;;  %v1108_v20 = vadd.f32 %v3328_v15, %v1107_v16  ;;  %v1396_v21 = vpop.f32.mrb[14].mxu0  ;;  %v1109_v22 = vpop.f32.mrb[15].mxu1 }
 0x130   :  { %v1398_v24 = vpop.f32.mrb[15].mxu0 }
 0x131   :  { %v1397_v25 = vadd.f32 %v1396_v21, %v1108_v20  ;;  %1319 = vmatmul.mubr.bf16.gmra.mrb[120].mxu1 %v2837_v13  ;;  %v1630_v26 = vmax.f32 %v1394_v19, 0.0 }
 0x132   :  { %1608 = vmatmul.mubr.bf16.gmra.mrb[120].mxu0 %v2838_v17  ;;  %1326 = vmatprep.mubr.bf16.mxu1 %v2839_v18 }
 0x133   :  { %v1631_v27 = vmax.f32 %v1397_v25, 0.0  ;;  %1615 = vmatprep.mubr.bf16.mxu0 %v2841_v23 }
 0x134   :  { %v1112_v28 = vpop.f32.mrb[16].mxu1 }
 0x135   :  { %v2319_v29 = vpack.c.bf16 %v1631_v27, %v1630_v26  ;;  %v1113_v30 = vadd.f32 %v3328_v15, %v1112_v28  ;;  %v1401_v31 = vpop.f32.mrb[16].mxu0  ;;  %v1114_v32 = vpop.f32.mrb[17].mxu1 }
 0x136   :  { %v1403_v34 = vpop.f32.mrb[17].mxu0  ;;  %v1115_v35 = vpop.f32.mrb[18].mxu1 }
 0x137   :  { %2463 = vst [vmem:[%s3546_s3 + $0x18] sm:$0xff] %v2319_v29   ;;  %v1402_v37 = vadd.f32 %v1401_v31, %v1113_v30  ;;  %v1116_v38 = vadd.f32 %v3328_v15, %v1115_v35  ;;  %v1404_v39 = vpop.f32.mrb[18].mxu0  ;;  %v1117_v40 = vpop.f32.mrb[19].mxu1 }
 0x138   :  { %v1406_v41 = vpop.f32.mrb[19].mxu0 }
 0x139   :  { %v1405_v42 = vadd.f32 %v1404_v39, %v1116_v38  ;;  %1327 = vmatmul.mubr.bf16.gmra.mrb[124].mxu1 %v2843_v33  ;;  %v1632_v43 = vmax.f32 %v1402_v37, 0.0 }
 0x13a   :  { %1616 = vmatmul.mubr.bf16.gmra.mrb[124].mxu0 %v2844_v36 }
 0x13b   :  { %v1633_v44 = vmax.f32 %v1405_v42, 0.0 }
 0x13c   :  { %v1120_v45 = vpop.f32.mrb[20].mxu1 }
 0x13d   :  { %v2324_v46 = vpack.c.bf16 %v1633_v44, %v1632_v43  ;;  %v1121_v47 = vadd.f32 %v3328_v15, %v1120_v45  ;;  %v1409_v48 = vpop.f32.mrb[20].mxu0  ;;  %v1122_v49 = vpop.f32.mrb[21].mxu1 }
 0x13e   :  { %v1411_v50 = vpop.f32.mrb[21].mxu0  ;;  %v1123_v51 = vpop.f32.mrb[22].mxu1 }
 0x13f   :  { %2464 = vst [vmem:[%s3546_s3 + $0x20] sm:$0xff] %v2324_v46   ;;  %v1410_v52 = vadd.f32 %v1409_v48, %v1121_v47  ;;  %v1124_v53 = vadd.f32 %v3328_v15, %v1123_v51  ;;  %v1412_v54 = vpop.f32.mrb[22].mxu0  ;;  %v1125_v55 = vpop.f32.mrb[23].mxu1 }
 0x140   :  { %v1414_v56 = vpop.f32.mrb[23].mxu0 }
 0x141   :  { %v1413_v57 = vadd.f32 %v1412_v54, %v1124_v53  ;;  %v1634_v58 = vmax.f32 %v1410_v52, 0.0 }
 0x143   :  { %v1635_v59 = vmax.f32 %v1413_v57, 0.0 }
 0x144   :  { %v1128_v60 = vpop.f32.mrb[24].mxu1 }
 0x145   :  { %v2329_v61 = vpack.c.bf16 %v1635_v59, %v1634_v58  ;;  %v1129_v62 = vadd.f32 %v3328_v15, %v1128_v60  ;;  %v1417_v63 = vpop.f32.mrb[24].mxu0  ;;  %v1130_v0 = vpop.f32.mrb[25].mxu1 }
 0x146   :  { %v1419_v1 = vpop.f32.mrb[25].mxu0  ;;  %v1131_v2 = vpop.f32.mrb[26].mxu1 }
 0x147   :  { %2465 = vst [vmem:[%s3546_s3 + $0x28] sm:$0xff] %v2329_v61   ;;  %v1418_v3 = vadd.f32 %v1417_v63, %v1129_v62  ;;  %v1132_v4 = vadd.f32 %v3328_v15, %v1131_v2  ;;  %v1420_v5 = vpop.f32.mrb[26].mxu0  ;;  %v1133_v6 = vpop.f32.mrb[27].mxu1 }
 0x148   :  { %v1422_v7 = vpop.f32.mrb[27].mxu0 }
 0x149   :  { %v1421_v8 = vadd.f32 %v1420_v5, %v1132_v4  ;;  %v1636_v9 = vmax.f32 %v1418_v3, 0.0 }
 0x14b   :  { %v1637_v10 = vmax.f32 %v1421_v8, 0.0 }
 0x14c   :  { %v1136_v11 = vpop.f32.mrb[28].mxu1 }
 0x14d   :  { %v2334_v12 = vpack.c.bf16 %v1637_v10, %v1636_v9  ;;  %v1137_v13 = vadd.f32 %v3328_v15, %v1136_v11  ;;  %v1425_v14 = vpop.f32.mrb[28].mxu0  ;;  %v1138_v16 = vpop.f32.mrb[29].mxu1 }
 0x14e   :  { %v1427_v17 = vpop.f32.mrb[29].mxu0  ;;  %v1139_v18 = vpop.f32.mrb[30].mxu1 }
 0x14f   :  { %2466 = vst [vmem:[%s3546_s3 + $0x30] sm:$0xff] %v2334_v12   ;;  %v1426_v19 = vadd.f32 %v1425_v14, %v1137_v13  ;;  %v1140_v20 = vadd.f32 %v3328_v15, %v1139_v18  ;;  %v1428_v21 = vpop.f32.mrb[30].mxu0  ;;  %v1141_v22 = vpop.f32.mrb[31].mxu1 }
 0x150   :  { %v1430_v23 = vpop.f32.mrb[31].mxu0 }
 0x151   :  { %v1429_v24 = vadd.f32 %v1428_v21, %v1140_v20  ;;  %v1638_v25 = vmax.f32 %v1426_v19, 0.0 }
 0x153   :  { %v1639_v26 = vmax.f32 %v1429_v24, 0.0 }
 0x154   :  { %v1144_v27 = vpop.f32.mrb[32].mxu1 }
 0x155   :  { %v2339_v28 = vpack.c.bf16 %v1639_v26, %v1638_v25  ;;  %v1145_v29 = vadd.f32 %v3328_v15, %v1144_v27  ;;  %v1433_v30 = vpop.f32.mrb[32].mxu0  ;;  %v1146_v31 = vpop.f32.mrb[33].mxu1 }
 0x156   :  { %v1435_v32 = vpop.f32.mrb[33].mxu0  ;;  %v1147_v33 = vpop.f32.mrb[34].mxu1 }
 0x157   :  { %2467 = vst [vmem:[%s3546_s3 + $0x38] sm:$0xff] %v2339_v28   ;;  %v1434_v34 = vadd.f32 %v1433_v30, %v1145_v29  ;;  %v1148_v35 = vadd.f32 %v3328_v15, %v1147_v33  ;;  %v1436_v36 = vpop.f32.mrb[34].mxu0  ;;  %v1149_v37 = vpop.f32.mrb[35].mxu1 }
 0x158   :  { %v1438_v38 = vpop.f32.mrb[35].mxu0 }
 0x159   :  { %v1437_v39 = vadd.f32 %v1436_v36, %v1148_v35  ;;  %v1640_v40 = vmax.f32 %v1434_v34, 0.0 }
 0x15b   :  { %v1641_v41 = vmax.f32 %v1437_v39, 0.0 }
 0x15c   :  { %v1152_v42 = vpop.f32.mrb[36].mxu1 }
 0x15d   :  { %v2344_v43 = vpack.c.bf16 %v1641_v41, %v1640_v40  ;;  %v1153_v44 = vadd.f32 %v3328_v15, %v1152_v42  ;;  %v1441_v45 = vpop.f32.mrb[36].mxu0  ;;  %v1154_v46 = vpop.f32.mrb[37].mxu1 }
 0x15e   :  { %v1443_v47 = vpop.f32.mrb[37].mxu0  ;;  %v1155_v48 = vpop.f32.mrb[38].mxu1 }
 0x15f   :  { %2468 = vst [vmem:[%s3546_s3 + $0x40] sm:$0xff] %v2344_v43   ;;  %v1442_v49 = vadd.f32 %v1441_v45, %v1153_v44  ;;  %v1156_v50 = vadd.f32 %v3328_v15, %v1155_v48  ;;  %v1444_v51 = vpop.f32.mrb[38].mxu0  ;;  %v1157_v52 = vpop.f32.mrb[39].mxu1 }
 0x160   :  { %v1446_v53 = vpop.f32.mrb[39].mxu0 }
 0x161   :  { %v1445_v54 = vadd.f32 %v1444_v51, %v1156_v50  ;;  %v1642_v55 = vmax.f32 %v1442_v49, 0.0 }
 0x163   :  { %v1643_v56 = vmax.f32 %v1445_v54, 0.0 }
 0x164   :  { %v1160_v57 = vpop.f32.mrb[40].mxu1 }
 0x165   :  { %v2349_v58 = vpack.c.bf16 %v1643_v56, %v1642_v55  ;;  %v1161_v59 = vadd.f32 %v3328_v15, %v1160_v57  ;;  %v1449_v60 = vpop.f32.mrb[40].mxu0  ;;  %v1162_v61 = vpop.f32.mrb[41].mxu1 }
 0x166   :  { %v1451_v62 = vpop.f32.mrb[41].mxu0  ;;  %v1163_v63 = vpop.f32.mrb[42].mxu1 }
 0x167   :  { %2469 = vst [vmem:[%s3546_s3 + $0x48] sm:$0xff] %v2349_v58   ;;  %v1450_v0 = vadd.f32 %v1449_v60, %v1161_v59  ;;  %v1164_v1 = vadd.f32 %v3328_v15, %v1163_v63  ;;  %v1452_v2 = vpop.f32.mrb[42].mxu0  ;;  %v1165_v3 = vpop.f32.mrb[43].mxu1 }
 0x168   :  { %v1454_v4 = vpop.f32.mrb[43].mxu0 }
 0x169   :  { %v1453_v5 = vadd.f32 %v1452_v2, %v1164_v1  ;;  %v1644_v6 = vmax.f32 %v1450_v0, 0.0 }
 0x16b   :  { %v1645_v7 = vmax.f32 %v1453_v5, 0.0 }
 0x16c   :  { %v1168_v8 = vpop.f32.mrb[44].mxu1 }
 0x16d   :  { %v2354_v9 = vpack.c.bf16 %v1645_v7, %v1644_v6  ;;  %v1169_v10 = vadd.f32 %v3328_v15, %v1168_v8  ;;  %v1457_v11 = vpop.f32.mrb[44].mxu0  ;;  %v1170_v12 = vpop.f32.mrb[45].mxu1 }
 0x16e   :  { %v1459_v13 = vpop.f32.mrb[45].mxu0  ;;  %v1171_v14 = vpop.f32.mrb[46].mxu1 }
 0x16f   :  { %2470 = vst [vmem:[%s3546_s3 + $0x50] sm:$0xff] %v2354_v9   ;;  %v1458_v16 = vadd.f32 %v1457_v11, %v1169_v10  ;;  %v1172_v17 = vadd.f32 %v3328_v15, %v1171_v14  ;;  %v1460_v18 = vpop.f32.mrb[46].mxu0  ;;  %v1173_v19 = vpop.f32.mrb[47].mxu1 }
 0x170   :  { %v1462_v20 = vpop.f32.mrb[47].mxu0 }
 0x171   :  { %v1461_v21 = vadd.f32 %v1460_v18, %v1172_v17  ;;  %v1646_v22 = vmax.f32 %v1458_v16, 0.0 }
 0x173   :  { %v1647_v23 = vmax.f32 %v1461_v21, 0.0 }
 0x174   :  { %v1176_v24 = vpop.f32.mrb[48].mxu1 }
 0x175   :  { %v2359_v25 = vpack.c.bf16 %v1647_v23, %v1646_v22  ;;  %v1177_v26 = vadd.f32 %v3328_v15, %v1176_v24  ;;  %v1465_v27 = vpop.f32.mrb[48].mxu0  ;;  %v1178_v28 = vpop.f32.mrb[49].mxu1 }
 0x176   :  { %v1467_v29 = vpop.f32.mrb[49].mxu0  ;;  %v1179_v30 = vpop.f32.mrb[50].mxu1 }
 0x177   :  { %2471 = vst [vmem:[%s3546_s3 + $0x58] sm:$0xff] %v2359_v25   ;;  %v1466_v31 = vadd.f32 %v1465_v27, %v1177_v26  ;;  %v1180_v32 = vadd.f32 %v3328_v15, %v1179_v30  ;;  %v1468_v33 = vpop.f32.mrb[50].mxu0  ;;  %v1181_v34 = vpop.f32.mrb[51].mxu1 }
 0x178   :  { %v1470_v35 = vpop.f32.mrb[51].mxu0 }
 0x179   :  { %v1469_v36 = vadd.f32 %v1468_v33, %v1180_v32  ;;  %v1648_v37 = vmax.f32 %v1466_v31, 0.0 }
 0x17b   :  { %v1649_v38 = vmax.f32 %v1469_v36, 0.0 }
 0x17c   :  { %v1184_v39 = vpop.f32.mrb[52].mxu1 }
 0x17d   :  { %v2364_v40 = vpack.c.bf16 %v1649_v38, %v1648_v37  ;;  %v1185_v41 = vadd.f32 %v3328_v15, %v1184_v39  ;;  %v1473_v42 = vpop.f32.mrb[52].mxu0  ;;  %v1186_v43 = vpop.f32.mrb[53].mxu1 }
 0x17e   :  { %v1475_v44 = vpop.f32.mrb[53].mxu0  ;;  %v1187_v45 = vpop.f32.mrb[54].mxu1 }
 0x17f   :  { %2472 = vst [vmem:[%s3546_s3 + $0x60] sm:$0xff] %v2364_v40   ;;  %v1474_v46 = vadd.f32 %v1473_v42, %v1185_v41  ;;  %v1188_v47 = vadd.f32 %v3328_v15, %v1187_v45  ;;  %v1476_v48 = vpop.f32.mrb[54].mxu0  ;;  %v1189_v49 = vpop.f32.mrb[55].mxu1 }
 0x180   :  { %v1478_v50 = vpop.f32.mrb[55].mxu0 }
 0x181   :  { %v1477_v51 = vadd.f32 %v1476_v48, %v1188_v47  ;;  %v1650_v52 = vmax.f32 %v1474_v46, 0.0 }
 0x183   :  { %v1651_v53 = vmax.f32 %v1477_v51, 0.0 }
 0x184   :  { %v1192_v54 = vpop.f32.mrb[56].mxu1 }
 0x185   :  { %v2369_v55 = vpack.c.bf16 %v1651_v53, %v1650_v52  ;;  %v1193_v56 = vadd.f32 %v3328_v15, %v1192_v54  ;;  %v1481_v57 = vpop.f32.mrb[56].mxu0  ;;  %v1194_v58 = vpop.f32.mrb[57].mxu1 }
 0x186   :  { %v1483_v59 = vpop.f32.mrb[57].mxu0  ;;  %v1195_v60 = vpop.f32.mrb[58].mxu1 }
 0x187   :  { %2473 = vst [vmem:[%s3546_s3 + $0x68] sm:$0xff] %v2369_v55   ;;  %v1482_v61 = vadd.f32 %v1481_v57, %v1193_v56  ;;  %v1196_v62 = vadd.f32 %v3328_v15, %v1195_v60  ;;  %v1484_v63 = vpop.f32.mrb[58].mxu0  ;;  %v1197_v0 = vpop.f32.mrb[59].mxu1 }
 0x188   :  { %v1486_v1 = vpop.f32.mrb[59].mxu0 }
 0x189   :  { %v1485_v2 = vadd.f32 %v1484_v63, %v1196_v62  ;;  %v1652_v3 = vmax.f32 %v1482_v61, 0.0 }
 0x18b   :  { %v1653_v4 = vmax.f32 %v1485_v2, 0.0 }
 0x18c   :  { %v1200_v5 = vpop.f32.mrb[60].mxu1 }
 0x18d   :  { %v2374_v6 = vpack.c.bf16 %v1653_v4, %v1652_v3  ;;  %v1201_v7 = vadd.f32 %v3328_v15, %v1200_v5  ;;  %v1489_v8 = vpop.f32.mrb[60].mxu0  ;;  %v1202_v9 = vpop.f32.mrb[61].mxu1 }
 0x18e   :  { %v1491_v10 = vpop.f32.mrb[61].mxu0  ;;  %v1203_v11 = vpop.f32.mrb[62].mxu1 }
 0x18f   :  { %2474 = vst [vmem:[%s3546_s3 + $0x70] sm:$0xff] %v2374_v6   ;;  %v1490_v12 = vadd.f32 %v1489_v8, %v1201_v7  ;;  %v1204_v13 = vadd.f32 %v3328_v15, %v1203_v11  ;;  %v1492_v14 = vpop.f32.mrb[62].mxu0  ;;  %v1205_v16 = vpop.f32.mrb[63].mxu1 }
 0x190   :  { %v1494_v17 = vpop.f32.mrb[63].mxu0 }
 0x191   :  { %v1493_v18 = vadd.f32 %v1492_v14, %v1204_v13  ;;  %v1654_v19 = vmax.f32 %v1490_v12, 0.0 }
 0x193   :  { %v1655_v20 = vmax.f32 %v1493_v18, 0.0 }
 0x194   :  { %v1208_v21 = vpop.f32.mrb[64].mxu1 }
 0x195   :  { %v2379_v22 = vpack.c.bf16 %v1655_v20, %v1654_v19  ;;  %v1209_v23 = vadd.f32 %v3328_v15, %v1208_v21  ;;  %v1497_v24 = vpop.f32.mrb[64].mxu0  ;;  %v1210_v25 = vpop.f32.mrb[65].mxu1 }
 0x196   :  { %v1499_v26 = vpop.f32.mrb[65].mxu0  ;;  %v1211_v27 = vpop.f32.mrb[66].mxu1 }
 0x197   :  { %2475 = vst [vmem:[%s3546_s3 + $0x78] sm:$0xff] %v2379_v22   ;;  %v1498_v28 = vadd.f32 %v1497_v24, %v1209_v23  ;;  %v1212_v29 = vadd.f32 %v3328_v15, %v1211_v27  ;;  %v1500_v30 = vpop.f32.mrb[66].mxu0  ;;  %v1213_v31 = vpop.f32.mrb[67].mxu1 }
 0x198   :  { %v1502_v32 = vpop.f32.mrb[67].mxu0 }
 0x199   :  { %v1501_v33 = vadd.f32 %v1500_v30, %v1212_v29  ;;  %v1656_v34 = vmax.f32 %v1498_v28, 0.0 }
 0x19b   :  { %v1657_v35 = vmax.f32 %v1501_v33, 0.0 }
 0x19c   :  { %v1216_v36 = vpop.f32.mrb[68].mxu1 }
 0x19d   :  { %v2384_v37 = vpack.c.bf16 %v1657_v35, %v1656_v34  ;;  %v1217_v38 = vadd.f32 %v3328_v15, %v1216_v36  ;;  %v1505_v39 = vpop.f32.mrb[68].mxu0  ;;  %v1218_v40 = vpop.f32.mrb[69].mxu1 }
 0x19e   :  { %v1507_v41 = vpop.f32.mrb[69].mxu0  ;;  %v1219_v42 = vpop.f32.mrb[70].mxu1 }
 0x19f   :  { %2476 = vst [vmem:[%s3546_s3 + $0x80] sm:$0xff] %v2384_v37   ;;  %v1506_v43 = vadd.f32 %v1505_v39, %v1217_v38  ;;  %v1220_v44 = vadd.f32 %v3328_v15, %v1219_v42  ;;  %v1508_v45 = vpop.f32.mrb[70].mxu0  ;;  %v1221_v46 = vpop.f32.mrb[71].mxu1 }
 0x1a0   :  { %v1510_v47 = vpop.f32.mrb[71].mxu0 }
 0x1a1   :  { %v1509_v48 = vadd.f32 %v1508_v45, %v1220_v44  ;;  %v1658_v49 = vmax.f32 %v1506_v43, 0.0 }
 0x1a3   :  { %v1659_v50 = vmax.f32 %v1509_v48, 0.0 }
 0x1a4   :  { %v1224_v51 = vpop.f32.mrb[72].mxu1 }
 0x1a5   :  { %v2389_v52 = vpack.c.bf16 %v1659_v50, %v1658_v49  ;;  %v1225_v53 = vadd.f32 %v3328_v15, %v1224_v51  ;;  %v1513_v54 = vpop.f32.mrb[72].mxu0  ;;  %v1226_v55 = vpop.f32.mrb[73].mxu1 }
 0x1a6   :  { %v1515_v56 = vpop.f32.mrb[73].mxu0  ;;  %v1227_v57 = vpop.f32.mrb[74].mxu1 }
 0x1a7   :  { %2477 = vst [vmem:[%s3546_s3 + $0x88] sm:$0xff] %v2389_v52   ;;  %v1514_v58 = vadd.f32 %v1513_v54, %v1225_v53  ;;  %v1228_v59 = vadd.f32 %v3328_v15, %v1227_v57  ;;  %v1516_v60 = vpop.f32.mrb[74].mxu0  ;;  %v1229_v61 = vpop.f32.mrb[75].mxu1 }
 0x1a8   :  { %v1518_v62 = vpop.f32.mrb[75].mxu0 }
 0x1a9   :  { %v1517_v63 = vadd.f32 %v1516_v60, %v1228_v59  ;;  %v1660_v0 = vmax.f32 %v1514_v58, 0.0 }
 0x1ab   :  { %v1661_v1 = vmax.f32 %v1517_v63, 0.0 }
 0x1ac   :  { %v1232_v2 = vpop.f32.mrb[76].mxu1 }
 0x1ad   :  { %v2394_v3 = vpack.c.bf16 %v1661_v1, %v1660_v0  ;;  %v1233_v4 = vadd.f32 %v3328_v15, %v1232_v2  ;;  %v1521_v5 = vpop.f32.mrb[76].mxu0  ;;  %v1234_v6 = vpop.f32.mrb[77].mxu1 }
 0x1ae   :  { %v1523_v7 = vpop.f32.mrb[77].mxu0  ;;  %v1235_v8 = vpop.f32.mrb[78].mxu1 }
 0x1af   :  { %2478 = vst [vmem:[%s3546_s3 + $0x90] sm:$0xff] %v2394_v3   ;;  %v1522_v9 = vadd.f32 %v1521_v5, %v1233_v4  ;;  %v1236_v10 = vadd.f32 %v3328_v15, %v1235_v8  ;;  %v1524_v11 = vpop.f32.mrb[78].mxu0  ;;  %v1237_v12 = vpop.f32.mrb[79].mxu1 }
 0x1b0   :  { %v1526_v13 = vpop.f32.mrb[79].mxu0 }
 0x1b1   :  { %v1525_v14 = vadd.f32 %v1524_v11, %v1236_v10  ;;  %v1662_v16 = vmax.f32 %v1522_v9, 0.0 }
 0x1b3   :  { %v1663_v17 = vmax.f32 %v1525_v14, 0.0 }
 0x1b4   :  { %v1240_v18 = vpop.f32.mrb[80].mxu1 }
 0x1b5   :  { %v2399_v19 = vpack.c.bf16 %v1663_v17, %v1662_v16  ;;  %v1241_v20 = vadd.f32 %v3328_v15, %v1240_v18  ;;  %v1529_v21 = vpop.f32.mrb[80].mxu0  ;;  %v1242_v22 = vpop.f32.mrb[81].mxu1 }
 0x1b6   :  { %v1531_v23 = vpop.f32.mrb[81].mxu0  ;;  %v1243_v24 = vpop.f32.mrb[82].mxu1 }
 0x1b7   :  { %2479 = vst [vmem:[%s3546_s3 + $0x98] sm:$0xff] %v2399_v19   ;;  %v1530_v25 = vadd.f32 %v1529_v21, %v1241_v20  ;;  %v1244_v26 = vadd.f32 %v3328_v15, %v1243_v24  ;;  %v1532_v27 = vpop.f32.mrb[82].mxu0  ;;  %v1245_v28 = vpop.f32.mrb[83].mxu1 }
 0x1b8   :  { %v1534_v29 = vpop.f32.mrb[83].mxu0 }
 0x1b9   :  { %v1533_v30 = vadd.f32 %v1532_v27, %v1244_v26  ;;  %v1664_v31 = vmax.f32 %v1530_v25, 0.0 }
 0x1bb   :  { %v1665_v32 = vmax.f32 %v1533_v30, 0.0 }
 0x1bc   :  { %v1248_v33 = vpop.f32.mrb[84].mxu1 }
 0x1bd   :  { %v2404_v34 = vpack.c.bf16 %v1665_v32, %v1664_v31  ;;  %v1249_v35 = vadd.f32 %v3328_v15, %v1248_v33  ;;  %v1537_v36 = vpop.f32.mrb[84].mxu0  ;;  %v1250_v37 = vpop.f32.mrb[85].mxu1 }
 0x1be   :  { %v1539_v38 = vpop.f32.mrb[85].mxu0  ;;  %v1251_v39 = vpop.f32.mrb[86].mxu1 }
 0x1bf   :  { %2480 = vst [vmem:[%s3546_s3 + $0xa0] sm:$0xff] %v2404_v34   ;;  %v1538_v40 = vadd.f32 %v1537_v36, %v1249_v35  ;;  %v1252_v41 = vadd.f32 %v3328_v15, %v1251_v39  ;;  %v1540_v42 = vpop.f32.mrb[86].mxu0  ;;  %v1253_v43 = vpop.f32.mrb[87].mxu1 }
 0x1c0   :  { %v1542_v44 = vpop.f32.mrb[87].mxu0 }
 0x1c1   :  { %v1541_v45 = vadd.f32 %v1540_v42, %v1252_v41  ;;  %v1666_v46 = vmax.f32 %v1538_v40, 0.0 }
 0x1c3   :  { %v1667_v47 = vmax.f32 %v1541_v45, 0.0 }
 0x1c4   :  { %v1256_v48 = vpop.f32.mrb[88].mxu1 }
 0x1c5   :  { %v2409_v49 = vpack.c.bf16 %v1667_v47, %v1666_v46  ;;  %v1257_v50 = vadd.f32 %v3328_v15, %v1256_v48  ;;  %v1545_v51 = vpop.f32.mrb[88].mxu0  ;;  %v1258_v52 = vpop.f32.mrb[89].mxu1 }
 0x1c6   :  { %v1547_v53 = vpop.f32.mrb[89].mxu0  ;;  %v1259_v54 = vpop.f32.mrb[90].mxu1 }
 0x1c7   :  { %2481 = vst [vmem:[%s3546_s3 + $0xa8] sm:$0xff] %v2409_v49   ;;  %v1546_v55 = vadd.f32 %v1545_v51, %v1257_v50  ;;  %v1260_v56 = vadd.f32 %v3328_v15, %v1259_v54  ;;  %v1548_v57 = vpop.f32.mrb[90].mxu0  ;;  %v1261_v58 = vpop.f32.mrb[91].mxu1 }
 0x1c8   :  { %v1550_v59 = vpop.f32.mrb[91].mxu0 }
 0x1c9   :  { %v1549_v60 = vadd.f32 %v1548_v57, %v1260_v56  ;;  %v1668_v61 = vmax.f32 %v1546_v55, 0.0 }
 0x1cb   :  { %v1669_v62 = vmax.f32 %v1549_v60, 0.0 }
 0x1cc   :  { %v1264_v63 = vpop.f32.mrb[92].mxu1 }
 0x1cd   :  { %v2414_v0 = vpack.c.bf16 %v1669_v62, %v1668_v61  ;;  %v1265_v1 = vadd.f32 %v3328_v15, %v1264_v63  ;;  %v1553_v2 = vpop.f32.mrb[92].mxu0  ;;  %v1266_v3 = vpop.f32.mrb[93].mxu1 }
 0x1ce   :  { %v1555_v4 = vpop.f32.mrb[93].mxu0  ;;  %v1267_v5 = vpop.f32.mrb[94].mxu1 }
 0x1cf   :  { %2482 = vst [vmem:[%s3546_s3 + $0xb0] sm:$0xff] %v2414_v0   ;;  %v1554_v6 = vadd.f32 %v1553_v2, %v1265_v1  ;;  %v1268_v7 = vadd.f32 %v3328_v15, %v1267_v5  ;;  %v1556_v8 = vpop.f32.mrb[94].mxu0  ;;  %v1269_v9 = vpop.f32.mrb[95].mxu1 }
 0x1d0   :  { %v1558_v10 = vpop.f32.mrb[95].mxu0 }
 0x1d1   :  { %v1557_v11 = vadd.f32 %v1556_v8, %v1268_v7  ;;  %v1670_v12 = vmax.f32 %v1554_v6, 0.0 }
 0x1d3   :  { %v1671_v13 = vmax.f32 %v1557_v11, 0.0 }
 0x1d4   :  { %v1272_v14 = vpop.f32.mrb[96].mxu1 }
 0x1d5   :  { %v2419_v16 = vpack.c.bf16 %v1671_v13, %v1670_v12  ;;  %v1273_v17 = vadd.f32 %v3328_v15, %v1272_v14  ;;  %v1561_v18 = vpop.f32.mrb[96].mxu0  ;;  %v1274_v19 = vpop.f32.mrb[97].mxu1 }
 0x1d6   :  { %v1563_v20 = vpop.f32.mrb[97].mxu0  ;;  %v1275_v21 = vpop.f32.mrb[98].mxu1 }
 0x1d7   :  { %2483 = vst [vmem:[%s3546_s3 + $0xb8] sm:$0xff] %v2419_v16   ;;  %v1562_v22 = vadd.f32 %v1561_v18, %v1273_v17  ;;  %v1276_v23 = vadd.f32 %v3328_v15, %v1275_v21  ;;  %v1564_v24 = vpop.f32.mrb[98].mxu0  ;;  %v1277_v25 = vpop.f32.mrb[99].mxu1 }
 0x1d8   :  { %v1566_v26 = vpop.f32.mrb[99].mxu0 }
 0x1d9   :  { %v1565_v27 = vadd.f32 %v1564_v24, %v1276_v23  ;;  %v1672_v28 = vmax.f32 %v1562_v22, 0.0 }
 0x1db   :  { %v1673_v29 = vmax.f32 %v1565_v27, 0.0 }
 0x1dc   :  { %v1280_v30 = vpop.f32.mrb[100].mxu1 }
 0x1dd   :  { %v2424_v31 = vpack.c.bf16 %v1673_v29, %v1672_v28  ;;  %v1281_v32 = vadd.f32 %v3328_v15, %v1280_v30  ;;  %v1569_v33 = vpop.f32.mrb[100].mxu0  ;;  %v1282_v34 = vpop.f32.mrb[101].mxu1 }
 0x1de   :  { %v1571_v35 = vpop.f32.mrb[101].mxu0  ;;  %v1283_v36 = vpop.f32.mrb[102].mxu1 }
 0x1df   :  { %2484 = vst [vmem:[%s3546_s3 + $0xc0] sm:$0xff] %v2424_v31   ;;  %v1570_v37 = vadd.f32 %v1569_v33, %v1281_v32  ;;  %v1284_v38 = vadd.f32 %v3328_v15, %v1283_v36  ;;  %v1572_v39 = vpop.f32.mrb[102].mxu0  ;;  %v1285_v40 = vpop.f32.mrb[103].mxu1 }
 0x1e0   :  { %v1574_v41 = vpop.f32.mrb[103].mxu0 }
 0x1e1   :  { %v1573_v42 = vadd.f32 %v1572_v39, %v1284_v38  ;;  %v1674_v43 = vmax.f32 %v1570_v37, 0.0 }
 0x1e3   :  { %v1675_v44 = vmax.f32 %v1573_v42, 0.0 }
 0x1e4   :  { %v1288_v45 = vpop.f32.mrb[104].mxu1 }
 0x1e5   :  { %v2429_v46 = vpack.c.bf16 %v1675_v44, %v1674_v43  ;;  %v1289_v47 = vadd.f32 %v3328_v15, %v1288_v45  ;;  %v1577_v48 = vpop.f32.mrb[104].mxu0  ;;  %v1290_v49 = vpop.f32.mrb[105].mxu1  ;;  %v2845_v44 = vld [vmem:[%s3545_s2] ss:$0 sm:$0xff] }
 0x1e6   :  { %v1579_v50 = vpop.f32.mrb[105].mxu0  ;;  %v1291_v51 = vpop.f32.mrb[106].mxu1 }
 0x1e7   :  { %2485 = vst [vmem:[%s3546_s3 + $0xc8] sm:$0xff] %v2429_v46   ;;  %v1578_v52 = vadd.f32 %v1577_v48, %v1289_v47  ;;  %v1292_v53 = vadd.f32 %v3328_v15, %v1291_v51  ;;  %v1580_v54 = vpop.f32.mrb[106].mxu0  ;;  %v1293_v55 = vpop.f32.mrb[107].mxu1 }
 0x1e8   :  { %v1582_v56 = vpop.f32.mrb[107].mxu0 }
 0x1e9   :  { %v1581_v57 = vadd.f32 %v1580_v54, %v1292_v53  ;;  %v1676_v58 = vmax.f32 %v1578_v52, 0.0 }
 0x1eb   :  { %v1677_v59 = vmax.f32 %v1581_v57, 0.0 }
 0x1ec   :  { %v1296_v60 = vpop.f32.mrb[108].mxu1 }
 0x1ed   :  { %v2434_v61 = vpack.c.bf16 %v1677_v59, %v1676_v58  ;;  %v1297_v62 = vadd.f32 %v3328_v15, %v1296_v60  ;;  %v1585_v63 = vpop.f32.mrb[108].mxu0  ;;  %v1298_v0 = vpop.f32.mrb[109].mxu1 }
 0x1ee   :  { %v1587_v1 = vpop.f32.mrb[109].mxu0  ;;  %v1299_v2 = vpop.f32.mrb[110].mxu1 }
 0x1ef   :  { %2486 = vst [vmem:[%s3546_s3 + $0xd0] sm:$0xff] %v2434_v61   ;;  %v1586_v3 = vadd.f32 %v1585_v63, %v1297_v62  ;;  %v1300_v4 = vadd.f32 %v3328_v15, %v1299_v2  ;;  %v1588_v5 = vpop.f32.mrb[110].mxu0  ;;  %v1301_v6 = vpop.f32.mrb[111].mxu1 }
 0x1f0   :  { %v1590_v7 = vpop.f32.mrb[111].mxu0 }
 0x1f1   :  { %v1589_v8 = vadd.f32 %v1588_v5, %v1300_v4  ;;  %v1678_v9 = vmax.f32 %v1586_v3, 0.0 }
 0x1f3   :  { %v1679_v10 = vmax.f32 %v1589_v8, 0.0 }
 0x1f4   :  { %v1304_v11 = vpop.f32.mrb[112].mxu1 }
 0x1f5   :  { %v2439_v12 = vpack.c.bf16 %v1679_v10, %v1678_v9  ;;  %v1305_v13 = vadd.f32 %v3328_v15, %v1304_v11  ;;  %v1593_v14 = vpop.f32.mrb[112].mxu0  ;;  %v1306_v16 = vpop.f32.mrb[113].mxu1 }
 0x1f6   :  { %v1595_v17 = vpop.f32.mrb[113].mxu0  ;;  %v1307_v18 = vpop.f32.mrb[114].mxu1 }
 0x1f7   :  { %2487 = vst [vmem:[%s3546_s3 + $0xd8] sm:$0xff] %v2439_v12   ;;  %v1594_v19 = vadd.f32 %v1593_v14, %v1305_v13  ;;  %v1308_v20 = vadd.f32 %v3328_v15, %v1307_v18  ;;  %v1596_v21 = vpop.f32.mrb[114].mxu0  ;;  %v1309_v22 = vpop.f32.mrb[115].mxu1 }
 0x1f8   :  { %v1598_v23 = vpop.f32.mrb[115].mxu0 }
 0x1f9   :  { %v1597_v24 = vadd.f32 %v1596_v21, %v1308_v20  ;;  %v1680_v25 = vmax.f32 %v1594_v19, 0.0 }
 0x1fb   :  { %v1681_v26 = vmax.f32 %v1597_v24, 0.0 }
 0x1fc   :  { %v1312_v27 = vpop.f32.mrb[116].mxu1 }
 0x1fd   :  { %v2444_v28 = vpack.c.bf16 %v1681_v26, %v1680_v25  ;;  %v1313_v29 = vadd.f32 %v3328_v15, %v1312_v27  ;;  %v1601_v30 = vpop.f32.mrb[116].mxu0  ;;  %v1314_v31 = vpop.f32.mrb[117].mxu1 }
 0x1fe   :  { %v1603_v32 = vpop.f32.mrb[117].mxu0  ;;  %v1315_v33 = vpop.f32.mrb[118].mxu1 }
 0x1ff   :  { %2488 = vst [vmem:[%s3546_s3 + $0xe0] sm:$0xff] %v2444_v28   ;;  %v1602_v34 = vadd.f32 %v1601_v30, %v1313_v29  ;;  %v1316_v35 = vadd.f32 %v3328_v15, %v1315_v33  ;;  %v1604_v36 = vpop.f32.mrb[118].mxu0  ;;  %v1317_v37 = vpop.f32.mrb[119].mxu1 }
 0x200   :  { %v1606_v38 = vpop.f32.mrb[119].mxu0 }
 0x201   :  { %v1605_v39 = vadd.f32 %v1604_v36, %v1316_v35  ;;  %v1682_v40 = vmax.f32 %v1602_v34, 0.0 }
 0x203   :  { %v1683_v41 = vmax.f32 %v1605_v39, 0.0 }
 0x204   :  { %v1320_v42 = vpop.f32.mrb[120].mxu1 }
 0x205   :  { %v2449_v43 = vpack.c.bf16 %v1683_v41, %v1682_v40  ;;  %v1321_v45 = vadd.f32 %v2845_v44, %v1320_v42  ;;  %v1609_v46 = vpop.f32.mrb[120].mxu0  ;;  %v1322_v47 = vpop.f32.mrb[121].mxu1 }
 0x206   :  { %v1611_v48 = vpop.f32.mrb[121].mxu0  ;;  %v1323_v49 = vpop.f32.mrb[122].mxu1 }
 0x207   :  { %2489 = vst [vmem:[%s3546_s3 + $0xe8] sm:$0xff] %v2449_v43   ;;  %v1610_v15 = vadd.f32 %v1609_v46, %v1321_v45  ;;  %v1324_v50 = vadd.f32 %v2845_v44, %v1323_v49  ;;  %v1612_v51 = vpop.f32.mrb[122].mxu0  ;;  %v1325_v52 = vpop.f32.mrb[123].mxu1 }
 0x208   :  { %v1614_v53 = vpop.f32.mrb[123].mxu0 }
 0x209   :  { %v1613_v54 = vadd.f32 %v1612_v51, %v1324_v50  ;;  %v1684_v55 = vmax.f32 %v1610_v15, 0.0 }
 0x20b   :  { %v1685_v56 = vmax.f32 %v1613_v54, 0.0 }
 0x20c   :  { %v1328_v57 = vpop.f32.mrb[124].mxu1 }
 0x20d   :  { %v2454_v58 = vpack.c.bf16 %v1685_v56, %v1684_v55  ;;  %v1329_v59 = vadd.f32 %v2845_v44, %v1328_v57  ;;  %v1617_v60 = vpop.f32.mrb[124].mxu0  ;;  %v1330_v61 = vpop.f32.mrb[125].mxu1 }
 0x20e   :  { %v1619_v62 = vpop.f32.mrb[125].mxu0  ;;  %v1331_v63 = vpop.f32.mrb[126].mxu1 }
 0x20f   :  { %2490 = vst [vmem:[%s3546_s3 + $0xf0] sm:$0xff] %v2454_v58   ;;  %v1618_v0 = vadd.f32 %v1617_v60, %v1329_v59  ;;  %v1332_v1 = vadd.f32 %v2845_v44, %v1331_v63  ;;  %v1620_v2 = vpop.f32.mrb[126].mxu0  ;;  %v1333_v3 = vpop.f32.mrb[127].mxu1 }
 0x210   :  { %v1622_v4 = vpop.f32.mrb[127].mxu0 }
 0x211   :  { %v1621_v5 = vadd.f32 %v1620_v2, %v1332_v1  ;;  %v1686_v6 = vmax.f32 %v1618_v0, 0.0 }
 0x213   :  { %v1687_v7 = vmax.f32 %v1621_v5, 0.0 }
 0x215   :  { %v2459_v8 = vpack.c.bf16 %v1687_v7, %v1686_v6 }
 0x217   :  { %2491 = vst [vmem:[%s3546_s3 + $0xf8] sm:$0xff] %v2459_v8  }

// kernel: _lambda_.7
= control target key start
LH: loop header
LB: loop body
LE: loop exit
PB: predicated region body
PF: predicated region fallthrough
CT: control target
= control target key end

     0   :  { %s1373_s1 = inlined_call_operand.vmem [shape: bf16[512,128], index: 1, kind: input, shape index: {}]   ;;  %s1374_s0 = inlined_call_operand.vmem [shape: bf16[128,512], index: 0, kind: input, shape index: {}]   ;;  %s1375_s2 = inlined_call_operand.vmem [shape: f32[1,128], index: 2, kind: input, shape index: {}]   ;;  %s1376_s3 = inlined_call_operand.vmem [shape: bf16[128,128], index: 3, kind: output, shape index: {}]  }
   0x1   :  { %v1036_v0 = vld [vmem:[%s1373_s1 + $0x40] sm:$0xff]   ;;  %v1040_v4 = vld [vmem:[%s1373_s1 + $0x48] sm:$0xff]   ;;  %v1044_v8 = vld [vmem:[%s1373_s1 + $0x50] sm:$0xff]  }
   0x2   :  { %v1037_v1 = vld [vmem:[%s1373_s1 + $0xc0] sm:$0xff]   ;;  %908 = vmatprep.subr.bf16.mxu0 %v1036_v0  ;;  %v1041_v5 = vld [vmem:[%s1373_s1 + $0xc8] sm:$0xff]   ;;  %v1045_v9 = vld [vmem:[%s1373_s1 + $0xd0] sm:$0xff]  }
   0x3   :  { %v1038_v2 = vld [vmem:[%s1373_s1] sm:$0xff]   ;;  %972 = vmatprep.subr.bf16.mxu1 %v1037_v1  ;;  %v1042_v6 = vld [vmem:[%s1373_s1 + $0x8] sm:$0xff]   ;;  %v1046_v10 = vld [vmem:[%s1373_s1 + $0x10] sm:$0xff]  }
   0x4   :  { %v1039_v3 = vld [vmem:[%s1373_s1 + $0x80] sm:$0xff]   ;;  %909 = vmatpush3.bf16.msra.mxu0 %v1038_v2  ;;  %v1043_v7 = vld [vmem:[%s1373_s1 + $0x88] sm:$0xff]   ;;  %v1047_v11 = vld [vmem:[%s1373_s1 + $0x90] sm:$0xff]  }
   0x5   :  { %973 = vmatpush3.bf16.msra.mxu1 %v1039_v3  ;;  %910 = vmatprep.subr.bf16.mxu0 %v1040_v4  ;;  %v1048_v12 = vld [vmem:[%s1373_s1 + $0x58] sm:$0xff]   ;;  %v1052_v16 = vld [vmem:[%s1373_s1 + $0x60] sm:$0xff]   ;;  %v1056_v20 = vld [vmem:[%s1373_s1 + $0x68] sm:$0xff]  }
   0x6   :  { %974 = vmatprep.subr.bf16.mxu1 %v1041_v5  ;;  %v1049_v13 = vld [vmem:[%s1373_s1 + $0xd8] sm:$0xff]   ;;  %v1053_v17 = vld [vmem:[%s1373_s1 + $0xe0] sm:$0xff]   ;;  %v1057_v21 = vld [vmem:[%s1373_s1 + $0xe8] sm:$0xff]  }
   0x7   :  { %v1050_v14 = vld [vmem:[%s1373_s1 + $0x18] sm:$0xff]   ;;  %v1054_v18 = vld [vmem:[%s1373_s1 + $0x20] sm:$0xff]   ;;  %v1058_v22 = vld [vmem:[%s1373_s1 + $0x28] sm:$0xff]  }
   0x8   :  { %911 = vmatpush3.bf16.msra.mxu0 %v1042_v6  ;;  %v1051_v15 = vld [vmem:[%s1373_s1 + $0x98] sm:$0xff]   ;;  %v1055_v19 = vld [vmem:[%s1373_s1 + $0xa0] sm:$0xff]   ;;  %v1059_v23 = vld [vmem:[%s1373_s1 + $0xa8] sm:$0xff]  }
   0x9   :  { %975 = vmatpush3.bf16.msra.mxu1 %v1043_v7  ;;  %912 = vmatprep.subr.bf16.mxu0 %v1044_v8  ;;  %v1060_v24 = vld [vmem:[%s1373_s1 + $0x70] sm:$0xff]   ;;  %v1064_v28 = vld [vmem:[%s1373_s1 + $0x78] sm:$0xff]   ;;  %v1331_v2 = vld [vmem:[%s1375_s2] ss:$0 sm:$0xff] }
   0xa   :  { %976 = vmatprep.subr.bf16.mxu1 %v1045_v9  ;;  %v1061_v25 = vld [vmem:[%s1373_s1 + $0xf0] sm:$0xff]   ;;  %v1065_v29 = vld [vmem:[%s1373_s1 + $0xf8] sm:$0xff]  }
   0xb   :  { %v1062_v26 = vld [vmem:[%s1373_s1 + $0x30] sm:$0xff]   ;;  %v1066_v30 = vld [vmem:[%s1373_s1 + $0x38] sm:$0xff]  }
   0xc   :  { %913 = vmatpush3.bf16.msra.mxu0 %v1046_v10  ;;  %v1063_v27 = vld [vmem:[%s1373_s1 + $0xb0] sm:$0xff]   ;;  %v1067_v31 = vld [vmem:[%s1373_s1 + $0xb8] sm:$0xff]  }
   0xd   :  { %977 = vmatpush3.bf16.msra.mxu1 %v1047_v11  ;;  %914 = vmatprep.subr.bf16.mxu0 %v1048_v12  ;;  %v1068_v32 = vld [vmem:[%s1374_s0] ss:$16 sps:$4 sm:$0xff]   ;;  %v1070_v33 = vld [vmem:[%s1374_s0 + $0x4] ss:$16 sps:$4 sm:$0xff]   ;;  %v1071_v34 = vld [vmem:[%s1374_s0 + $0x8] ss:$16 sps:$4 sm:$0xff]  }
   0xe   :  { %978 = vmatprep.subr.bf16.mxu1 %v1049_v13  ;;  %v1073_v35 = vld [vmem:[%s1374_s0 + $0xc] ss:$16 sps:$4 sm:$0xff]   ;;  %502 = vmatprep.mubr.bf16.mxu0 %v1070_v33  ;;  %v1074_v36 = vld [vmem:[%s1374_s0 + $0x24] ss:$16 sps:$4 sm:$0xff]   ;;  %v1078_v38 = vld [vmem:[%s1374_s0 + $0x20] ss:$16 sps:$4 sm:$0xff]  }
   0xf   :  { %599 = vmatprep.mubr.bf16.mxu1 %v1073_v35  ;;  %v1076_v37 = vld [vmem:[%s1374_s0 + $0x2c] ss:$16 sps:$4 sm:$0xff]   ;;  %v1079_v39 = vld [vmem:[%s1374_s0 + $0x28] ss:$16 sps:$4 sm:$0xff]   ;;  %v1080_v40 = vld [vmem:[%s1374_s0 + $0x44] ss:$16 sps:$4 sm:$0xff]  }
  0x10   :  { %915 = vmatpush3.bf16.msra.mxu0 %v1050_v14  ;;  %v1082_v41 = vld [vmem:[%s1374_s0 + $0x4c] ss:$16 sps:$4 sm:$0xff]   ;;  %v1084_v42 = vld [vmem:[%s1374_s0 + $0x40] ss:$16 sps:$4 sm:$0xff]   ;;  %v1085_v43 = vld [vmem:[%s1374_s0 + $0x48] ss:$16 sps:$4 sm:$0xff]  }
  0x11   :  { %979 = vmatpush3.bf16.msra.mxu1 %v1051_v15  ;;  %916 = vmatprep.subr.bf16.mxu0 %v1052_v16  ;;  %v1086_v44 = vld [vmem:[%s1374_s0 + $0x64] ss:$16 sps:$4 sm:$0xff]   ;;  %v1088_v45 = vld [vmem:[%s1374_s0 + $0x6c] ss:$16 sps:$4 sm:$0xff]   ;;  %v1090_v46 = vld [vmem:[%s1374_s0 + $0x60] ss:$16 sps:$4 sm:$0xff]  }
  0x12   :  { %980 = vmatprep.subr.bf16.mxu1 %v1053_v17  ;;  %v1091_v47 = vld [vmem:[%s1374_s0 + $0x68] ss:$16 sps:$4 sm:$0xff]   ;;  %v1092_v48 = vld [vmem:[%s1374_s0 + $0x84] ss:$16 sps:$4 sm:$0xff]   ;;  %v1094_v49 = vld [vmem:[%s1374_s0 + $0x8c] ss:$16 sps:$4 sm:$0xff]  }
  0x13   :  { %v1096_v50 = vld [vmem:[%s1374_s0 + $0x80] ss:$16 sps:$4 sm:$0xff]   ;;  %v1097_v51 = vld [vmem:[%s1374_s0 + $0x88] ss:$16 sps:$4 sm:$0xff]   ;;  %v1098_v52 = vld [vmem:[%s1374_s0 + $0xa4] ss:$16 sps:$4 sm:$0xff]  }
  0x14   :  { %917 = vmatpush3.bf16.msra.mxu0 %v1054_v18  ;;  %v1100_v53 = vld [vmem:[%s1374_s0 + $0xac] ss:$16 sps:$4 sm:$0xff]   ;;  %v1102_v54 = vld [vmem:[%s1374_s0 + $0xa0] ss:$16 sps:$4 sm:$0xff]   ;;  %v1103_v55 = vld [vmem:[%s1374_s0 + $0xa8] ss:$16 sps:$4 sm:$0xff]  }
  0x15   :  { %981 = vmatpush3.bf16.msra.mxu1 %v1055_v19  ;;  %918 = vmatprep.subr.bf16.mxu0 %v1056_v20  ;;  %v1104_v56 = vld [vmem:[%s1374_s0 + $0xc4] ss:$16 sps:$4 sm:$0xff]   ;;  %v1106_v57 = vld [vmem:[%s1374_s0 + $0xcc] ss:$16 sps:$4 sm:$0xff]   ;;  %v1108_v58 = vld [vmem:[%s1374_s0 + $0xc0] ss:$16 sps:$4 sm:$0xff]  }
  0x16   :  { %982 = vmatprep.subr.bf16.mxu1 %v1057_v21  ;;  %v1109_v59 = vld [vmem:[%s1374_s0 + $0xc8] ss:$16 sps:$4 sm:$0xff]   ;;  %v1110_v60 = vld [vmem:[%s1374_s0 + $0xe4] ss:$16 sps:$4 sm:$0xff]   ;;  %v1112_v61 = vld [vmem:[%s1374_s0 + $0xec] ss:$16 sps:$4 sm:$0xff]  }
  0x17   :  { %v1114_v62 = vld [vmem:[%s1374_s0 + $0xe0] ss:$16 sps:$4 sm:$0xff]   ;;  %v1115_v63 = vld [vmem:[%s1374_s0 + $0xe8] ss:$16 sps:$4 sm:$0xff]  }
  0x18   :  { %919 = vmatpush3.bf16.msra.mxu0 %v1058_v22 }
  0x19   :  { %983 = vmatpush3.bf16.msra.mxu1 %v1059_v23  ;;  %920 = vmatprep.subr.bf16.mxu0 %v1060_v24 }
  0x1a   :  { %984 = vmatprep.subr.bf16.mxu1 %v1061_v25 }
  0x1c   :  { %921 = vmatpush3.bf16.msra.mxu0 %v1062_v26 }
  0x1d   :  { %985 = vmatpush3.bf16.msra.mxu1 %v1063_v27  ;;  %922 = vmatprep.subr.bf16.mxu0 %v1064_v28 }
  0x1e   :  { %986 = vmatprep.subr.bf16.mxu1 %v1065_v29 }
  0x20   :  { %923 = vmatpush3.bf16.msra.mxu0 %v1066_v30 }
  0x21   :  { %987 = vmatpush3.bf16.msra.mxu1 %v1067_v31 }
  0x23   :  { %503 = vmatmul.mubr.bf16.vlgmr.msra.gmra.mrb[0].mxu0 %v1068_v32 }
  0x24   :  { %600 = vmatmul.mubr.bf16.vlgmr.msra.gmra.mrb[0].mxu1 %v1071_v34  ;;  %510 = vmatprep.mubr.bf16.mxu0 %v1074_v36 }
  0x25   :  { %607 = vmatprep.mubr.bf16.mxu1 %v1076_v37 }
  0x2b   :  { %511 = vmatmul.mubr.bf16.gmra.mrb[4].mxu0 %v1078_v38 }
  0x2c   :  { %608 = vmatmul.mubr.bf16.gmra.mrb[4].mxu1 %v1079_v39  ;;  %518 = vmatprep.mubr.bf16.mxu0 %v1080_v40 }
  0x2d   :  { %615 = vmatprep.mubr.bf16.mxu1 %v1082_v41 }
  0x33   :  { %519 = vmatmul.mubr.bf16.gmra.mrb[8].mxu0 %v1084_v42 }
  0x34   :  { %616 = vmatmul.mubr.bf16.gmra.mrb[8].mxu1 %v1085_v43  ;;  %526 = vmatprep.mubr.bf16.mxu0 %v1086_v44 }
  0x35   :  { %623 = vmatprep.mubr.bf16.mxu1 %v1088_v45 }
  0x3b   :  { %527 = vmatmul.mubr.bf16.gmra.mrb[12].mxu0 %v1090_v46 }
  0x3c   :  { %624 = vmatmul.mubr.bf16.gmra.mrb[12].mxu1 %v1091_v47  ;;  %534 = vmatprep.mubr.bf16.mxu0 %v1092_v48 }
  0x3d   :  { %631 = vmatprep.mubr.bf16.mxu1 %v1094_v49 }
  0x43   :  { %535 = vmatmul.mubr.bf16.gmra.mrb[16].mxu0 %v1096_v50 }
  0x44   :  { %632 = vmatmul.mubr.bf16.gmra.mrb[16].mxu1 %v1097_v51  ;;  %542 = vmatprep.mubr.bf16.mxu0 %v1098_v52 }
  0x45   :  { %639 = vmatprep.mubr.bf16.mxu1 %v1100_v53 }
  0x4b   :  { %543 = vmatmul.mubr.bf16.gmra.mrb[20].mxu0 %v1102_v54 }
  0x4c   :  { %640 = vmatmul.mubr.bf16.gmra.mrb[20].mxu1 %v1103_v55  ;;  %550 = vmatprep.mubr.bf16.mxu0 %v1104_v56 }
  0x4d   :  { %647 = vmatprep.mubr.bf16.mxu1 %v1106_v57 }
  0x53   :  { %551 = vmatmul.mubr.bf16.gmra.mrb[24].mxu0 %v1108_v58 }
  0x54   :  { %648 = vmatmul.mubr.bf16.gmra.mrb[24].mxu1 %v1109_v59  ;;  %558 = vmatprep.mubr.bf16.mxu0 %v1110_v60 }
  0x55   :  { %655 = vmatprep.mubr.bf16.mxu1 %v1112_v61 }
  0x5b   :  { %559 = vmatmul.mubr.bf16.gmra.mrb[28].mxu0 %v1114_v62 }
  0x5c   :  { %656 = vmatmul.mubr.bf16.gmra.mrb[28].mxu1 %v1115_v63 }
  0xf6   :  { %v924_v0 = vpop.f32.mrb[0].mxu0 }
  0xf7   :  { %v988_v1 = vpop.f32.mrb[0].mxu1  ;;  %v925_v3 = vpop.f32.mrb[1].mxu0 }
  0xf8   :  { %v926_v4 = vadd.f32 %v925_v3, %v924_v0  ;;  %v989_v5 = vpop.f32.mrb[1].mxu1  ;;  %v927_v6 = vpop.f32.mrb[2].mxu0 }
  0xf9   :  { %v990_v7 = vadd.f32 %v989_v5, %v988_v1  ;;  %v991_v8 = vpop.f32.mrb[2].mxu1  ;;  %v928_v9 = vpop.f32.mrb[3].mxu0 }
  0xfa   :  { %v505_v10 = vadd.f32 %v926_v4, %v1331_v2  ;;  %v929_v11 = vadd.f32 %v928_v9, %v927_v6  ;;  %v992_v12 = vpop.f32.mrb[3].mxu1 }
  0xfb   :  { %v993_v13 = vadd.f32 %v992_v12, %v991_v8 }
  0xfc   :  { %v602_v14 = vadd.f32 %v990_v7, %v505_v10  ;;  %v508_v15 = vadd.f32 %v929_v11, %v1331_v2 }
  0xfe   :  { %v605_v16 = vadd.f32 %v993_v13, %v508_v15  ;;  %v930_v17 = vpop.f32.mrb[4].mxu0  ;;  %v664_v20 = vmax.f32 %v602_v14, 0.0 }
  0xff   :  { %v994_v18 = vpop.f32.mrb[4].mxu1  ;;  %v931_v19 = vpop.f32.mrb[5].mxu0 }
 0x100   :  { %v665_v21 = vmax.f32 %v605_v16, 0.0  ;;  %v932_v22 = vadd.f32 %v931_v19, %v930_v17  ;;  %v995_v23 = vpop.f32.mrb[5].mxu1  ;;  %v933_v24 = vpop.f32.mrb[6].mxu0 }
 0x101   :  { %v996_v25 = vadd.f32 %v995_v23, %v994_v18  ;;  %v997_v26 = vpop.f32.mrb[6].mxu1  ;;  %v934_v27 = vpop.f32.mrb[7].mxu0 }
 0x102   :  { %v864_v28 = vpack.c.bf16 %v665_v21, %v664_v20  ;;  %v513_v29 = vadd.f32 %v932_v22, %v1331_v2  ;;  %v935_v30 = vadd.f32 %v934_v27, %v933_v24  ;;  %v998_v31 = vpop.f32.mrb[7].mxu1 }
 0x103   :  { %v999_v32 = vadd.f32 %v998_v31, %v997_v26 }
 0x104   :  { %865 = vst [vmem:[%s1376_s3] sm:$0xff] %v864_v28   ;;  %v610_v33 = vadd.f32 %v996_v25, %v513_v29  ;;  %v516_v34 = vadd.f32 %v935_v30, %v1331_v2 }
 0x106   :  { %v613_v35 = vadd.f32 %v999_v32, %v516_v34  ;;  %v936_v36 = vpop.f32.mrb[8].mxu0  ;;  %v666_v39 = vmax.f32 %v610_v33, 0.0 }
 0x107   :  { %v1000_v37 = vpop.f32.mrb[8].mxu1  ;;  %v937_v38 = vpop.f32.mrb[9].mxu0 }
 0x108   :  { %v667_v40 = vmax.f32 %v613_v35, 0.0  ;;  %v938_v41 = vadd.f32 %v937_v38, %v936_v36  ;;  %v1001_v42 = vpop.f32.mrb[9].mxu1  ;;  %v939_v43 = vpop.f32.mrb[10].mxu0 }
 0x109   :  { %v1002_v44 = vadd.f32 %v1001_v42, %v1000_v37  ;;  %v1003_v45 = vpop.f32.mrb[10].mxu1  ;;  %v940_v46 = vpop.f32.mrb[11].mxu0 }
 0x10a   :  { %v869_v47 = vpack.c.bf16 %v667_v40, %v666_v39  ;;  %v521_v48 = vadd.f32 %v938_v41, %v1331_v2  ;;  %v941_v49 = vadd.f32 %v940_v46, %v939_v43  ;;  %v1004_v50 = vpop.f32.mrb[11].mxu1 }
 0x10b   :  { %v1005_v51 = vadd.f32 %v1004_v50, %v1003_v45 }
 0x10c   :  { %901 = vst [vmem:[%s1376_s3 + $0x8] sm:$0xff] %v869_v47   ;;  %v618_v52 = vadd.f32 %v1002_v44, %v521_v48  ;;  %v524_v53 = vadd.f32 %v941_v49, %v1331_v2 }
 0x10e   :  { %v621_v54 = vadd.f32 %v1005_v51, %v524_v53  ;;  %v942_v55 = vpop.f32.mrb[12].mxu0  ;;  %v668_v58 = vmax.f32 %v618_v52, 0.0 }
 0x10f   :  { %v1006_v56 = vpop.f32.mrb[12].mxu1  ;;  %v943_v57 = vpop.f32.mrb[13].mxu0 }
 0x110   :  { %v669_v59 = vmax.f32 %v621_v54, 0.0  ;;  %v944_v60 = vadd.f32 %v943_v57, %v942_v55  ;;  %v1007_v61 = vpop.f32.mrb[13].mxu1  ;;  %v945_v62 = vpop.f32.mrb[14].mxu0 }
 0x111   :  { %v1008_v63 = vadd.f32 %v1007_v61, %v1006_v56  ;;  %v1009_v0 = vpop.f32.mrb[14].mxu1  ;;  %v946_v1 = vpop.f32.mrb[15].mxu0 }
 0x112   :  { %v874_v3 = vpack.c.bf16 %v669_v59, %v668_v58  ;;  %v529_v4 = vadd.f32 %v944_v60, %v1331_v2  ;;  %v947_v5 = vadd.f32 %v946_v1, %v945_v62  ;;  %v1010_v6 = vpop.f32.mrb[15].mxu1 }
 0x113   :  { %v1011_v7 = vadd.f32 %v1010_v6, %v1009_v0 }
 0x114   :  { %902 = vst [vmem:[%s1376_s3 + $0x10] sm:$0xff] %v874_v3   ;;  %v626_v8 = vadd.f32 %v1008_v63, %v529_v4  ;;  %v532_v9 = vadd.f32 %v947_v5, %v1331_v2 }
 0x116   :  { %v629_v10 = vadd.f32 %v1011_v7, %v532_v9  ;;  %v948_v11 = vpop.f32.mrb[16].mxu0  ;;  %v670_v14 = vmax.f32 %v626_v8, 0.0 }
 0x117   :  { %v1012_v12 = vpop.f32.mrb[16].mxu1  ;;  %v949_v13 = vpop.f32.mrb[17].mxu0 }
 0x118   :  { %v671_v15 = vmax.f32 %v629_v10, 0.0  ;;  %v950_v16 = vadd.f32 %v949_v13, %v948_v11  ;;  %v1013_v17 = vpop.f32.mrb[17].mxu1  ;;  %v951_v18 = vpop.f32.mrb[18].mxu0 }
 0x119   :  { %v1014_v19 = vadd.f32 %v1013_v17, %v1012_v12  ;;  %v1015_v20 = vpop.f32.mrb[18].mxu1  ;;  %v952_v21 = vpop.f32.mrb[19].mxu0 }
 0x11a   :  { %v879_v22 = vpack.c.bf16 %v671_v15, %v670_v14  ;;  %v537_v23 = vadd.f32 %v950_v16, %v1331_v2  ;;  %v953_v24 = vadd.f32 %v952_v21, %v951_v18  ;;  %v1016_v25 = vpop.f32.mrb[19].mxu1 }
 0x11b   :  { %v1017_v26 = vadd.f32 %v1016_v25, %v1015_v20 }
 0x11c   :  { %903 = vst [vmem:[%s1376_s3 + $0x18] sm:$0xff] %v879_v22   ;;  %v634_v27 = vadd.f32 %v1014_v19, %v537_v23  ;;  %v540_v28 = vadd.f32 %v953_v24, %v1331_v2 }
 0x11e   :  { %v637_v29 = vadd.f32 %v1017_v26, %v540_v28  ;;  %v954_v30 = vpop.f32.mrb[20].mxu0  ;;  %v672_v33 = vmax.f32 %v634_v27, 0.0 }
 0x11f   :  { %v1018_v31 = vpop.f32.mrb[20].mxu1  ;;  %v955_v32 = vpop.f32.mrb[21].mxu0 }
 0x120   :  { %v673_v34 = vmax.f32 %v637_v29, 0.0  ;;  %v956_v35 = vadd.f32 %v955_v32, %v954_v30  ;;  %v1019_v36 = vpop.f32.mrb[21].mxu1  ;;  %v957_v37 = vpop.f32.mrb[22].mxu0 }
 0x121   :  { %v1020_v38 = vadd.f32 %v1019_v36, %v1018_v31  ;;  %v1021_v39 = vpop.f32.mrb[22].mxu1  ;;  %v958_v40 = vpop.f32.mrb[23].mxu0 }
 0x122   :  { %v884_v41 = vpack.c.bf16 %v673_v34, %v672_v33  ;;  %v545_v42 = vadd.f32 %v956_v35, %v1331_v2  ;;  %v959_v43 = vadd.f32 %v958_v40, %v957_v37  ;;  %v1022_v44 = vpop.f32.mrb[23].mxu1 }
 0x123   :  { %v1023_v45 = vadd.f32 %v1022_v44, %v1021_v39 }
 0x124   :  { %904 = vst [vmem:[%s1376_s3 + $0x20] sm:$0xff] %v884_v41   ;;  %v642_v46 = vadd.f32 %v1020_v38, %v545_v42  ;;  %v548_v47 = vadd.f32 %v959_v43, %v1331_v2 }
 0x126   :  { %v645_v48 = vadd.f32 %v1023_v45, %v548_v47  ;;  %v960_v49 = vpop.f32.mrb[24].mxu0  ;;  %v674_v52 = vmax.f32 %v642_v46, 0.0 }
 0x127   :  { %v1024_v50 = vpop.f32.mrb[24].mxu1  ;;  %v961_v51 = vpop.f32.mrb[25].mxu0 }
 0x128   :  { %v675_v53 = vmax.f32 %v645_v48, 0.0  ;;  %v962_v54 = vadd.f32 %v961_v51, %v960_v49  ;;  %v1025_v55 = vpop.f32.mrb[25].mxu1  ;;  %v963_v56 = vpop.f32.mrb[26].mxu0 }
 0x129   :  { %v1026_v57 = vadd.f32 %v1025_v55, %v1024_v50  ;;  %v1027_v58 = vpop.f32.mrb[26].mxu1  ;;  %v964_v59 = vpop.f32.mrb[27].mxu0 }
 0x12a   :  { %v889_v60 = vpack.c.bf16 %v675_v53, %v674_v52  ;;  %v553_v61 = vadd.f32 %v962_v54, %v1331_v2  ;;  %v965_v62 = vadd.f32 %v964_v59, %v963_v56  ;;  %v1028_v63 = vpop.f32.mrb[27].mxu1 }
 0x12b   :  { %v1029_v0 = vadd.f32 %v1028_v63, %v1027_v58 }
 0x12c   :  { %905 = vst [vmem:[%s1376_s3 + $0x28] sm:$0xff] %v889_v60   ;;  %v650_v1 = vadd.f32 %v1026_v57, %v553_v61  ;;  %v556_v3 = vadd.f32 %v965_v62, %v1331_v2 }
 0x12e   :  { %v653_v4 = vadd.f32 %v1029_v0, %v556_v3  ;;  %v966_v5 = vpop.f32.mrb[28].mxu0  ;;  %v676_v8 = vmax.f32 %v650_v1, 0.0 }
 0x12f   :  { %v1030_v6 = vpop.f32.mrb[28].mxu1  ;;  %v967_v7 = vpop.f32.mrb[29].mxu0 }
 0x130   :  { %v677_v9 = vmax.f32 %v653_v4, 0.0  ;;  %v968_v10 = vadd.f32 %v967_v7, %v966_v5  ;;  %v1031_v11 = vpop.f32.mrb[29].mxu1  ;;  %v969_v12 = vpop.f32.mrb[30].mxu0 }
 0x131   :  { %v1032_v13 = vadd.f32 %v1031_v11, %v1030_v6  ;;  %v1033_v14 = vpop.f32.mrb[30].mxu1  ;;  %v970_v15 = vpop.f32.mrb[31].mxu0 }
 0x132   :  { %v894_v16 = vpack.c.bf16 %v677_v9, %v676_v8  ;;  %v561_v17 = vadd.f32 %v968_v10, %v1331_v2  ;;  %v971_v18 = vadd.f32 %v970_v15, %v969_v12  ;;  %v1034_v19 = vpop.f32.mrb[31].mxu1 }
 0x133   :  { %v1035_v20 = vadd.f32 %v1034_v19, %v1033_v14 }
 0x134   :  { %906 = vst [vmem:[%s1376_s3 + $0x30] sm:$0xff] %v894_v16   ;;  %v658_v21 = vadd.f32 %v1032_v13, %v561_v17  ;;  %v564_v22 = vadd.f32 %v971_v18, %v1331_v2 }
 0x136   :  { %v661_v23 = vadd.f32 %v1035_v20, %v564_v22  ;;  %v678_v24 = vmax.f32 %v658_v21, 0.0 }
 0x138   :  { %v679_v25 = vmax.f32 %v661_v23, 0.0 }
 0x13a   :  { %v899_v26 = vpack.c.bf16 %v679_v25, %v678_v24 }
 0x13c   :  { %907 = vst [vmem:[%s1376_s3 + $0x38] sm:$0xff] %v899_v26  }

// kernel: _lambda_.8
= control target key start
LH: loop header
LB: loop body
LE: loop exit
PB: predicated region body
PF: predicated region fallthrough
CT: control target
= control target key end

     0   :  { %s1399_s1 = inlined_call_operand.vmem [shape: bf16[1024,128], index: 1, kind: input, shape index: {}]   ;;  %s1400_s0 = inlined_call_operand.vmem [shape: bf16[32,1024], index: 0, kind: input, shape index: {}]   ;;  %s1401_s2 = inlined_call_operand.vmem [shape: f32[1,128], index: 2, kind: input, shape index: {}]   ;;  %s1402_s3 = inlined_call_operand.vmem [shape: bf16[32,128], index: 3, kind: output, shape index: {}]  }
   0x1   :  { %v1066_v0 = vld [vmem:[%s1399_s1 + $0x40] sm:$0xff]   ;;  %v1070_v4 = vld [vmem:[%s1399_s1 + $0x48] sm:$0xff]   ;;  %v1074_v8 = vld [vmem:[%s1399_s1 + $0x50] sm:$0xff]  }
   0x2   :  { %v1067_v1 = vld [vmem:[%s1399_s1 + $0xc0] sm:$0xff]   ;;  %954 = vmatprep.subr.bf16.mxu0 %v1066_v0  ;;  %v1071_v5 = vld [vmem:[%s1399_s1 + $0xc8] sm:$0xff]   ;;  %v1075_v9 = vld [vmem:[%s1399_s1 + $0xd0] sm:$0xff]  }
   0x3   :  { %v1068_v2 = vld [vmem:[%s1399_s1] sm:$0xff]   ;;  %982 = vmatprep.subr.bf16.mxu1 %v1067_v1  ;;  %v1072_v6 = vld [vmem:[%s1399_s1 + $0x8] sm:$0xff]   ;;  %v1076_v10 = vld [vmem:[%s1399_s1 + $0x10] sm:$0xff]  }
   0x4   :  { %v1069_v3 = vld [vmem:[%s1399_s1 + $0x80] sm:$0xff]   ;;  %955 = vmatpush3.bf16.msra.mxu0 %v1068_v2  ;;  %v1073_v7 = vld [vmem:[%s1399_s1 + $0x88] sm:$0xff]   ;;  %v1077_v11 = vld [vmem:[%s1399_s1 + $0x90] sm:$0xff]  }
   0x5   :  { %983 = vmatpush3.bf16.msra.mxu1 %v1069_v3  ;;  %956 = vmatprep.subr.bf16.mxu0 %v1070_v4  ;;  %v1078_v12 = vld [vmem:[%s1399_s1 + $0x58] sm:$0xff]   ;;  %v1082_v16 = vld [vmem:[%s1399_s1 + $0x60] sm:$0xff]   ;;  %v1086_v20 = vld [vmem:[%s1399_s1 + $0x68] sm:$0xff]  }
   0x6   :  { %984 = vmatprep.subr.bf16.mxu1 %v1071_v5  ;;  %v1079_v13 = vld [vmem:[%s1399_s1 + $0xd8] sm:$0xff]   ;;  %v1083_v17 = vld [vmem:[%s1399_s1 + $0xe0] sm:$0xff]   ;;  %v1087_v21 = vld [vmem:[%s1399_s1 + $0xe8] sm:$0xff]  }
   0x7   :  { %v1080_v14 = vld [vmem:[%s1399_s1 + $0x18] sm:$0xff]   ;;  %v1084_v18 = vld [vmem:[%s1399_s1 + $0x20] sm:$0xff]   ;;  %v1088_v22 = vld [vmem:[%s1399_s1 + $0x28] sm:$0xff]  }
   0x8   :  { %957 = vmatpush3.bf16.msra.mxu0 %v1072_v6  ;;  %v1081_v15 = vld [vmem:[%s1399_s1 + $0x98] sm:$0xff]   ;;  %v1085_v19 = vld [vmem:[%s1399_s1 + $0xa0] sm:$0xff]   ;;  %v1089_v23 = vld [vmem:[%s1399_s1 + $0xa8] sm:$0xff]  }
   0x9   :  { %985 = vmatpush3.bf16.msra.mxu1 %v1073_v7  ;;  %958 = vmatprep.subr.bf16.mxu0 %v1074_v8  ;;  %v1090_v24 = vld [vmem:[%s1399_s1 + $0x70] sm:$0xff]   ;;  %v1094_v28 = vld [vmem:[%s1399_s1 + $0x78] sm:$0xff]   ;;  %v15_v32 = vld [vmem:[%s1400_s0] sm:$0xff] }
   0xa   :  { %986 = vmatprep.subr.bf16.mxu1 %v1075_v9  ;;  %v1091_v25 = vld [vmem:[%s1399_s1 + $0xf0] sm:$0xff]   ;;  %v1095_v29 = vld [vmem:[%s1399_s1 + $0xf8] sm:$0xff]   ;;  %v19_v33 = vld [vmem:[%s1400_s0 + $0x20] sm:$0xff] }
   0xb   :  { %v1092_v26 = vld [vmem:[%s1399_s1 + $0x30] sm:$0xff]   ;;  %v1096_v30 = vld [vmem:[%s1399_s1 + $0x38] sm:$0xff]   ;;  %v16_v34 = vld [vmem:[%s1400_s0 + $0x8] sm:$0xff]  ;;  %v855_v35 = vcombine.low %v15_v32, %v19_v33  ;;  %v856_v36 = vcombine.high %v15_v32, %v19_v33 }
   0xc   :  { %959 = vmatpush3.bf16.msra.mxu0 %v1076_v10  ;;  %v1093_v27 = vld [vmem:[%s1399_s1 + $0xb0] sm:$0xff]   ;;  %v1097_v31 = vld [vmem:[%s1399_s1 + $0xb8] sm:$0xff]   ;;  %v20_v37 = vld [vmem:[%s1400_s0 + $0x28] sm:$0xff] }
   0xd   :  { %987 = vmatpush3.bf16.msra.mxu1 %v1077_v11  ;;  %960 = vmatprep.subr.bf16.mxu0 %v1078_v12  ;;  %v857_v38 = vcombine.low %v16_v34, %v20_v37  ;;  %v858_v39 = vcombine.high %v16_v34, %v20_v37  ;;  %v1098_v40 = vld [vmem:[%s1399_s1 + $0x140] sm:$0xff]   ;;  %v1102_v44 = vld [vmem:[%s1399_s1 + $0x148] sm:$0xff]   ;;  %v1106_v48 = vld [vmem:[%s1399_s1 + $0x150] sm:$0xff]  }
   0xe   :  { %988 = vmatprep.subr.bf16.mxu1 %v1079_v13  ;;  %662 = vmatprep.mubr.bf16.mxu0 %v856_v36  ;;  %v1099_v41 = vld [vmem:[%s1399_s1 + $0x1c0] sm:$0xff]   ;;  %v1103_v45 = vld [vmem:[%s1399_s1 + $0x1c8] sm:$0xff]   ;;  %v1107_v49 = vld [vmem:[%s1399_s1 + $0x1d0] sm:$0xff]  }
   0xf   :  { %711 = vmatprep.mubr.bf16.mxu1 %v858_v39  ;;  %v1100_v42 = vld [vmem:[%s1399_s1 + $0x100] sm:$0xff]   ;;  %v1104_v46 = vld [vmem:[%s1399_s1 + $0x108] sm:$0xff]   ;;  %v1108_v50 = vld [vmem:[%s1399_s1 + $0x110] sm:$0xff]  }
  0x10   :  { %961 = vmatpush3.bf16.msra.mxu0 %v1080_v14  ;;  %v1101_v43 = vld [vmem:[%s1399_s1 + $0x180] sm:$0xff]   ;;  %v1105_v47 = vld [vmem:[%s1399_s1 + $0x188] sm:$0xff]   ;;  %v1109_v51 = vld [vmem:[%s1399_s1 + $0x190] sm:$0xff]  }
  0x11   :  { %989 = vmatpush3.bf16.msra.mxu1 %v1081_v15  ;;  %962 = vmatprep.subr.bf16.mxu0 %v1082_v16  ;;  %v1110_v52 = vld [vmem:[%s1399_s1 + $0x158] sm:$0xff]   ;;  %v1114_v56 = vld [vmem:[%s1399_s1 + $0x160] sm:$0xff]   ;;  %v1118_v63 = vld [vmem:[%s1399_s1 + $0x168] sm:$0xff]  }
  0x12   :  { %990 = vmatprep.subr.bf16.mxu1 %v1083_v17  ;;  %v1111_v53 = vld [vmem:[%s1399_s1 + $0x1d8] sm:$0xff]   ;;  %v1115_v57 = vld [vmem:[%s1399_s1 + $0x1e0] sm:$0xff]   ;;  %v1119_v1 = vld [vmem:[%s1399_s1 + $0x1e8] sm:$0xff]  }
  0x13   :  { %v1112_v54 = vld [vmem:[%s1399_s1 + $0x118] sm:$0xff]   ;;  %v1116_v58 = vld [vmem:[%s1399_s1 + $0x120] sm:$0xff]   ;;  %v1120_v2 = vld [vmem:[%s1399_s1 + $0x128] sm:$0xff]  }
  0x14   :  { %963 = vmatpush3.bf16.msra.mxu0 %v1084_v18  ;;  %v1113_v55 = vld [vmem:[%s1399_s1 + $0x198] sm:$0xff]   ;;  %v1117_v59 = vld [vmem:[%s1399_s1 + $0x1a0] sm:$0xff]   ;;  %v1121_v3 = vld [vmem:[%s1399_s1 + $0x1a8] sm:$0xff]  }
  0x15   :  { %991 = vmatpush3.bf16.msra.mxu1 %v1085_v19  ;;  %964 = vmatprep.subr.bf16.mxu0 %v1086_v20  ;;  %v23_v60 = vld [vmem:[%s1400_s0 + $0x40] sm:$0xff]  ;;  %v24_v4 = vld [vmem:[%s1400_s0 + $0x48] sm:$0xff]  ;;  %v1122_v8 = vld [vmem:[%s1399_s1 + $0x170] sm:$0xff]  }
  0x16   :  { %992 = vmatprep.subr.bf16.mxu1 %v1087_v21  ;;  %v27_v61 = vld [vmem:[%s1400_s0 + $0x60] sm:$0xff]  ;;  %v28_v5 = vld [vmem:[%s1400_s0 + $0x68] sm:$0xff]  ;;  %v1123_v9 = vld [vmem:[%s1399_s1 + $0x1f0] sm:$0xff]  }
  0x17   :  { %v864_v62 = vcombine.high %v23_v60, %v27_v61  ;;  %v863_v0 = vcombine.low %v23_v60, %v27_v61  ;;  %v866_v6 = vcombine.high %v24_v4, %v28_v5  ;;  %v865_v7 = vcombine.low %v24_v4, %v28_v5  ;;  %v1124_v10 = vld [vmem:[%s1399_s1 + $0x130] sm:$0xff]   ;;  %v1126_v12 = vld [vmem:[%s1399_s1 + $0x178] sm:$0xff]   ;;  %v854_v34 = vld [vmem:[%s1401_s2] ss:$0 sm:$0xff] }
  0x18   :  { %965 = vmatpush3.bf16.msra.mxu0 %v1088_v22  ;;  %v1125_v11 = vld [vmem:[%s1399_s1 + $0x1b0] sm:$0xff]   ;;  %v1127_v13 = vld [vmem:[%s1399_s1 + $0x1f8] sm:$0xff]  }
  0x19   :  { %993 = vmatpush3.bf16.msra.mxu1 %v1089_v23  ;;  %966 = vmatprep.subr.bf16.mxu0 %v1090_v24  ;;  %v1128_v14 = vld [vmem:[%s1399_s1 + $0x138] sm:$0xff]   ;;  %v17_v16 = vld [vmem:[%s1400_s0 + $0x10] sm:$0xff] }
  0x1a   :  { %994 = vmatprep.subr.bf16.mxu1 %v1091_v25  ;;  %v1129_v15 = vld [vmem:[%s1399_s1 + $0x1b8] sm:$0xff]   ;;  %v21_v17 = vld [vmem:[%s1400_s0 + $0x30] sm:$0xff] }
  0x1b   :  { %v18_v18 = vld [vmem:[%s1400_s0 + $0x18] sm:$0xff]  ;;  %v859_v20 = vcombine.low %v17_v16, %v21_v17  ;;  %v860_v21 = vcombine.high %v17_v16, %v21_v17  ;;  %v25_v24 = vld [vmem:[%s1400_s0 + $0x50] sm:$0xff] }
  0x1c   :  { %967 = vmatpush3.bf16.msra.mxu0 %v1092_v26  ;;  %v22_v19 = vld [vmem:[%s1400_s0 + $0x38] sm:$0xff]  ;;  %v29_v25 = vld [vmem:[%s1400_s0 + $0x70] sm:$0xff] }
  0x1d   :  { %995 = vmatpush3.bf16.msra.mxu1 %v1093_v27  ;;  %968 = vmatprep.subr.bf16.mxu0 %v1094_v28  ;;  %v861_v22 = vcombine.low %v18_v18, %v22_v19  ;;  %v862_v23 = vcombine.high %v18_v18, %v22_v19  ;;  %v26_v26 = vld [vmem:[%s1400_s0 + $0x58] sm:$0xff]  ;;  %v868_v27 = vcombine.high %v25_v24, %v29_v25 }
  0x1e   :  { %996 = vmatprep.subr.bf16.mxu1 %v1095_v29  ;;  %v30_v28 = vld [vmem:[%s1400_s0 + $0x78] sm:$0xff] }
  0x1f   :  { %v870_v29 = vcombine.high %v26_v26, %v30_v28 }
  0x20   :  { %969 = vmatpush3.bf16.msra.mxu0 %v1096_v30  ;;  %v867_v30 = vcombine.low %v25_v24, %v29_v25 }
  0x21   :  { %997 = vmatpush3.bf16.msra.mxu1 %v1097_v31  ;;  %1010 = vmatprep.subr.bf16.mxu0 %v1098_v40  ;;  %v869_v31 = vcombine.low %v26_v26, %v30_v28 }
  0x22   :  { %1038 = vmatprep.subr.bf16.mxu1 %v1099_v41 }
  0x23   :  { %663 = vmatmul.mubr.bf16.vlgmr.msra.gmra.mrb[0].mxu0 %v855_v35 }
  0x24   :  { %712 = vmatmul.mubr.bf16.vlgmr.msra.gmra.mrb[0].mxu1 %v857_v38  ;;  %1011 = vmatpush3.bf16.msra.mxu0 %v1100_v42 }
  0x25   :  { %1039 = vmatpush3.bf16.msra.mxu1 %v1101_v43  ;;  %1012 = vmatprep.subr.bf16.mxu0 %v1102_v44 }
  0x26   :  { %1040 = vmatprep.subr.bf16.mxu1 %v1103_v45  ;;  %670 = vmatprep.mubr.bf16.mxu0 %v864_v62 }
  0x27   :  { %719 = vmatprep.mubr.bf16.mxu1 %v866_v6 }
  0x28   :  { %1013 = vmatpush3.bf16.msra.mxu0 %v1104_v46 }
  0x29   :  { %1041 = vmatpush3.bf16.msra.mxu1 %v1105_v47  ;;  %1014 = vmatprep.subr.bf16.mxu0 %v1106_v48 }
  0x2a   :  { %1042 = vmatprep.subr.bf16.mxu1 %v1107_v49 }
  0x2b   :  { %671 = vmatmul.mubr.bf16.gmra.mrb[4].mxu0 %v863_v0 }
  0x2c   :  { %1015 = vmatpush3.bf16.msra.mxu0 %v1108_v50  ;;  %720 = vmatmul.mubr.bf16.gmra.mrb[4].mxu1 %v865_v7 }
  0x2d   :  { %1043 = vmatpush3.bf16.msra.mxu1 %v1109_v51  ;;  %1016 = vmatprep.subr.bf16.mxu0 %v1110_v52 }
  0x2e   :  { %1044 = vmatprep.subr.bf16.mxu1 %v1111_v53  ;;  %760 = vmatprep.mubr.bf16.mxu0 %v860_v21 }
  0x2f   :  { %809 = vmatprep.mubr.bf16.mxu1 %v862_v23 }
  0x30   :  { %1017 = vmatpush3.bf16.msra.mxu0 %v1112_v54 }
  0x31   :  { %1045 = vmatpush3.bf16.msra.mxu1 %v1113_v55  ;;  %1018 = vmatprep.subr.bf16.mxu0 %v1114_v56 }
  0x32   :  { %1046 = vmatprep.subr.bf16.mxu1 %v1115_v57 }
  0x34   :  { %1019 = vmatpush3.bf16.msra.mxu0 %v1116_v58 }
  0x35   :  { %1047 = vmatpush3.bf16.msra.mxu1 %v1117_v59  ;;  %1020 = vmatprep.subr.bf16.mxu0 %v1118_v63 }
  0x36   :  { %1048 = vmatprep.subr.bf16.mxu1 %v1119_v1 }
  0x38   :  { %1021 = vmatpush3.bf16.msra.mxu0 %v1120_v2 }
  0x39   :  { %1049 = vmatpush3.bf16.msra.mxu1 %v1121_v3  ;;  %1022 = vmatprep.subr.bf16.mxu0 %v1122_v8 }
  0x3a   :  { %1050 = vmatprep.subr.bf16.mxu1 %v1123_v9 }
  0x3c   :  { %1023 = vmatpush3.bf16.msra.mxu0 %v1124_v10 }
  0x3d   :  { %1051 = vmatpush3.bf16.msra.mxu1 %v1125_v11  ;;  %1024 = vmatprep.subr.bf16.mxu0 %v1126_v12 }
  0x3e   :  { %1052 = vmatprep.subr.bf16.mxu1 %v1127_v13 }
  0x40   :  { %1025 = vmatpush3.bf16.msra.mxu0 %v1128_v14 }
  0x41   :  { %1053 = vmatpush3.bf16.msra.mxu1 %v1129_v15 }
  0x43   :  { %761 = vmatmul.mubr.bf16.vlgmr.msra.gmra.mrb[8].mxu0 %v859_v20 }
  0x44   :  { %810 = vmatmul.mubr.bf16.vlgmr.msra.gmra.mrb[8].mxu1 %v861_v22  ;;  %768 = vmatprep.mubr.bf16.mxu0 %v868_v27 }
  0x45   :  { %817 = vmatprep.mubr.bf16.mxu1 %v870_v29 }
  0x4b   :  { %769 = vmatmul.mubr.bf16.gmra.mrb[12].mxu0 %v867_v30 }
  0x4c   :  { %818 = vmatmul.mubr.bf16.gmra.mrb[12].mxu1 %v869_v31 }
  0xf6   :  { %v970_v32 = vpop.f32.mrb[0].mxu0 }
  0xf7   :  { %v998_v33 = vpop.f32.mrb[0].mxu1  ;;  %v971_v35 = vpop.f32.mrb[1].mxu0 }
  0xf8   :  { %v972_v36 = vadd.f32 %v971_v35, %v970_v32  ;;  %v999_v37 = vpop.f32.mrb[1].mxu1  ;;  %v973_v38 = vpop.f32.mrb[2].mxu0 }
  0xf9   :  { %v1000_v39 = vadd.f32 %v999_v37, %v998_v33  ;;  %v1001_v40 = vpop.f32.mrb[2].mxu1  ;;  %v974_v41 = vpop.f32.mrb[3].mxu0 }
  0xfa   :  { %v665_v42 = vadd.f32 %v972_v36, %v854_v34  ;;  %v975_v43 = vadd.f32 %v974_v41, %v973_v38  ;;  %v1002_v44 = vpop.f32.mrb[3].mxu1 }
  0xfb   :  { %v1003_v45 = vadd.f32 %v1002_v44, %v1001_v40 }
  0xfc   :  { %v714_v46 = vadd.f32 %v1000_v39, %v665_v42  ;;  %v668_v47 = vadd.f32 %v975_v43, %v854_v34 }
  0xfe   :  { %v717_v48 = vadd.f32 %v1003_v45, %v668_v47  ;;  %v976_v49 = vpop.f32.mrb[4].mxu0 }
  0xff   :  { %v977_v50 = vpop.f32.mrb[5].mxu0  ;;  %v1004_v56 = vpop.f32.mrb[4].mxu1 }
 0x100   :  { %v978_v51 = vadd.f32 %v977_v50, %v976_v49  ;;  %v979_v52 = vpop.f32.mrb[6].mxu0  ;;  %v1005_v57 = vpop.f32.mrb[5].mxu1 }
 0x101   :  { %v980_v53 = vpop.f32.mrb[7].mxu0  ;;  %v1006_v59 = vadd.f32 %v1005_v57, %v1004_v56  ;;  %v1007_v60 = vpop.f32.mrb[6].mxu1 }
 0x102   :  { %v981_v54 = vadd.f32 %v980_v53, %v979_v52  ;;  %v673_v55 = vadd.f32 %v978_v51, %v854_v34  ;;  %v1008_v61 = vpop.f32.mrb[7].mxu1 }
 0x103   :  { %v1009_v63 = vadd.f32 %v1008_v61, %v1007_v60 }
 0x104   :  { %v676_v58 = vadd.f32 %v981_v54, %v854_v34  ;;  %v722_v62 = vadd.f32 %v1006_v59, %v673_v55 }
 0x106   :  { %v725_v0 = vadd.f32 %v1009_v63, %v676_v58 }
 0x116   :  { %v1026_v1 = vpop.f32.mrb[8].mxu0 }
 0x117   :  { %v1054_v2 = vpop.f32.mrb[8].mxu1  ;;  %v1027_v3 = vpop.f32.mrb[9].mxu0 }
 0x118   :  { %v1055_v4 = vpop.f32.mrb[9].mxu1  ;;  %v1028_v5 = vadd.f32 %v1027_v3, %v1026_v1  ;;  %v1029_v7 = vpop.f32.mrb[10].mxu0 }
 0x119   :  { %v1056_v6 = vadd.f32 %v1055_v4, %v1054_v2  ;;  %v1057_v8 = vpop.f32.mrb[10].mxu1  ;;  %v1030_v9 = vpop.f32.mrb[11].mxu0 }
 0x11a   :  { %v1058_v10 = vpop.f32.mrb[11].mxu1  ;;  %v763_v11 = vadd.f32 %v1028_v5, %v714_v46  ;;  %v1031_v12 = vadd.f32 %v1030_v9, %v1029_v7 }
 0x11b   :  { %v1059_v13 = vadd.f32 %v1058_v10, %v1057_v8 }
 0x11c   :  { %v812_v14 = vadd.f32 %v1056_v6, %v763_v11  ;;  %v766_v15 = vadd.f32 %v1031_v12, %v717_v48 }
 0x11e   :  { %v815_v16 = vadd.f32 %v1059_v13, %v766_v15  ;;  %v1032_v17 = vpop.f32.mrb[12].mxu0  ;;  %v826_v21 = vmax.f32 %v812_v14, 0.0 }
 0x11f   :  { %v1060_v18 = vpop.f32.mrb[12].mxu1  ;;  %v1033_v19 = vpop.f32.mrb[13].mxu0 }
 0x120   :  { %v1061_v20 = vpop.f32.mrb[13].mxu1  ;;  %v827_v22 = vmax.f32 %v815_v16, 0.0  ;;  %v1034_v23 = vadd.f32 %v1033_v19, %v1032_v17  ;;  %v1035_v25 = vpop.f32.mrb[14].mxu0 }
 0x121   :  { %v1062_v24 = vadd.f32 %v1061_v20, %v1060_v18  ;;  %v1063_v26 = vpop.f32.mrb[14].mxu1  ;;  %v1036_v27 = vpop.f32.mrb[15].mxu0 }
 0x122   :  { %v1064_v28 = vpop.f32.mrb[15].mxu1  ;;  %v946_v29 = vpack.c.bf16 %v827_v22, %v826_v21  ;;  %v771_v30 = vadd.f32 %v1034_v23, %v722_v62  ;;  %v1037_v31 = vadd.f32 %v1036_v27, %v1035_v25 }
 0x123   :  { %v1065_v32 = vadd.f32 %v1064_v28, %v1063_v26 }
 0x124   :  { %947 = vst [vmem:[%s1402_s3] sm:$0xff] %v946_v29   ;;  %v820_v33 = vadd.f32 %v1062_v24, %v771_v30  ;;  %v774_v34 = vadd.f32 %v1037_v31, %v725_v0 }
 0x126   :  { %v823_v35 = vadd.f32 %v1065_v32, %v774_v34  ;;  %v828_v36 = vmax.f32 %v820_v33, 0.0 }
 0x128   :  { %v829_v37 = vmax.f32 %v823_v35, 0.0 }
 0x12a   :  { %v951_v38 = vpack.c.bf16 %v829_v37, %v828_v36 }
 0x12c   :  { %953 = vst [vmem:[%s1402_s3 + $0x8] sm:$0xff] %v951_v38  }

// kernel: _lambda_.9
= control target key start
LH: loop header
LB: loop body
LE: loop exit
PB: predicated region body
PF: predicated region fallthrough
CT: control target
= control target key end

     0   :  { %s3947_s1 = inlined_call_operand.vmem [shape: bf16[2048,256], index: 1, kind: input, shape index: {}]   ;;  %s3948_s0 = inlined_call_operand.vmem [shape: bf16[16,2048], index: 0, kind: input, shape index: {}]   ;;  %s3949_s3 = inlined_call_operand.vmem [shape: bf16[256,128], index: 3, kind: input, shape index: {}]   ;;  %s3950_s2 = inlined_call_operand.vmem [shape: f32[1,256], index: 2, kind: input, shape index: {}]   ;;  %s3951_s4 = inlined_call_operand.vmem [shape: f32[1,128], index: 4, kind: input, shape index: {}]   ;;  %s3952_s5 = inlined_call_operand.vmem [shape: f32[1,128], index: 5, kind: input, shape index: {}]   ;;  %s3953_s6 = inlined_call_operand.vmem [shape: f32[16,128], index: 6, kind: output, shape index: {}]  }
   0x1   :  { %v2577_v0 = vld [vmem:[%s3947_s1 + $0x4] ss:$8 sps:$4 sm:$0xff]   ;;  %v2581_v2 = vld [vmem:[%s3947_s1] ss:$8 sps:$4 sm:$0xff]   ;;  %v2583_v4 = vld [vmem:[%s3947_s1 + $0x14] ss:$8 sps:$4 sm:$0xff]  }
   0x2   :  { %v2579_v1 = vld [vmem:[%s3947_s1 + $0x404] ss:$8 sps:$4 sm:$0xff]   ;;  %1668 = vmatprep.subr.bf16.mxu1 %v2577_v0  ;;  %v2582_v3 = vld [vmem:[%s3947_s1 + $0x400] ss:$8 sps:$4 sm:$0xff]   ;;  %v2585_v5 = vld [vmem:[%s3947_s1 + $0x414] ss:$8 sps:$4 sm:$0xff]  }
   0x3   :  { %1840 = vmatprep.subr.bf16.mxu0 %v2579_v1  ;;  %1669 = vmatpush1.bf16.msra.mxu1 %v2581_v2  ;;  %v2587_v6 = vld [vmem:[%s3947_s1 + $0x10] ss:$8 sps:$4 sm:$0xff]   ;;  %v2589_v8 = vld [vmem:[%s3947_s1 + $0x24] ss:$8 sps:$4 sm:$0xff]   ;;  %v2593_v10 = vld [vmem:[%s3947_s1 + $0x20] ss:$8 sps:$4 sm:$0xff]  }
   0x4   :  { %1841 = vmatpush1.bf16.msra.mxu0 %v2582_v3  ;;  %1670 = vmatprep.subr.bf16.mxu1 %v2583_v4  ;;  %v2588_v7 = vld [vmem:[%s3947_s1 + $0x410] ss:$8 sps:$4 sm:$0xff]   ;;  %v2591_v9 = vld [vmem:[%s3947_s1 + $0x424] ss:$8 sps:$4 sm:$0xff]   ;;  %v2594_v11 = vld [vmem:[%s3947_s1 + $0x420] ss:$8 sps:$4 sm:$0xff]  }
   0x5   :  { %1842 = vmatprep.subr.bf16.mxu0 %v2585_v5  ;;  %v2595_v12 = vld [vmem:[%s3947_s1 + $0x34] ss:$8 sps:$4 sm:$0xff]   ;;  %v2599_v14 = vld [vmem:[%s3947_s1 + $0x30] ss:$8 sps:$4 sm:$0xff]   ;;  %v2601_v16 = vld [vmem:[%s3947_s1 + $0x44] ss:$8 sps:$4 sm:$0xff]  }
   0x6   :  { %v2597_v13 = vld [vmem:[%s3947_s1 + $0x434] ss:$8 sps:$4 sm:$0xff]   ;;  %v2600_v15 = vld [vmem:[%s3947_s1 + $0x430] ss:$8 sps:$4 sm:$0xff]   ;;  %v2603_v17 = vld [vmem:[%s3947_s1 + $0x444] ss:$8 sps:$4 sm:$0xff]  }
   0x7   :  { %1671 = vmatpush1.bf16.msra.mxu1 %v2587_v6  ;;  %v2605_v18 = vld [vmem:[%s3947_s1 + $0x40] ss:$8 sps:$4 sm:$0xff]   ;;  %v2607_v20 = vld [vmem:[%s3947_s1 + $0x54] ss:$8 sps:$4 sm:$0xff]   ;;  %v2611_v22 = vld [vmem:[%s3947_s1 + $0x50] ss:$8 sps:$4 sm:$0xff]  }
   0x8   :  { %1843 = vmatpush1.bf16.msra.mxu0 %v2588_v7  ;;  %1672 = vmatprep.subr.bf16.mxu1 %v2589_v8  ;;  %v2606_v19 = vld [vmem:[%s3947_s1 + $0x440] ss:$8 sps:$4 sm:$0xff]   ;;  %v2609_v21 = vld [vmem:[%s3947_s1 + $0x454] ss:$8 sps:$4 sm:$0xff]   ;;  %v2612_v23 = vld [vmem:[%s3947_s1 + $0x450] ss:$8 sps:$4 sm:$0xff]  }
   0x9   :  { %1844 = vmatprep.subr.bf16.mxu0 %v2591_v9  ;;  %v2613_v24 = vld [vmem:[%s3947_s1 + $0x64] ss:$8 sps:$4 sm:$0xff]   ;;  %v2617_v26 = vld [vmem:[%s3947_s1 + $0x60] ss:$8 sps:$4 sm:$0xff]   ;;  %v2619_v28 = vld [vmem:[%s3947_s1 + $0x74] ss:$8 sps:$4 sm:$0xff]  }
   0xa   :  { %v2615_v25 = vld [vmem:[%s3947_s1 + $0x464] ss:$8 sps:$4 sm:$0xff]   ;;  %v2618_v27 = vld [vmem:[%s3947_s1 + $0x460] ss:$8 sps:$4 sm:$0xff]   ;;  %v2621_v29 = vld [vmem:[%s3947_s1 + $0x474] ss:$8 sps:$4 sm:$0xff]  }
   0xb   :  { %1673 = vmatpush1.bf16.msra.mxu1 %v2593_v10  ;;  %v2623_v30 = vld [vmem:[%s3947_s1 + $0x70] ss:$8 sps:$4 sm:$0xff]   ;;  %v2625_v32 = vld [vmem:[%s3947_s1 + $0x84] ss:$8 sps:$4 sm:$0xff]   ;;  %v2629_v34 = vld [vmem:[%s3947_s1 + $0x80] ss:$8 sps:$4 sm:$0xff]  }
   0xc   :  { %1845 = vmatpush1.bf16.msra.mxu0 %v2594_v11  ;;  %1674 = vmatprep.subr.bf16.mxu1 %v2595_v12  ;;  %v2624_v31 = vld [vmem:[%s3947_s1 + $0x470] ss:$8 sps:$4 sm:$0xff]   ;;  %v2627_v33 = vld [vmem:[%s3947_s1 + $0x484] ss:$8 sps:$4 sm:$0xff]   ;;  %v2630_v35 = vld [vmem:[%s3947_s1 + $0x480] ss:$8 sps:$4 sm:$0xff]  }
   0xd   :  { %1846 = vmatprep.subr.bf16.mxu0 %v2597_v13  ;;  %v2631_v36 = vld [vmem:[%s3947_s1 + $0x94] ss:$8 sps:$4 sm:$0xff]   ;;  %v2635_v38 = vld [vmem:[%s3947_s1 + $0x90] ss:$8 sps:$4 sm:$0xff]   ;;  %v2637_v40 = vld [vmem:[%s3947_s1 + $0xa4] ss:$8 sps:$4 sm:$0xff]  }
   0xe   :  { %v2633_v37 = vld [vmem:[%s3947_s1 + $0x494] ss:$8 sps:$4 sm:$0xff]   ;;  %v2636_v39 = vld [vmem:[%s3947_s1 + $0x490] ss:$8 sps:$4 sm:$0xff]   ;;  %v2639_v41 = vld [vmem:[%s3947_s1 + $0x4a4] ss:$8 sps:$4 sm:$0xff]  }
   0xf   :  { %1675 = vmatpush1.bf16.msra.mxu1 %v2599_v14  ;;  %v2641_v42 = vld [vmem:[%s3947_s1 + $0xa0] ss:$8 sps:$4 sm:$0xff]   ;;  %v2643_v44 = vld [vmem:[%s3947_s1 + $0xb4] ss:$8 sps:$4 sm:$0xff]   ;;  %v2647_v46 = vld [vmem:[%s3947_s1 + $0xb0] ss:$8 sps:$4 sm:$0xff]  }
  0x10   :  { %1847 = vmatpush1.bf16.msra.mxu0 %v2600_v15  ;;  %1676 = vmatprep.subr.bf16.mxu1 %v2601_v16  ;;  %v2642_v43 = vld [vmem:[%s3947_s1 + $0x4a0] ss:$8 sps:$4 sm:$0xff]   ;;  %v2645_v45 = vld [vmem:[%s3947_s1 + $0x4b4] ss:$8 sps:$4 sm:$0xff]   ;;  %v2648_v47 = vld [vmem:[%s3947_s1 + $0x4b0] ss:$8 sps:$4 sm:$0xff]  }
  0x11   :  { %1848 = vmatprep.subr.bf16.mxu0 %v2603_v17  ;;  %v24_v48 = vld [vmem:[%s3948_s0] sm:$0xff]  ;;  %v2655_v58 = vld [vmem:[%s3947_s1 + $0xd4] ss:$8 sps:$4 sm:$0xff]   ;;  %v2659_v60 = vld [vmem:[%s3947_s1 + $0xd0] ss:$8 sps:$4 sm:$0xff]  }
  0x12   :  { %v32_v49 = vld [vmem:[%s3948_s0 + $0x40] sm:$0xff]  ;;  %v2657_v59 = vld [vmem:[%s3947_s1 + $0x4d4] ss:$8 sps:$4 sm:$0xff]   ;;  %v2660_v61 = vld [vmem:[%s3947_s1 + $0x4d0] ss:$8 sps:$4 sm:$0xff]  }
  0x13   :  { %1677 = vmatpush1.bf16.msra.mxu1 %v2605_v18  ;;  %v2649_v50 = vld [vmem:[%s3947_s1 + $0xc4] ss:$8 sps:$4 sm:$0xff]   ;;  %v2235_v52 = vcombine.high %v24_v48, %v32_v49  ;;  %v2653_v56 = vld [vmem:[%s3947_s1 + $0xc0] ss:$8 sps:$4 sm:$0xff]   ;;  %v2667_v2 = vld [vmem:[%s3947_s1 + $0xf4] ss:$8 sps:$4 sm:$0xff]   ;;  %v2234_v8 = vcombine.low %v24_v48, %v32_v49 }
  0x14   :  { %1849 = vmatpush1.bf16.msra.mxu0 %v2606_v19  ;;  %1678 = vmatprep.subr.bf16.mxu1 %v2607_v20  ;;  %v2651_v51 = vld [vmem:[%s3947_s1 + $0x4c4] ss:$8 sps:$4 sm:$0xff]   ;;  %v2654_v57 = vld [vmem:[%s3947_s1 + $0x4c0] ss:$8 sps:$4 sm:$0xff]   ;;  %v2669_v3 = vld [vmem:[%s3947_s1 + $0x4f4] ss:$8 sps:$4 sm:$0xff]  }
  0x15   :  { %1850 = vmatprep.subr.bf16.mxu0 %v2609_v21  ;;  %v28_v53 = vld [vmem:[%s3948_s0 + $0x20] sm:$0xff]  ;;  %1700 = vmatprep.mubr.bf16.mxu1 %v2235_v52  ;;  %v2671_v4 = vld [vmem:[%s3947_s1 + $0xf0] ss:$8 sps:$4 sm:$0xff]   ;;  %v2681_v12 = vld [vmem:[%s3947_s1 + $0x114] ss:$8 sps:$4 sm:$0xff]  }
  0x16   :  { %v36_v54 = vld [vmem:[%s3948_s0 + $0x60] sm:$0xff]  ;;  %v2672_v5 = vld [vmem:[%s3947_s1 + $0x4f0] ss:$8 sps:$4 sm:$0xff]   ;;  %v2684_v13 = vld [vmem:[%s3947_s1 + $0x514] ss:$8 sps:$4 sm:$0xff]  }
  0x17   :  { %1679 = vmatpush1.bf16.msra.mxu1 %v2611_v22  ;;  %v2243_v55 = vcombine.high %v28_v53, %v36_v54  ;;  %v2661_v62 = vld [vmem:[%s3947_s1 + $0xe4] ss:$8 sps:$4 sm:$0xff]   ;;  %v2665_v0 = vld [vmem:[%s3947_s1 + $0xe0] ss:$8 sps:$4 sm:$0xff]   ;;  %v2242_v10 = vcombine.low %v28_v53, %v36_v54  ;;  %v2679_v14 = vld [vmem:[%s3947_s1 + $0x110] ss:$8 sps:$4 sm:$0xff]  }
  0x18   :  { %1851 = vmatpush1.bf16.msra.mxu0 %v2612_v23  ;;  %1680 = vmatprep.subr.bf16.mxu1 %v2613_v24  ;;  %v2663_v63 = vld [vmem:[%s3947_s1 + $0x4e4] ss:$8 sps:$4 sm:$0xff]   ;;  %v2666_v1 = vld [vmem:[%s3947_s1 + $0x4e0] ss:$8 sps:$4 sm:$0xff]   ;;  %v2682_v15 = vld [vmem:[%s3947_s1 + $0x510] ss:$8 sps:$4 sm:$0xff]  }
  0x19   :  { %1852 = vmatprep.subr.bf16.mxu0 %v2615_v25  ;;  %1872 = vmatprep.mubr.bf16.mxu0 %v2243_v55  ;;  %v2675_v6 = vld [vmem:[%s3947_s1 + $0x104] ss:$8 sps:$4 sm:$0xff]   ;;  %v2673_v9 = vld [vmem:[%s3947_s1 + $0x100] ss:$8 sps:$4 sm:$0xff]   ;;  %v2693_v20 = vld [vmem:[%s3947_s1 + $0x134] ss:$8 sps:$4 sm:$0xff]  }
  0x1a   :  { %v2678_v7 = vld [vmem:[%s3947_s1 + $0x504] ss:$8 sps:$4 sm:$0xff]   ;;  %v2676_v11 = vld [vmem:[%s3947_s1 + $0x500] ss:$8 sps:$4 sm:$0xff]   ;;  %v2696_v21 = vld [vmem:[%s3947_s1 + $0x534] ss:$8 sps:$4 sm:$0xff]  }
  0x1b   :  { %1681 = vmatpush1.bf16.msra.mxu1 %v2617_v26  ;;  %v2687_v16 = vld [vmem:[%s3947_s1 + $0x124] ss:$8 sps:$4 sm:$0xff]   ;;  %v2685_v18 = vld [vmem:[%s3947_s1 + $0x120] ss:$8 sps:$4 sm:$0xff]   ;;  %v2691_v22 = vld [vmem:[%s3947_s1 + $0x130] ss:$8 sps:$4 sm:$0xff]  }
  0x1c   :  { %1853 = vmatpush1.bf16.msra.mxu0 %v2618_v27  ;;  %1682 = vmatprep.subr.bf16.mxu1 %v2619_v28  ;;  %v2690_v17 = vld [vmem:[%s3947_s1 + $0x524] ss:$8 sps:$4 sm:$0xff]   ;;  %v2688_v19 = vld [vmem:[%s3947_s1 + $0x520] ss:$8 sps:$4 sm:$0xff]   ;;  %v2694_v23 = vld [vmem:[%s3947_s1 + $0x530] ss:$8 sps:$4 sm:$0xff]  }
  0x1d   :  { %1854 = vmatprep.subr.bf16.mxu0 %v2621_v29  ;;  %v2699_v24 = vld [vmem:[%s3947_s1 + $0x144] ss:$8 sps:$4 sm:$0xff]   ;;  %v2697_v26 = vld [vmem:[%s3947_s1 + $0x140] ss:$8 sps:$4 sm:$0xff]   ;;  %v2705_v28 = vld [vmem:[%s3947_s1 + $0x154] ss:$8 sps:$4 sm:$0xff]  }
  0x1e   :  { %v2702_v25 = vld [vmem:[%s3947_s1 + $0x544] ss:$8 sps:$4 sm:$0xff]   ;;  %v2700_v27 = vld [vmem:[%s3947_s1 + $0x540] ss:$8 sps:$4 sm:$0xff]   ;;  %v2708_v29 = vld [vmem:[%s3947_s1 + $0x554] ss:$8 sps:$4 sm:$0xff]  }
  0x1f   :  { %1683 = vmatpush1.bf16.msra.mxu1 %v2623_v30  ;;  %v2703_v30 = vld [vmem:[%s3947_s1 + $0x150] ss:$8 sps:$4 sm:$0xff]   ;;  %v2721_v48 = vld [vmem:[%s3947_s1 + $0x180] ss:$8 sps:$4 sm:$0xff]   ;;  %v2735_v54 = vld [vmem:[%s3947_s1 + $0x1a4] ss:$8 sps:$4 sm:$0xff]  }
  0x20   :  { %1855 = vmatpush1.bf16.msra.mxu0 %v2624_v31  ;;  %1684 = vmatprep.subr.bf16.mxu1 %v2625_v32  ;;  %v2706_v31 = vld [vmem:[%s3947_s1 + $0x550] ss:$8 sps:$4 sm:$0xff]   ;;  %v2711_v32 = vld [vmem:[%s3947_s1 + $0x164] ss:$8 sps:$4 sm:$0xff]   ;;  %v2724_v49 = vld [vmem:[%s3947_s1 + $0x580] ss:$8 sps:$4 sm:$0xff]  }
  0x21   :  { %1856 = vmatprep.subr.bf16.mxu0 %v2627_v33  ;;  %v2714_v33 = vld [vmem:[%s3947_s1 + $0x564] ss:$8 sps:$4 sm:$0xff]   ;;  %v2727_v52 = vld [vmem:[%s3947_s1 + $0x190] ss:$8 sps:$4 sm:$0xff]  }
  0x22   :  { %v2730_v53 = vld [vmem:[%s3947_s1 + $0x590] ss:$8 sps:$4 sm:$0xff]   ;;  %v2738_v55 = vld [vmem:[%s3947_s1 + $0x5a4] ss:$8 sps:$4 sm:$0xff]  }
  0x23   :  { %1685 = vmatpush1.bf16.msra.mxu1 %v2629_v34  ;;  %v2709_v34 = vld [vmem:[%s3947_s1 + $0x160] ss:$8 sps:$4 sm:$0xff]  }
  0x24   :  { %1857 = vmatpush1.bf16.msra.mxu0 %v2630_v35  ;;  %1686 = vmatprep.subr.bf16.mxu1 %v2631_v36  ;;  %v2712_v35 = vld [vmem:[%s3947_s1 + $0x560] ss:$8 sps:$4 sm:$0xff]  }
  0x25   :  { %1858 = vmatprep.subr.bf16.mxu0 %v2633_v37  ;;  %v3311_v36 = vld [vmem:[%s3948_s0 + $0x8] sm:$0xff] }
  0x26   :  { %v3316_v37 = vld [vmem:[%s3948_s0 + $0x48] sm:$0xff] }
  0x27   :  { %1687 = vmatpush1.bf16.msra.mxu1 %v2635_v38  ;;  %v2717_v38 = vld [vmem:[%s3947_s1 + $0x174] ss:$8 sps:$4 sm:$0xff]  }
  0x28   :  { %1859 = vmatpush1.bf16.msra.mxu0 %v2636_v39  ;;  %1688 = vmatprep.subr.bf16.mxu1 %v2637_v40  ;;  %v2720_v39 = vld [vmem:[%s3947_s1 + $0x574] ss:$8 sps:$4 sm:$0xff]   ;;  %v2237_v40 = vcombine.high %v3311_v36, %v3316_v37 }
  0x29   :  { %1860 = vmatprep.subr.bf16.mxu0 %v2639_v41  ;;  %v3329_v41 = vld [vmem:[%s3948_s0 + $0x28] sm:$0xff] }
  0x2b   :  { %1689 = vmatpush1.bf16.msra.mxu1 %v2641_v42  ;;  %v3334_v42 = vld [vmem:[%s3948_s0 + $0x68] sm:$0xff] }
  0x2c   :  { %1861 = vmatpush1.bf16.msra.mxu0 %v2642_v43  ;;  %1690 = vmatprep.subr.bf16.mxu1 %v2643_v44  ;;  %v2245_v43 = vcombine.high %v3329_v41, %v3334_v42  ;;  %v2715_v44 = vld [vmem:[%s3947_s1 + $0x170] ss:$8 sps:$4 sm:$0xff]  }
  0x2d   :  { %1862 = vmatprep.subr.bf16.mxu0 %v2645_v45  ;;  %v2718_v45 = vld [vmem:[%s3947_s1 + $0x570] ss:$8 sps:$4 sm:$0xff]  }
  0x2f   :  { %1691 = vmatpush1.bf16.msra.mxu1 %v2647_v46  ;;  %v2723_v46 = vld [vmem:[%s3947_s1 + $0x184] ss:$8 sps:$4 sm:$0xff]  }
  0x30   :  { %1863 = vmatpush1.bf16.msra.mxu0 %v2648_v47  ;;  %1692 = vmatprep.subr.bf16.mxu1 %v2649_v50  ;;  %v2726_v47 = vld [vmem:[%s3947_s1 + $0x584] ss:$8 sps:$4 sm:$0xff]   ;;  %v2729_v50 = vld [vmem:[%s3947_s1 + $0x194] ss:$8 sps:$4 sm:$0xff]  }
  0x31   :  { %1864 = vmatprep.subr.bf16.mxu0 %v2651_v51  ;;  %v2732_v51 = vld [vmem:[%s3947_s1 + $0x594] ss:$8 sps:$4 sm:$0xff]  }
  0x33   :  { %1693 = vmatpush1.bf16.msra.mxu1 %v2653_v56  ;;  %v2733_v56 = vld [vmem:[%s3947_s1 + $0x1a0] ss:$8 sps:$4 sm:$0xff]  }
  0x34   :  { %1865 = vmatpush1.bf16.msra.mxu0 %v2654_v57  ;;  %1694 = vmatprep.subr.bf16.mxu1 %v2655_v58  ;;  %v2736_v57 = vld [vmem:[%s3947_s1 + $0x5a0] ss:$8 sps:$4 sm:$0xff]   ;;  %v2741_v58 = vld [vmem:[%s3947_s1 + $0x1b4] ss:$8 sps:$4 sm:$0xff]  }
  0x35   :  { %1866 = vmatprep.subr.bf16.mxu0 %v2657_v59  ;;  %v2744_v59 = vld [vmem:[%s3947_s1 + $0x5b4] ss:$8 sps:$4 sm:$0xff]  }
  0x37   :  { %1695 = vmatpush1.bf16.msra.mxu1 %v2659_v60  ;;  %v2739_v60 = vld [vmem:[%s3947_s1 + $0x1b0] ss:$8 sps:$4 sm:$0xff]  }
  0x38   :  { %1867 = vmatpush1.bf16.msra.mxu0 %v2660_v61  ;;  %1696 = vmatprep.subr.bf16.mxu1 %v2661_v62  ;;  %v2742_v61 = vld [vmem:[%s3947_s1 + $0x5b0] ss:$8 sps:$4 sm:$0xff]   ;;  %v2747_v62 = vld [vmem:[%s3947_s1 + $0x1c4] ss:$8 sps:$4 sm:$0xff]  }
  0x39   :  { %1868 = vmatprep.subr.bf16.mxu0 %v2663_v63  ;;  %v2750_v63 = vld [vmem:[%s3947_s1 + $0x5c4] ss:$8 sps:$4 sm:$0xff]  }
  0x3b   :  { %1697 = vmatpush1.bf16.msra.mxu1 %v2665_v0  ;;  %v2745_v0 = vld [vmem:[%s3947_s1 + $0x1c0] ss:$8 sps:$4 sm:$0xff]  }
  0x3c   :  { %1869 = vmatpush1.bf16.msra.mxu0 %v2666_v1  ;;  %1698 = vmatprep.subr.bf16.mxu1 %v2667_v2  ;;  %v2748_v1 = vld [vmem:[%s3947_s1 + $0x5c0] ss:$8 sps:$4 sm:$0xff]   ;;  %v2753_v2 = vld [vmem:[%s3947_s1 + $0x1d4] ss:$8 sps:$4 sm:$0xff]  }
  0x3d   :  { %1870 = vmatprep.subr.bf16.mxu0 %v2669_v3  ;;  %v2756_v3 = vld [vmem:[%s3947_s1 + $0x5d4] ss:$8 sps:$4 sm:$0xff]  }
  0x3f   :  { %1699 = vmatpush1.bf16.msra.mxu1 %v2671_v4  ;;  %v2751_v4 = vld [vmem:[%s3947_s1 + $0x1d0] ss:$8 sps:$4 sm:$0xff]  }
  0x40   :  { %1871 = vmatpush1.bf16.msra.mxu0 %v2672_v5  ;;  %1711 = vmatprep.subr.bf16.mxu1 %v2675_v6  ;;  %v2754_v5 = vld [vmem:[%s3947_s1 + $0x5d0] ss:$8 sps:$4 sm:$0xff]   ;;  %v2759_v6 = vld [vmem:[%s3947_s1 + $0x1e4] ss:$8 sps:$4 sm:$0xff]  }
  0x41   :  { %1883 = vmatprep.subr.bf16.mxu0 %v2678_v7  ;;  %v2762_v7 = vld [vmem:[%s3947_s1 + $0x5e4] ss:$8 sps:$4 sm:$0xff]  }
  0x42   :  { %1701 = vmatmul.mubr.bf16.vlgmr.msra.gmra.mrb[0].mxu1 %v2234_v8  ;;  %v2757_v8 = vld [vmem:[%s3947_s1 + $0x1e0] ss:$8 sps:$4 sm:$0xff]  }
  0x43   :  { %1873 = vmatmul.mubr.bf16.vlgmr.msra.gmra.mrb[0].mxu0 %v2242_v10  ;;  %1712 = vmatpush1.bf16.msra.mxu1 %v2673_v9  ;;  %v2760_v9 = vld [vmem:[%s3947_s1 + $0x5e0] ss:$8 sps:$4 sm:$0xff]   ;;  %v2765_v10 = vld [vmem:[%s3947_s1 + $0x1f4] ss:$8 sps:$4 sm:$0xff]  }
  0x44   :  { %1884 = vmatpush1.bf16.msra.mxu0 %v2676_v11  ;;  %1713 = vmatprep.subr.bf16.mxu1 %v2681_v12  ;;  %v2768_v11 = vld [vmem:[%s3947_s1 + $0x5f4] ss:$8 sps:$4 sm:$0xff]   ;;  %v2763_v12 = vld [vmem:[%s3947_s1 + $0x1f0] ss:$8 sps:$4 sm:$0xff]  }
  0x45   :  { %1885 = vmatprep.subr.bf16.mxu0 %v2684_v13  ;;  %1743 = vmatprep.mubr.bf16.mxu1 %v2237_v40  ;;  %v2766_v13 = vld [vmem:[%s3947_s1 + $0x5f0] ss:$8 sps:$4 sm:$0xff]   ;;  %v2793_v40 = vld [vmem:[%s3947_s1 + $0x240] ss:$8 sps:$4 sm:$0xff]  }
  0x46   :  { %1915 = vmatprep.mubr.bf16.mxu0 %v2245_v43  ;;  %v2804_v43 = vld [vmem:[%s3947_s1 + $0x654] ss:$8 sps:$4 sm:$0xff]  }
  0x47   :  { %1714 = vmatpush1.bf16.msra.mxu1 %v2679_v14  ;;  %v2771_v14 = vld [vmem:[%s3947_s1 + $0x204] ss:$8 sps:$4 sm:$0xff]  }
  0x48   :  { %1886 = vmatpush1.bf16.msra.mxu0 %v2682_v15  ;;  %1715 = vmatprep.subr.bf16.mxu1 %v2687_v16  ;;  %v2774_v15 = vld [vmem:[%s3947_s1 + $0x604] ss:$8 sps:$4 sm:$0xff]   ;;  %v2236_v16 = vcombine.low %v3311_v36, %v3316_v37  ;;  %v2787_v36 = vld [vmem:[%s3947_s1 + $0x230] ss:$8 sps:$4 sm:$0xff]  }
  0x49   :  { %1887 = vmatprep.subr.bf16.mxu0 %v2690_v17  ;;  %v2769_v17 = vld [vmem:[%s3947_s1 + $0x200] ss:$8 sps:$4 sm:$0xff]   ;;  %v2790_v37 = vld [vmem:[%s3947_s1 + $0x630] ss:$8 sps:$4 sm:$0xff]  }
  0x4b   :  { %1716 = vmatpush1.bf16.msra.mxu1 %v2685_v18  ;;  %v2244_v18 = vcombine.low %v3329_v41, %v3334_v42  ;;  %v2796_v41 = vld [vmem:[%s3947_s1 + $0x640] ss:$8 sps:$4 sm:$0xff]   ;;  %v2801_v42 = vld [vmem:[%s3947_s1 + $0x254] ss:$8 sps:$4 sm:$0xff]  }
  0x4c   :  { %1888 = vmatpush1.bf16.msra.mxu0 %v2688_v19  ;;  %1717 = vmatprep.subr.bf16.mxu1 %v2693_v20  ;;  %v2772_v19 = vld [vmem:[%s3947_s1 + $0x600] ss:$8 sps:$4 sm:$0xff]   ;;  %v2777_v20 = vld [vmem:[%s3947_s1 + $0x214] ss:$8 sps:$4 sm:$0xff]  }
  0x4d   :  { %1889 = vmatprep.subr.bf16.mxu0 %v2696_v21  ;;  %v2780_v21 = vld [vmem:[%s3947_s1 + $0x614] ss:$8 sps:$4 sm:$0xff]  }
  0x4f   :  { %1718 = vmatpush1.bf16.msra.mxu1 %v2691_v22  ;;  %v2775_v22 = vld [vmem:[%s3947_s1 + $0x210] ss:$8 sps:$4 sm:$0xff]  }
  0x50   :  { %1890 = vmatpush1.bf16.msra.mxu0 %v2694_v23  ;;  %1719 = vmatprep.subr.bf16.mxu1 %v2699_v24  ;;  %v2778_v23 = vld [vmem:[%s3947_s1 + $0x610] ss:$8 sps:$4 sm:$0xff]  }
  0x51   :  { %1891 = vmatprep.subr.bf16.mxu0 %v2702_v25  ;;  %v3471_v24 = vld [vmem:[%s3948_s0 + $0x10] sm:$0xff] }
  0x52   :  { %v3476_v25 = vld [vmem:[%s3948_s0 + $0x50] sm:$0xff] }
  0x53   :  { %1720 = vmatpush1.bf16.msra.mxu1 %v2697_v26  ;;  %v2783_v26 = vld [vmem:[%s3947_s1 + $0x224] ss:$8 sps:$4 sm:$0xff]  }
  0x54   :  { %1892 = vmatpush1.bf16.msra.mxu0 %v2700_v27  ;;  %1721 = vmatprep.subr.bf16.mxu1 %v2705_v28  ;;  %v2786_v27 = vld [vmem:[%s3947_s1 + $0x624] ss:$8 sps:$4 sm:$0xff]   ;;  %v2239_v28 = vcombine.high %v3471_v24, %v3476_v25 }
  0x55   :  { %1893 = vmatprep.subr.bf16.mxu0 %v2708_v29  ;;  %v3489_v29 = vld [vmem:[%s3948_s0 + $0x30] sm:$0xff] }
  0x57   :  { %1722 = vmatpush1.bf16.msra.mxu1 %v2703_v30  ;;  %v3494_v30 = vld [vmem:[%s3948_s0 + $0x70] sm:$0xff] }
  0x58   :  { %1894 = vmatpush1.bf16.msra.mxu0 %v2706_v31  ;;  %1723 = vmatprep.subr.bf16.mxu1 %v2711_v32  ;;  %v2247_v31 = vcombine.high %v3489_v29, %v3494_v30  ;;  %v2781_v32 = vld [vmem:[%s3947_s1 + $0x220] ss:$8 sps:$4 sm:$0xff]  }
  0x59   :  { %1895 = vmatprep.subr.bf16.mxu0 %v2714_v33  ;;  %v2784_v33 = vld [vmem:[%s3947_s1 + $0x620] ss:$8 sps:$4 sm:$0xff]  }
  0x5b   :  { %1724 = vmatpush1.bf16.msra.mxu1 %v2709_v34  ;;  %v2789_v34 = vld [vmem:[%s3947_s1 + $0x234] ss:$8 sps:$4 sm:$0xff]  }
  0x5c   :  { %1896 = vmatpush1.bf16.msra.mxu0 %v2712_v35  ;;  %1725 = vmatprep.subr.bf16.mxu1 %v2717_v38  ;;  %v2792_v35 = vld [vmem:[%s3947_s1 + $0x634] ss:$8 sps:$4 sm:$0xff]   ;;  %v2795_v38 = vld [vmem:[%s3947_s1 + $0x244] ss:$8 sps:$4 sm:$0xff]  }
  0x5d   :  { %1897 = vmatprep.subr.bf16.mxu0 %v2720_v39  ;;  %v2798_v39 = vld [vmem:[%s3947_s1 + $0x644] ss:$8 sps:$4 sm:$0xff]  }
  0x5f   :  { %1726 = vmatpush1.bf16.msra.mxu1 %v2715_v44  ;;  %v2799_v44 = vld [vmem:[%s3947_s1 + $0x250] ss:$8 sps:$4 sm:$0xff]  }
  0x60   :  { %1898 = vmatpush1.bf16.msra.mxu0 %v2718_v45  ;;  %1727 = vmatprep.subr.bf16.mxu1 %v2723_v46  ;;  %v2802_v45 = vld [vmem:[%s3947_s1 + $0x650] ss:$8 sps:$4 sm:$0xff]   ;;  %v2807_v46 = vld [vmem:[%s3947_s1 + $0x264] ss:$8 sps:$4 sm:$0xff]  }
  0x61   :  { %1899 = vmatprep.subr.bf16.mxu0 %v2726_v47  ;;  %v2810_v47 = vld [vmem:[%s3947_s1 + $0x664] ss:$8 sps:$4 sm:$0xff]  }
  0x63   :  { %1728 = vmatpush1.bf16.msra.mxu1 %v2721_v48  ;;  %v2805_v48 = vld [vmem:[%s3947_s1 + $0x260] ss:$8 sps:$4 sm:$0xff]  }
  0x64   :  { %1900 = vmatpush1.bf16.msra.mxu0 %v2724_v49  ;;  %1729 = vmatprep.subr.bf16.mxu1 %v2729_v50  ;;  %v2808_v49 = vld [vmem:[%s3947_s1 + $0x660] ss:$8 sps:$4 sm:$0xff]   ;;  %v2813_v50 = vld [vmem:[%s3947_s1 + $0x274] ss:$8 sps:$4 sm:$0xff]  }
  0x65   :  { %1901 = vmatprep.subr.bf16.mxu0 %v2732_v51  ;;  %v2816_v51 = vld [vmem:[%s3947_s1 + $0x674] ss:$8 sps:$4 sm:$0xff]  }
  0x67   :  { %1730 = vmatpush1.bf16.msra.mxu1 %v2727_v52  ;;  %v2811_v52 = vld [vmem:[%s3947_s1 + $0x270] ss:$8 sps:$4 sm:$0xff]  }
  0x68   :  { %1902 = vmatpush1.bf16.msra.mxu0 %v2730_v53  ;;  %1731 = vmatprep.subr.bf16.mxu1 %v2735_v54  ;;  %v2814_v53 = vld [vmem:[%s3947_s1 + $0x670] ss:$8 sps:$4 sm:$0xff]   ;;  %v2819_v54 = vld [vmem:[%s3947_s1 + $0x284] ss:$8 sps:$4 sm:$0xff]  }
  0x69   :  { %1903 = vmatprep.subr.bf16.mxu0 %v2738_v55  ;;  %v2822_v55 = vld [vmem:[%s3947_s1 + $0x684] ss:$8 sps:$4 sm:$0xff]  }
  0x6b   :  { %1732 = vmatpush1.bf16.msra.mxu1 %v2733_v56  ;;  %v2817_v56 = vld [vmem:[%s3947_s1 + $0x280] ss:$8 sps:$4 sm:$0xff]  }
  0x6c   :  { %1904 = vmatpush1.bf16.msra.mxu0 %v2736_v57  ;;  %1733 = vmatprep.subr.bf16.mxu1 %v2741_v58  ;;  %v2820_v57 = vld [vmem:[%s3947_s1 + $0x680] ss:$8 sps:$4 sm:$0xff]   ;;  %v2825_v58 = vld [vmem:[%s3947_s1 + $0x294] ss:$8 sps:$4 sm:$0xff]  }
  0x6d   :  { %1905 = vmatprep.subr.bf16.mxu0 %v2744_v59  ;;  %v2828_v59 = vld [vmem:[%s3947_s1 + $0x694] ss:$8 sps:$4 sm:$0xff]  }
  0x6f   :  { %1734 = vmatpush1.bf16.msra.mxu1 %v2739_v60  ;;  %v2823_v60 = vld [vmem:[%s3947_s1 + $0x290] ss:$8 sps:$4 sm:$0xff]  }
  0x70   :  { %1906 = vmatpush1.bf16.msra.mxu0 %v2742_v61  ;;  %1735 = vmatprep.subr.bf16.mxu1 %v2747_v62  ;;  %v2826_v61 = vld [vmem:[%s3947_s1 + $0x690] ss:$8 sps:$4 sm:$0xff]   ;;  %v2831_v62 = vld [vmem:[%s3947_s1 + $0x2a4] ss:$8 sps:$4 sm:$0xff]  }
  0x71   :  { %1907 = vmatprep.subr.bf16.mxu0 %v2750_v63  ;;  %v2834_v63 = vld [vmem:[%s3947_s1 + $0x6a4] ss:$8 sps:$4 sm:$0xff]  }
  0x73   :  { %1736 = vmatpush1.bf16.msra.mxu1 %v2745_v0  ;;  %v2829_v0 = vld [vmem:[%s3947_s1 + $0x2a0] ss:$8 sps:$4 sm:$0xff]  }
  0x74   :  { %1908 = vmatpush1.bf16.msra.mxu0 %v2748_v1  ;;  %1737 = vmatprep.subr.bf16.mxu1 %v2753_v2  ;;  %v2832_v1 = vld [vmem:[%s3947_s1 + $0x6a0] ss:$8 sps:$4 sm:$0xff]   ;;  %v2837_v2 = vld [vmem:[%s3947_s1 + $0x2b4] ss:$8 sps:$4 sm:$0xff]  }
  0x75   :  { %1909 = vmatprep.subr.bf16.mxu0 %v2756_v3  ;;  %v2840_v3 = vld [vmem:[%s3947_s1 + $0x6b4] ss:$8 sps:$4 sm:$0xff]  }
  0x77   :  { %1738 = vmatpush1.bf16.msra.mxu1 %v2751_v4  ;;  %v2835_v4 = vld [vmem:[%s3947_s1 + $0x2b0] ss:$8 sps:$4 sm:$0xff]  }
  0x78   :  { %1910 = vmatpush1.bf16.msra.mxu0 %v2754_v5  ;;  %1739 = vmatprep.subr.bf16.mxu1 %v2759_v6  ;;  %v2838_v5 = vld [vmem:[%s3947_s1 + $0x6b0] ss:$8 sps:$4 sm:$0xff]   ;;  %v2843_v6 = vld [vmem:[%s3947_s1 + $0x2c4] ss:$8 sps:$4 sm:$0xff]  }
  0x79   :  { %1911 = vmatprep.subr.bf16.mxu0 %v2762_v7  ;;  %v2846_v7 = vld [vmem:[%s3947_s1 + $0x6c4] ss:$8 sps:$4 sm:$0xff]  }
  0x7b   :  { %1740 = vmatpush1.bf16.msra.mxu1 %v2757_v8  ;;  %v2841_v8 = vld [vmem:[%s3947_s1 + $0x2c0] ss:$8 sps:$4 sm:$0xff]  }
  0x7c   :  { %1912 = vmatpush1.bf16.msra.mxu0 %v2760_v9  ;;  %1741 = vmatprep.subr.bf16.mxu1 %v2765_v10  ;;  %v2844_v9 = vld [vmem:[%s3947_s1 + $0x6c0] ss:$8 sps:$4 sm:$0xff]   ;;  %v2849_v10 = vld [vmem:[%s3947_s1 + $0x2d4] ss:$8 sps:$4 sm:$0xff]  }
  0x7d   :  { %1913 = vmatprep.subr.bf16.mxu0 %v2768_v11  ;;  %v2852_v11 = vld [vmem:[%s3947_s1 + $0x6d4] ss:$8 sps:$4 sm:$0xff]  }
  0x7f   :  { %1742 = vmatpush1.bf16.msra.mxu1 %v2763_v12  ;;  %v2847_v12 = vld [vmem:[%s3947_s1 + $0x2d0] ss:$8 sps:$4 sm:$0xff]  }
  0x80   :  { %1914 = vmatpush1.bf16.msra.mxu0 %v2766_v13  ;;  %1754 = vmatprep.subr.bf16.mxu1 %v2771_v14  ;;  %v2850_v13 = vld [vmem:[%s3947_s1 + $0x6d0] ss:$8 sps:$4 sm:$0xff]   ;;  %v2855_v14 = vld [vmem:[%s3947_s1 + $0x2e4] ss:$8 sps:$4 sm:$0xff]  }
  0x81   :  { %1926 = vmatprep.subr.bf16.mxu0 %v2774_v15  ;;  %v2858_v15 = vld [vmem:[%s3947_s1 + $0x6e4] ss:$8 sps:$4 sm:$0xff]  }
  0x82   :  { %1744 = vmatmul.mubr.bf16.vlgmr.msra.gmra.mrb[0].mxu1 %v2236_v16  ;;  %v2853_v16 = vld [vmem:[%s3947_s1 + $0x2e0] ss:$8 sps:$4 sm:$0xff]  }
  0x83   :  { %1916 = vmatmul.mubr.bf16.vlgmr.msra.gmra.mrb[0].mxu0 %v2244_v18  ;;  %1755 = vmatpush1.bf16.msra.mxu1 %v2769_v17  ;;  %v2856_v17 = vld [vmem:[%s3947_s1 + $0x6e0] ss:$8 sps:$4 sm:$0xff]   ;;  %v2861_v18 = vld [vmem:[%s3947_s1 + $0x2f4] ss:$8 sps:$4 sm:$0xff]  }
  0x84   :  { %1927 = vmatpush1.bf16.msra.mxu0 %v2772_v19  ;;  %1756 = vmatprep.subr.bf16.mxu1 %v2777_v20  ;;  %v2864_v19 = vld [vmem:[%s3947_s1 + $0x6f4] ss:$8 sps:$4 sm:$0xff]   ;;  %v2859_v20 = vld [vmem:[%s3947_s1 + $0x2f0] ss:$8 sps:$4 sm:$0xff]  }
  0x85   :  { %1928 = vmatprep.subr.bf16.mxu0 %v2780_v21  ;;  %1786 = vmatprep.mubr.bf16.mxu1 %v2239_v28  ;;  %v2862_v21 = vld [vmem:[%s3947_s1 + $0x6f0] ss:$8 sps:$4 sm:$0xff]   ;;  %v2246_v28 = vcombine.low %v3489_v29, %v3494_v30  ;;  %v2873_v29 = vld [vmem:[%s3947_s1 + $0x314] ss:$8 sps:$4 sm:$0xff]  }
  0x86   :  { %1958 = vmatprep.mubr.bf16.mxu0 %v2247_v31  ;;  %v3678_v31 = vld [vmem:[%s3948_s0 + $0x58] sm:$0xff] }
  0x87   :  { %1757 = vmatpush1.bf16.msra.mxu1 %v2775_v22  ;;  %v2867_v22 = vld [vmem:[%s3947_s1 + $0x304] ss:$8 sps:$4 sm:$0xff]   ;;  %v2876_v30 = vld [vmem:[%s3947_s1 + $0x714] ss:$8 sps:$4 sm:$0xff]  }
  0x88   :  { %1929 = vmatpush1.bf16.msra.mxu0 %v2778_v23  ;;  %1758 = vmatprep.subr.bf16.mxu1 %v2783_v26  ;;  %v2870_v23 = vld [vmem:[%s3947_s1 + $0x704] ss:$8 sps:$4 sm:$0xff]   ;;  %v3669_v26 = vld [vmem:[%s3948_s0 + $0x18] sm:$0xff] }
  0x89   :  { %1930 = vmatprep.subr.bf16.mxu0 %v2786_v27  ;;  %v2238_v27 = vcombine.low %v3471_v24, %v3476_v25  ;;  %v2865_v24 = vld [vmem:[%s3947_s1 + $0x300] ss:$8 sps:$4 sm:$0xff]  }
  0x8a   :  { %v2868_v25 = vld [vmem:[%s3947_s1 + $0x700] ss:$8 sps:$4 sm:$0xff]  }
  0x8b   :  { %1759 = vmatpush1.bf16.msra.mxu1 %v2781_v32  ;;  %v3683_v32 = vld [vmem:[%s3948_s0 + $0x38] sm:$0xff] }
  0x8c   :  { %1931 = vmatpush1.bf16.msra.mxu0 %v2784_v33  ;;  %1760 = vmatprep.subr.bf16.mxu1 %v2789_v34  ;;  %v3688_v33 = vld [vmem:[%s3948_s0 + $0x78] sm:$0xff]  ;;  %v2241_v34 = vcombine.high %v3669_v26, %v3678_v31 }
  0x8d   :  { %1932 = vmatprep.subr.bf16.mxu0 %v2792_v35  ;;  %v2249_v35 = vcombine.high %v3683_v32, %v3688_v33 }
  0x8f   :  { %1761 = vmatpush1.bf16.msra.mxu1 %v2787_v36  ;;  %v2871_v36 = vld [vmem:[%s3947_s1 + $0x310] ss:$8 sps:$4 sm:$0xff]  }
  0x90   :  { %1933 = vmatpush1.bf16.msra.mxu0 %v2790_v37  ;;  %1762 = vmatprep.subr.bf16.mxu1 %v2795_v38  ;;  %v2874_v37 = vld [vmem:[%s3947_s1 + $0x710] ss:$8 sps:$4 sm:$0xff]   ;;  %v2879_v38 = vld [vmem:[%s3947_s1 + $0x324] ss:$8 sps:$4 sm:$0xff]  }
  0x91   :  { %1934 = vmatprep.subr.bf16.mxu0 %v2798_v39  ;;  %v2882_v39 = vld [vmem:[%s3947_s1 + $0x724] ss:$8 sps:$4 sm:$0xff]  }
  0x93   :  { %1763 = vmatpush1.bf16.msra.mxu1 %v2793_v40  ;;  %v2877_v40 = vld [vmem:[%s3947_s1 + $0x320] ss:$8 sps:$4 sm:$0xff]  }
  0x94   :  { %1935 = vmatpush1.bf16.msra.mxu0 %v2796_v41  ;;  %1764 = vmatprep.subr.bf16.mxu1 %v2801_v42  ;;  %v2880_v41 = vld [vmem:[%s3947_s1 + $0x720] ss:$8 sps:$4 sm:$0xff]   ;;  %v2885_v42 = vld [vmem:[%s3947_s1 + $0x334] ss:$8 sps:$4 sm:$0xff]  }
  0x95   :  { %1936 = vmatprep.subr.bf16.mxu0 %v2804_v43  ;;  %v2888_v43 = vld [vmem:[%s3947_s1 + $0x734] ss:$8 sps:$4 sm:$0xff]  }
  0x97   :  { %1765 = vmatpush1.bf16.msra.mxu1 %v2799_v44  ;;  %v2883_v44 = vld [vmem:[%s3947_s1 + $0x330] ss:$8 sps:$4 sm:$0xff]  }
  0x98   :  { %1937 = vmatpush1.bf16.msra.mxu0 %v2802_v45  ;;  %1766 = vmatprep.subr.bf16.mxu1 %v2807_v46  ;;  %v2886_v45 = vld [vmem:[%s3947_s1 + $0x730] ss:$8 sps:$4 sm:$0xff]   ;;  %v2891_v46 = vld [vmem:[%s3947_s1 + $0x344] ss:$8 sps:$4 sm:$0xff]  }
  0x99   :  { %1938 = vmatprep.subr.bf16.mxu0 %v2810_v47  ;;  %v2894_v47 = vld [vmem:[%s3947_s1 + $0x744] ss:$8 sps:$4 sm:$0xff]  }
  0x9b   :  { %1767 = vmatpush1.bf16.msra.mxu1 %v2805_v48  ;;  %v2889_v48 = vld [vmem:[%s3947_s1 + $0x340] ss:$8 sps:$4 sm:$0xff]  }
  0x9c   :  { %1939 = vmatpush1.bf16.msra.mxu0 %v2808_v49  ;;  %1768 = vmatprep.subr.bf16.mxu1 %v2813_v50  ;;  %v2892_v49 = vld [vmem:[%s3947_s1 + $0x740] ss:$8 sps:$4 sm:$0xff]   ;;  %v2897_v50 = vld [vmem:[%s3947_s1 + $0x354] ss:$8 sps:$4 sm:$0xff]  }
  0x9d   :  { %1940 = vmatprep.subr.bf16.mxu0 %v2816_v51  ;;  %v2900_v51 = vld [vmem:[%s3947_s1 + $0x754] ss:$8 sps:$4 sm:$0xff]  }
  0x9f   :  { %1769 = vmatpush1.bf16.msra.mxu1 %v2811_v52  ;;  %v2895_v52 = vld [vmem:[%s3947_s1 + $0x350] ss:$8 sps:$4 sm:$0xff]  }
  0xa0   :  { %1941 = vmatpush1.bf16.msra.mxu0 %v2814_v53  ;;  %1770 = vmatprep.subr.bf16.mxu1 %v2819_v54  ;;  %v2898_v53 = vld [vmem:[%s3947_s1 + $0x750] ss:$8 sps:$4 sm:$0xff]   ;;  %v2903_v54 = vld [vmem:[%s3947_s1 + $0x364] ss:$8 sps:$4 sm:$0xff]  }
  0xa1   :  { %1942 = vmatprep.subr.bf16.mxu0 %v2822_v55  ;;  %v2906_v55 = vld [vmem:[%s3947_s1 + $0x764] ss:$8 sps:$4 sm:$0xff]  }
  0xa3   :  { %1771 = vmatpush1.bf16.msra.mxu1 %v2817_v56  ;;  %v2901_v56 = vld [vmem:[%s3947_s1 + $0x360] ss:$8 sps:$4 sm:$0xff]  }
  0xa4   :  { %1943 = vmatpush1.bf16.msra.mxu0 %v2820_v57  ;;  %1772 = vmatprep.subr.bf16.mxu1 %v2825_v58  ;;  %v2904_v57 = vld [vmem:[%s3947_s1 + $0x760] ss:$8 sps:$4 sm:$0xff]   ;;  %v2909_v58 = vld [vmem:[%s3947_s1 + $0x374] ss:$8 sps:$4 sm:$0xff]  }
  0xa5   :  { %1944 = vmatprep.subr.bf16.mxu0 %v2828_v59  ;;  %v2912_v59 = vld [vmem:[%s3947_s1 + $0x774] ss:$8 sps:$4 sm:$0xff]  }
  0xa7   :  { %1773 = vmatpush1.bf16.msra.mxu1 %v2823_v60  ;;  %v2907_v60 = vld [vmem:[%s3947_s1 + $0x370] ss:$8 sps:$4 sm:$0xff]  }
  0xa8   :  { %1945 = vmatpush1.bf16.msra.mxu0 %v2826_v61  ;;  %1774 = vmatprep.subr.bf16.mxu1 %v2831_v62  ;;  %v2910_v61 = vld [vmem:[%s3947_s1 + $0x770] ss:$8 sps:$4 sm:$0xff]   ;;  %v2915_v62 = vld [vmem:[%s3947_s1 + $0x384] ss:$8 sps:$4 sm:$0xff]  }
  0xa9   :  { %1946 = vmatprep.subr.bf16.mxu0 %v2834_v63  ;;  %v2918_v63 = vld [vmem:[%s3947_s1 + $0x784] ss:$8 sps:$4 sm:$0xff]  }
  0xab   :  { %1775 = vmatpush1.bf16.msra.mxu1 %v2829_v0  ;;  %v2913_v0 = vld [vmem:[%s3947_s1 + $0x380] ss:$8 sps:$4 sm:$0xff]  }
  0xac   :  { %1947 = vmatpush1.bf16.msra.mxu0 %v2832_v1  ;;  %1776 = vmatprep.subr.bf16.mxu1 %v2837_v2  ;;  %v2916_v1 = vld [vmem:[%s3947_s1 + $0x780] ss:$8 sps:$4 sm:$0xff]   ;;  %v2921_v2 = vld [vmem:[%s3947_s1 + $0x394] ss:$8 sps:$4 sm:$0xff]  }
  0xad   :  { %1948 = vmatprep.subr.bf16.mxu0 %v2840_v3  ;;  %v2924_v3 = vld [vmem:[%s3947_s1 + $0x794] ss:$8 sps:$4 sm:$0xff]  }
  0xaf   :  { %1777 = vmatpush1.bf16.msra.mxu1 %v2835_v4  ;;  %v2919_v4 = vld [vmem:[%s3947_s1 + $0x390] ss:$8 sps:$4 sm:$0xff]  }
  0xb0   :  { %1949 = vmatpush1.bf16.msra.mxu0 %v2838_v5  ;;  %1778 = vmatprep.subr.bf16.mxu1 %v2843_v6  ;;  %v2922_v5 = vld [vmem:[%s3947_s1 + $0x790] ss:$8 sps:$4 sm:$0xff]   ;;  %v2927_v6 = vld [vmem:[%s3947_s1 + $0x3a4] ss:$8 sps:$4 sm:$0xff]  }
  0xb1   :  { %1950 = vmatprep.subr.bf16.mxu0 %v2846_v7  ;;  %v2930_v7 = vld [vmem:[%s3947_s1 + $0x7a4] ss:$8 sps:$4 sm:$0xff]  }
  0xb3   :  { %1779 = vmatpush1.bf16.msra.mxu1 %v2841_v8  ;;  %v2925_v8 = vld [vmem:[%s3947_s1 + $0x3a0] ss:$8 sps:$4 sm:$0xff]  }
  0xb4   :  { %1951 = vmatpush1.bf16.msra.mxu0 %v2844_v9  ;;  %1780 = vmatprep.subr.bf16.mxu1 %v2849_v10  ;;  %v2928_v9 = vld [vmem:[%s3947_s1 + $0x7a0] ss:$8 sps:$4 sm:$0xff]   ;;  %v2933_v10 = vld [vmem:[%s3947_s1 + $0x3b4] ss:$8 sps:$4 sm:$0xff]  }
  0xb5   :  { %1952 = vmatprep.subr.bf16.mxu0 %v2852_v11  ;;  %v2936_v11 = vld [vmem:[%s3947_s1 + $0x7b4] ss:$8 sps:$4 sm:$0xff]  }
  0xb7   :  { %1781 = vmatpush1.bf16.msra.mxu1 %v2847_v12  ;;  %v2931_v12 = vld [vmem:[%s3947_s1 + $0x3b0] ss:$8 sps:$4 sm:$0xff]  }
  0xb8   :  { %1953 = vmatpush1.bf16.msra.mxu0 %v2850_v13  ;;  %1782 = vmatprep.subr.bf16.mxu1 %v2855_v14  ;;  %v2934_v13 = vld [vmem:[%s3947_s1 + $0x7b0] ss:$8 sps:$4 sm:$0xff]   ;;  %v2939_v14 = vld [vmem:[%s3947_s1 + $0x3c4] ss:$8 sps:$4 sm:$0xff]  }
  0xb9   :  { %1954 = vmatprep.subr.bf16.mxu0 %v2858_v15  ;;  %v2942_v15 = vld [vmem:[%s3947_s1 + $0x7c4] ss:$8 sps:$4 sm:$0xff]  }
  0xbb   :  { %1783 = vmatpush1.bf16.msra.mxu1 %v2853_v16  ;;  %v2937_v16 = vld [vmem:[%s3947_s1 + $0x3c0] ss:$8 sps:$4 sm:$0xff]  }
  0xbc   :  { %1955 = vmatpush1.bf16.msra.mxu0 %v2856_v17  ;;  %1784 = vmatprep.subr.bf16.mxu1 %v2861_v18  ;;  %v2940_v17 = vld [vmem:[%s3947_s1 + $0x7c0] ss:$8 sps:$4 sm:$0xff]   ;;  %v2945_v18 = vld [vmem:[%s3947_s1 + $0x3d4] ss:$8 sps:$4 sm:$0xff]  }
  0xbd   :  { %1956 = vmatprep.subr.bf16.mxu0 %v2864_v19  ;;  %v2948_v19 = vld [vmem:[%s3947_s1 + $0x7d4] ss:$8 sps:$4 sm:$0xff]  }
  0xbf   :  { %1785 = vmatpush1.bf16.msra.mxu1 %v2859_v20  ;;  %v2943_v20 = vld [vmem:[%s3947_s1 + $0x3d0] ss:$8 sps:$4 sm:$0xff]  }
  0xc0   :  { %1957 = vmatpush1.bf16.msra.mxu0 %v2862_v21  ;;  %1797 = vmatprep.subr.bf16.mxu1 %v2867_v22  ;;  %v2946_v21 = vld [vmem:[%s3947_s1 + $0x7d0] ss:$8 sps:$4 sm:$0xff]   ;;  %v2951_v22 = vld [vmem:[%s3947_s1 + $0x3e4] ss:$8 sps:$4 sm:$0xff]  }
  0xc1   :  { %1969 = vmatprep.subr.bf16.mxu0 %v2870_v23  ;;  %v2954_v23 = vld [vmem:[%s3947_s1 + $0x7e4] ss:$8 sps:$4 sm:$0xff]  }
  0xc2   :  { %1787 = vmatmul.mubr.bf16.vlgmr.msra.gmra.mrb[0].mxu1 %v2238_v27  ;;  %v2949_v27 = vld [vmem:[%s3947_s1 + $0x3e0] ss:$8 sps:$4 sm:$0xff]  }
  0xc3   :  { %1959 = vmatmul.mubr.bf16.vlgmr.msra.gmra.mrb[0].mxu0 %v2246_v28  ;;  %1798 = vmatpush1.bf16.msra.mxu1 %v2865_v24  ;;  %v2952_v28 = vld [vmem:[%s3947_s1 + $0x7e0] ss:$8 sps:$4 sm:$0xff]   ;;  %v2957_v24 = vld [vmem:[%s3947_s1 + $0x3f4] ss:$8 sps:$4 sm:$0xff]  }
  0xc4   :  { %1970 = vmatpush1.bf16.msra.mxu0 %v2868_v25  ;;  %1799 = vmatprep.subr.bf16.mxu1 %v2873_v29  ;;  %v2960_v25 = vld [vmem:[%s3947_s1 + $0x7f4] ss:$8 sps:$4 sm:$0xff]   ;;  %v2955_v29 = vld [vmem:[%s3947_s1 + $0x3f0] ss:$8 sps:$4 sm:$0xff]  }
  0xc5   :  { %1971 = vmatprep.subr.bf16.mxu0 %v2876_v30  ;;  %1829 = vmatprep.mubr.bf16.mxu1 %v2241_v34  ;;  %v2958_v30 = vld [vmem:[%s3947_s1 + $0x7f0] ss:$8 sps:$4 sm:$0xff]   ;;  %v2961_v34 = vld [vmem:[%s3949_s3 + $0x40] sm:$0xff]  }
  0xc6   :  { %2001 = vmatprep.mubr.bf16.mxu0 %v2249_v35  ;;  %v2240_v35 = vcombine.low %v3669_v26, %v3678_v31  ;;  %v2964_v26 = vld [vmem:[%s3949_s3 + $0x8] sm:$0xff]   ;;  %v2965_v31 = vld [vmem:[%s3949_s3 + $0x50] sm:$0xff]  }
  0xc7   :  { %1800 = vmatpush1.bf16.msra.mxu1 %v2871_v36  ;;  %v2248_v36 = vcombine.low %v3683_v32, %v3688_v33  ;;  %v2966_v32 = vld [vmem:[%s3949_s3 + $0x10] sm:$0xff]   ;;  %v2967_v33 = vld [vmem:[%s3949_s3 + $0x58] sm:$0xff]  }
  0xc8   :  { %1972 = vmatpush1.bf16.msra.mxu0 %v2874_v37  ;;  %1801 = vmatprep.subr.bf16.mxu1 %v2879_v38  ;;  %v2962_v37 = vld [vmem:[%s3949_s3] sm:$0xff]   ;;  %v2963_v38 = vld [vmem:[%s3949_s3 + $0x48] sm:$0xff]  }
  0xc9   :  { %1973 = vmatprep.subr.bf16.mxu0 %v2882_v39  ;;  %v2968_v39 = vld [vmem:[%s3949_s3 + $0x18] sm:$0xff]  }
  0xcb   :  { %1802 = vmatpush1.bf16.msra.mxu1 %v2877_v40  ;;  %v2969_v40 = vld [vmem:[%s3949_s3 + $0x60] sm:$0xff]  }
  0xcc   :  { %1974 = vmatpush1.bf16.msra.mxu0 %v2880_v41  ;;  %1803 = vmatprep.subr.bf16.mxu1 %v2885_v42  ;;  %v2970_v41 = vld [vmem:[%s3949_s3 + $0x20] sm:$0xff]   ;;  %v2971_v42 = vld [vmem:[%s3949_s3 + $0x68] sm:$0xff]  }
  0xcd   :  { %1975 = vmatprep.subr.bf16.mxu0 %v2888_v43  ;;  %v2972_v43 = vld [vmem:[%s3949_s3 + $0x28] sm:$0xff]  }
  0xcf   :  { %1804 = vmatpush1.bf16.msra.mxu1 %v2883_v44  ;;  %v2973_v44 = vld [vmem:[%s3949_s3 + $0x70] sm:$0xff]  }
  0xd0   :  { %1976 = vmatpush1.bf16.msra.mxu0 %v2886_v45  ;;  %1805 = vmatprep.subr.bf16.mxu1 %v2891_v46  ;;  %v2974_v45 = vld [vmem:[%s3949_s3 + $0x30] sm:$0xff]   ;;  %v2975_v46 = vld [vmem:[%s3949_s3 + $0x78] sm:$0xff]  }
  0xd1   :  { %1977 = vmatprep.subr.bf16.mxu0 %v2894_v47  ;;  %v2976_v47 = vld [vmem:[%s3949_s3 + $0x38] sm:$0xff]  }
  0xd3   :  { %1806 = vmatpush1.bf16.msra.mxu1 %v2889_v48  ;;  %v298_v48 = vlaneseq }
  0xd4   :  { %1978 = vmatpush1.bf16.msra.mxu0 %v2892_v49  ;;  %1807 = vmatprep.subr.bf16.mxu1 %v2897_v50 }
  0xd5   :  { %1979 = vmatprep.subr.bf16.mxu0 %v2900_v51  ;;  %v299_v49 = vshrl.u32 %v298_v48, 7  ;;  %v296_v51 = vld [vmem:[%s3950_s2] sm:$0x3] }
  0xd7   :  { %1808 = vmatpush1.bf16.msra.mxu1 %v2895_v52  ;;  %v300_v50 = vsub.s32 0, %v299_v49  ;;  %v304_v52 = vsub.s32 1, %v299_v49 }
  0xd8   :  { %1980 = vmatpush1.bf16.msra.mxu0 %v2898_v53  ;;  %1809 = vmatprep.subr.bf16.mxu1 %v2903_v54 }
  0xd9   :  { %1981 = vmatprep.subr.bf16.mxu0 %v2906_v55  ;;  %v301_v53 = vrot.slane %v296_v51, %v300_v50  ;;  %v305_v54 = vrot.slane %v296_v51, %v304_v52 }
  0xdb   :  { %1810 = vmatpush1.bf16.msra.mxu1 %v2901_v56 }
  0xdc   :  { %1982 = vmatpush1.bf16.msra.mxu0 %v2904_v57  ;;  %1811 = vmatprep.subr.bf16.mxu1 %v2909_v58 }
  0xdd   :  { %1983 = vmatprep.subr.bf16.mxu0 %v2912_v59 }
  0xdf   :  { %1812 = vmatpush1.bf16.msra.mxu1 %v2907_v60 }
  0xe0   :  { %1984 = vmatpush1.bf16.msra.mxu0 %v2910_v61  ;;  %1813 = vmatprep.subr.bf16.mxu1 %v2915_v62 }
  0xe1   :  { %1985 = vmatprep.subr.bf16.mxu0 %v2918_v63 }
  0xe3   :  { %1814 = vmatpush1.bf16.msra.mxu1 %v2913_v0 }
  0xe4   :  { %1986 = vmatpush1.bf16.msra.mxu0 %v2916_v1  ;;  %1815 = vmatprep.subr.bf16.mxu1 %v2921_v2 }
  0xe5   :  { %1987 = vmatprep.subr.bf16.mxu0 %v2924_v3 }
  0xe7   :  { %1816 = vmatpush1.bf16.msra.mxu1 %v2919_v4 }
  0xe8   :  { %1988 = vmatpush1.bf16.msra.mxu0 %v2922_v5  ;;  %1817 = vmatprep.subr.bf16.mxu1 %v2927_v6 }
  0xe9   :  { %1989 = vmatprep.subr.bf16.mxu0 %v2930_v7 }
  0xeb   :  { %1818 = vmatpush1.bf16.msra.mxu1 %v2925_v8 }
  0xec   :  { %1990 = vmatpush1.bf16.msra.mxu0 %v2928_v9  ;;  %1819 = vmatprep.subr.bf16.mxu1 %v2933_v10 }
  0xed   :  { %1991 = vmatprep.subr.bf16.mxu0 %v2936_v11 }
  0xef   :  { %1820 = vmatpush1.bf16.msra.mxu1 %v2931_v12 }
  0xf0   :  { %1992 = vmatpush1.bf16.msra.mxu0 %v2934_v13  ;;  %1821 = vmatprep.subr.bf16.mxu1 %v2939_v14  ;;  %v2506_v14 = vld [vmem:[%s3951_s4] ss:$0 sm:$0xff] }
  0xf1   :  { %1993 = vmatprep.subr.bf16.mxu0 %v2942_v15 }
  0xf3   :  { %1822 = vmatpush1.bf16.msra.mxu1 %v2937_v16 }
  0xf4   :  { %1994 = vmatpush1.bf16.msra.mxu0 %v2940_v17  ;;  %1823 = vmatprep.subr.bf16.mxu1 %v2945_v18 }
  0xf5   :  { %1995 = vmatprep.subr.bf16.mxu0 %v2948_v19 }
  0xf7   :  { %1824 = vmatpush1.bf16.msra.mxu1 %v2943_v20 }
  0xf8   :  { %1996 = vmatpush1.bf16.msra.mxu0 %v2946_v21  ;;  %1825 = vmatprep.subr.bf16.mxu1 %v2951_v22 }
  0xf9   :  { %1997 = vmatprep.subr.bf16.mxu0 %v2954_v23 }
  0xfb   :  { %1826 = vmatpush1.bf16.msra.mxu1 %v2949_v27 }
  0xfc   :  { %1998 = vmatpush1.bf16.msra.mxu0 %v2952_v28  ;;  %1827 = vmatprep.subr.bf16.mxu1 %v2957_v24 }
  0xfd   :  { %1999 = vmatprep.subr.bf16.mxu0 %v2960_v25 }
  0xff   :  { %1828 = vmatpush1.bf16.msra.mxu1 %v2955_v29 }
 0x100   :  { %2000 = vmatpush1.bf16.msra.mxu0 %v2958_v30  ;;  %2523 = vmatprep.subr.bf16.mxu1 %v2961_v34  ;;  %v2208_v34 = vld [vmem:[%s3952_s5] sm:$0x1] }
 0x102   :  { %1830 = vmatmul.mubr.bf16.vlgmr.msra.gmra.mrb[0].mxu1 %v2240_v35  ;;  %v2209_v35 = vsub.f32 1.0, %v2208_v34 }
 0x103   :  { %2002 = vmatmul.mubr.bf16.vlgmr.msra.gmra.mrb[0].mxu0 %v2248_v36  ;;  %2524 = vmatpush3.bf16.msra.mxu1 %v2962_v37 }
 0x104   :  { %2525 = vmatprep.subr.bf16.mxu1 %v2963_v38  ;;  %v2214_v38 = vrot.slane %v2209_v35, %v300_v50 }
 0x107   :  { %2526 = vmatpush3.bf16.msra.mxu1 %v2964_v26  ;;  %v2222_v26 = vrot.slane %v2208_v34, %v300_v50 }
 0x108   :  { %2527 = vmatprep.subr.bf16.mxu1 %v2965_v31 }
 0x10b   :  { %2528 = vmatpush3.bf16.msra.mxu1 %v2966_v32 }
 0x10c   :  { %2529 = vmatprep.subr.bf16.mxu1 %v2967_v33 }
 0x10f   :  { %2530 = vmatpush3.bf16.msra.mxu1 %v2968_v39 }
 0x110   :  { %2531 = vmatprep.subr.bf16.mxu1 %v2969_v40 }
 0x113   :  { %2532 = vmatpush3.bf16.msra.mxu1 %v2970_v41 }
 0x114   :  { %2533 = vmatprep.subr.bf16.mxu1 %v2971_v42 }
 0x117   :  { %2534 = vmatpush3.bf16.msra.mxu1 %v2972_v43 }
 0x118   :  { %2535 = vmatprep.subr.bf16.mxu1 %v2973_v44 }
 0x11b   :  { %2536 = vmatpush3.bf16.msra.mxu1 %v2974_v45 }
 0x11c   :  { %2537 = vmatprep.subr.bf16.mxu1 %v2975_v46 }
 0x11f   :  { %2538 = vmatpush3.bf16.msra.mxu1 %v2976_v47 }
 0x1d5   :  { %v1831_v55 = vpop.f32.mrb[0].mxu1 }
 0x1d6   :  { %v2003_v56 = vpop.f32.mrb[0].mxu0  ;;  %v2545_v57 = vadd.f32 %v1831_v55, %v301_v53  ;;  %v1833_v58 = vpop.f32.mrb[1].mxu1 }
 0x1d7   :  { %v2005_v59 = vpop.f32.mrb[1].mxu0  ;;  %v2547_v60 = vadd.f32 %v1833_v58, %v305_v54  ;;  %v1835_v61 = vpop.f32.mrb[2].mxu1 }
 0x1d8   :  { %v2007_v62 = vpop.f32.mrb[2].mxu0  ;;  %v2546_v63 = vadd.f32 %v2545_v57, %v2003_v56  ;;  %v2549_v0 = vadd.f32 %v1835_v61, %v301_v53  ;;  %v1837_v1 = vpop.f32.mrb[3].mxu1 }
 0x1d9   :  { %v2009_v2 = vpop.f32.mrb[3].mxu0  ;;  %v2548_v3 = vadd.f32 %v2547_v60, %v2005_v59  ;;  %v2551_v4 = vadd.f32 %v1837_v1, %v305_v54 }
 0x1da   :  { %v2550_v5 = vadd.f32 %v2549_v0, %v2007_v62  ;;  %v2012_v7 = vmax.f32 %v2546_v63, 0.0 }
 0x1db   :  { %v2552_v6 = vadd.f32 %v2551_v4, %v2009_v2  ;;  %v2013_v9 = vmax.f32 %v2548_v3, 0.0 }
 0x1dc   :  { %v2014_v8 = vmax.f32 %v2550_v5, 0.0 }
 0x1dd   :  { %v2015_v10 = vmax.f32 %v2552_v6, 0.0 }
 0x1de   :  { %v2016_v11 = vpack.c.bf16 %v2014_v8, %v2012_v7 }
 0x1df   :  { %v2017_v12 = vpack.c.bf16 %v2015_v10, %v2013_v9 }
 0x1e1   :  { %2185 = vmatprep.mubr.bf16.mxu1 %v2017_v12 }
 0x1e2   :  { %2186 = vmatmul.mubr.bf16.vlgmr.msra.gmra.mrb[4].mxu1 %v2016_v11 }
 0x2b5   :  { %v2539_v13 = vpop.f32.mrb[4].mxu1 }
 0x2b6   :  { %v2540_v15 = vpop.f32.mrb[5].mxu1 }
 0x2b7   :  { %v2541_v16 = vadd.f32 %v2540_v15, %v2539_v13  ;;  %v2542_v17 = vpop.f32.mrb[6].mxu1 }
 0x2b8   :  { %v2543_v18 = vpop.f32.mrb[7].mxu1 }
 0x2b9   :  { %v2188_v19 = vadd.f32 %v2541_v16, %v2506_v14  ;;  %v2544_v20 = vadd.f32 %v2543_v18, %v2542_v17 }
 0x2bb   :  { %v2194_v21 = vsub.f32 0.0, %v2188_v19  ;;  %v2191_v22 = vadd.f32 %v2544_v20, %v2506_v14  ;;  %v2216_v39 = vmul.f32 %v2214_v38, %v2188_v19 }
 0x2bd   :  { %v2196_v23 = vmul.f32 1.442695, %v2194_v21  ;;  %v2195_v27 = vsub.f32 0.0, %v2191_v22  ;;  %v2217_v43 = vmul.f32 %v2214_v38, %v2191_v22 }
 0x2bf   :  { %2977 = vpow2.f32 %v2196_v23  ;;  %v2198_v28 = vmul.f32 1.442695, %v2195_v27 }
 0x2c1   :  { %2979 = vpow2.f32 %v2198_v28 }
 0x2c9   :  { %v2978_v24 = vpop.eup %2977 }
 0x2ca   :  { %v2200_v25 = vadd.f32 1.0, %v2978_v24 }
 0x2cb   :  { %v2980_v29 = vpop.eup %2979 }
 0x2cc   :  { %2981 = vrcp.f32 %v2200_v25  ;;  %v2201_v30 = vadd.f32 1.0, %v2980_v29 }
 0x2ce   :  { %2983 = vrcp.f32 %v2201_v30 }
 0x2d6   :  { %v2982_v36 = vpop.eup %2981 }
 0x2d7   :  { %v2204_v37 = vmax.f32 %v2982_v36, 0.0 }
 0x2d8   :  { %v2984_v31 = vpop.eup %2983 }
 0x2d9   :  { %v2206_v32 = vmin.f32 %v2204_v37, 1.0  ;;  %v2205_v33 = vmax.f32 %v2984_v31, 0.0 }
 0x2db   :  { %v2224_v40 = vmul.f32 %v2222_v26, %v2206_v32  ;;  %v2207_v41 = vmin.f32 %v2205_v33, 1.0 }
 0x2dd   :  { %v2226_v42 = vadd.f32 %v2224_v40, %v2216_v39  ;;  %v2225_v44 = vmul.f32 %v2222_v26, %v2207_v41 }
 0x2df   :  { %2228 = vst [vmem:[%s3953_s6] sm:$0xff] %v2226_v42  ;;  %v2227_v45 = vadd.f32 %v2225_v44, %v2217_v43 }
 0x2e1   :  { %2229 = vst [vmem:[%s3953_s6 + $0x8] sm:$0xff] %v2227_v45 }

</bundles_post_ra>
